<compile_context>
chip_gen: v5e
topology: v5e:2x2
jax: 0.10.0
libtpu: 0.0.40
codegen_flags: <defaults>
</compile_context>

<pallas_src>
import functools

import jax
import jax.numpy as jnp
from jax import lax
from jax.experimental import pallas as pl
from jax.experimental.pallas import tpu as pltpu

K = 5      # conv kernel size
PAD = 2    # 'same' padding for the 5x5 conv


def _round_up(x, m):
    return (x + m - 1) // m * m


def _encoding_block_kernel(xf_ref, w1_ref, b1_ref, w2_ref, b2_ref, sel_ref,
                           skip_ref, pool_ref, y1f_ref,
                           *, H, W, k1_pad, k2_pad, m_pad):
    """Fused conv1(5x5)+ReLU -> conv2(5x5)+ReLU -> 2x2 max-pool for one image.

    xf_ref  : (Cin, m_pad + H*W + m_pad)  flat, zero-haloed input (channel-major)
    w*_ref  : (Cout, k*_pad)              im2col weights, contraction padded to 128 mult
    b*_ref  : (Cout, 1)
    sel_ref : (4, H*W, (H//2)*(W//2))     one-hot 2x2-window decimation matrices
    skip_ref: (Cout2, H*W)                conv2 output (lane-dense)
    pool_ref: (Cout2, (H//2)*(W//2))
    y1f_ref : VMEM scratch (Cout1, m_pad + H*W + m_pad): conv1 output re-embedded
              in the same flat zero-haloed layout so conv2 reuses the tap slicing.
    """
    HW = H * W
    f32 = jnp.float32

    # Column-validity masks for horizontally shifted taps (shared by both convs).
    col = lax.broadcasted_iota(jnp.int32, (1, HW), 1) % W
    cmask = {
        dw: jnp.logical_and(col + dw >= 0, col + dw < W).astype(f32)
        for dw in range(-PAD, PAD + 1) if dw != 0
    }

    def conv5x5_relu(src_ref, w_ref, b_ref, k_pad):
        """src_ref: flat zero-haloed image ref. Returns relu(conv5x5 + b): (Cout, HW)."""
        cin = src_ref.shape[0]
        taps = []
        for kh in range(K):
            dh = kh - PAD
            for kw in range(K):
                dw = kw - PAD
                start = m_pad + dh * W + dw
                t = src_ref[:, start:start + HW]           # (cin, HW) shifted tap
                if dw != 0:                                 # kill row wrap-around
                    t = t * cmask[dw]
                taps.append(t)
        kkc = K * K * cin
        if k_pad > kkc:                                     # pad contraction to 128 mult
            taps.append(jnp.zeros((k_pad - kkc, HW), f32))
        patches = jnp.concatenate(taps, axis=0)             # (k_pad, HW), lane-dense
        z = jnp.dot(w_ref[...], patches, preferred_element_type=f32)
        # Bias broadcast + ReLU.  Dropout(p=0.3) is the identity in eval mode.
        return jnp.maximum(z + b_ref[...], 0.0)

    # ---- conv block 1 (flat halo zero-padding prepared once by the wrapper) ----
    y1 = conv5x5_relu(xf_ref, w1_ref, b1_ref, k1_pad)       # (C1, HW), stays in VMEM

    # Re-embed y1 in the flat zero-haloed layout (VMEM scratch only, no HBM trip).
    # Halo-only zeroing: the interior is fully overwritten, so this is correct
    # every grid iteration (no reliance on cross-iteration scratch state).
    c1 = y1f_ref.shape[0]
    y1f_ref[:, :m_pad] = jnp.zeros((c1, m_pad), f32)
    y1f_ref[:, m_pad + HW:] = jnp.zeros((c1, m_pad), f32)
    y1f_ref[:, m_pad:m_pad + HW] = y1

    # ---- conv block 2 ----
    y2 = conv5x5_relu(y1f_ref, w2_ref, b2_ref, k2_pad)      # (C2, HW)
    skip_ref[...] = y2.astype(skip_ref.dtype)

    # ---- 2x2 / stride-2 max pool (vectorized) ----
    # Decimation via four one-hot selection matmuls (one per 2x2 window position,
    # selection matrices precomputed in the wrapper) + elementwise maxima.
    pooled = None
    for t in range(4):
        cand = jnp.dot(y2, sel_ref[t], preferred_element_type=f32)  # (C2, HP*WP)
        pooled = cand if pooled is None else jnp.maximum(pooled, cand)
    pool_ref[...] = pooled.astype(pool_ref.dtype)


def encoding_block_forward(x_nchw, params):
    """EncodingBlock.forward (dimensions=2, normalization=None, pooling_type='max',
    eval mode).  Returns (pooled, skip_connection), both NCHW like the PyTorch module."""
    n, c_in, H, W = x_nchw.shape
    w1, b1 = params["w1"], params["b1"]      # (C1, Cin, K, K), (C1,)
    w2, b2 = params["w2"], params["b2"]      # (C2, C1,  K, K), (C2,)
    c1, c2 = w1.shape[0], w2.shape[0]
    HW = H * W
    HP, WP = H // 2, W // 2

    # Flat "halo" padding sized for the 5x5 stencil, rounded up to a full lane tile
    # so every in-kernel offset/store stays 128-friendly.
    m_pad = _round_up(PAD * W + PAD, 128)

    # Channel-major, spatially flattened, zero-haloed input (no 25x im2col in HBM).
    xf = jnp.pad(x_nchw.reshape(n, c_in, HW).astype(jnp.float32),
                 ((0, 0), (0, 0), (m_pad, m_pad)))

    # im2col weight packing: feature order (kh, kw, cin); contraction padded to 128 mult.
    k1_pad = _round_up(K * K * c_in, 128)
    k2_pad = _round_up(K * K * c1, 128)

    def pack_w(w, k_pad):
        co = w.shape[0]
        w2d = jnp.transpose(w, (0, 2, 3, 1)).reshape(co, -1)     # (Cout, K*K*Cin)
        return jnp.pad(w2d, ((0, 0), (0, k_pad - w2d.shape[1]))).astype(jnp.float32)

    w1p, w2p = pack_w(w1, k1_pad), pack_w(w2, k2_pad)
    b1c = b1.reshape(c1, 1).astype(jnp.float32)
    b2c = b2.reshape(c2, 1).astype(jnp.float32)

    # One-hot 2x2-window decimation matrices (built once, constant across the grid).
    hw_idx = jnp.arange(HW, dtype=jnp.int32)[:, None]            # (HW, 1)
    out_idx = jnp.arange(HP * WP, dtype=jnp.int32)[None, :]      # (1, HP*WP)
    base = (out_idx // WP) * (2 * W) + (out_idx % WP) * 2        # top-left of each window
    sel = jnp.stack([(hw_idx == base + off).astype(jnp.float32)
                     for off in (0, 1, W, W + 1)], axis=0)       # (4, HW, HP*WP)

    kern = functools.partial(_encoding_block_kernel, H=H, W=W,
                             k1_pad=k1_pad, k2_pad=k2_pad, m_pad=m_pad)
    skip, pooled = pl.pallas_call(
        kern,
        out_shape=(
            jax.ShapeDtypeStruct((n, c2, HW), x_nchw.dtype),        # skip (lane-dense)
            jax.ShapeDtypeStruct((n, c2, HP * WP), x_nchw.dtype),   # pooled
        ),
        grid=(n,),
        in_specs=[
            pl.BlockSpec((None, c_in, HW + 2 * m_pad), lambda i: (i, 0, 0)),
            pl.BlockSpec((c1, k1_pad), lambda i: (0, 0)),
            pl.BlockSpec((c1, 1), lambda i: (0, 0)),
            pl.BlockSpec((c2, k2_pad), lambda i: (0, 0)),
            pl.BlockSpec((c2, 1), lambda i: (0, 0)),
            pl.BlockSpec((4, HW, HP * WP), lambda i: (0, 0, 0)),
        ],
        out_specs=(
            pl.BlockSpec((None, c2, HW), lambda i: (i, 0, 0)),
            pl.BlockSpec((None, c2, HP * WP), lambda i: (i, 0, 0)),
        ),
        scratch_shapes=[pltpu.VMEM((c1, HW + 2 * m_pad), jnp.float32)],
        compiler_params=pltpu.CompilerParams(
            dimension_semantics=("parallel",)),
    )(xf, w1p, b1c, w2p, b2c, sel)

    pooled = pooled.reshape(n, c2, HP, WP)
    skip = skip.reshape(n, c2, H, W)
    # TODO(synk): normalization=None and eval-mode dropout are identities here;
    # train-mode dropout / norm variants are not implemented.
    return pooled, skip


# ------------------------------ reference ---------------------------------- #
def _ref_forward(x_nchw, params):
    """Pure-XLA reference: Conv2d(5, pad=2)+ReLU twice, then MaxPool2d(2)."""
    dn = ("NCHW", "OIHW", "NCHW")

    def cb(x, w, b):
        y = lax.conv_general_dilated(x, w, (1, 1), ((PAD, PAD), (PAD, PAD)),
                                     dimension_numbers=dn,
                                     precision=lax.Precision.HIGHEST)
        return jnp.maximum(y + b[None, :, None, None], 0.0)

    y = cb(cb(x_nchw, params["w1"], params["b1"]), params["w2"], params["b2"])
    pooled = lax.reduce_window(y, -jnp.inf, lax.max,
                               (1, 1, 2, 2), (1, 1, 2, 2), "VALID")
    return pooled, y


if __name__ == "__main__":
    N, C_IN, H, W = 2, 4, 16, 16
    C1 = 8  # out_channels_first (== out_channels_second)

    key = jax.random.PRNGKey(0)
    kx, kw1, kb1, kw2, kb2 = jax.random.split(key, 5)
    x = jax.random.normal(kx, (N, C_IN, H, W), jnp.float32)
    params = {
        "w1": 0.1 * jax.random.normal(kw1, (C1, C_IN, K, K), jnp.float32),
        "b1": 0.1 * jax.random.normal(kb1, (C1,), jnp.float32),
        "w2": 0.1 * jax.random.normal(kw2, (C1, C1, K, K), jnp.float32),
        "b2": 0.1 * jax.random.normal(kb2, (C1,), jnp.float32),
    }

    pooled, skip = jax.jit(encoding_block_forward)(x, params)
    jax.block_until_ready((pooled, skip))

    ref_pooled, ref_skip = _ref_forward(x, params)
    assert pooled.shape == (N, C1, H // 2, W // 2) and skip.shape == (N, C1, H, W)
    # Tolerance covers the MXU's (multi-)bf16-pass implementation of f32 matmul.
    assert jnp.allclose(skip, ref_skip, atol=1e-2, rtol=1e-2)
    assert jnp.allclose(pooled, ref_pooled, atol=1e-2, rtol=1e-2)

    print("KERNEL_OK")
</pallas_src>

<mosaic_0001>
module attributes {stable_mosaic.version = 11 : i64} {
  func.func @_encoding_block_kernel(%arg0: i32, %arg1: memref<1x4x512xf32, #tpu.memory_space<vmem>>, %arg2: memref<8x128xf32, #tpu.memory_space<vmem>>, %arg3: memref<8x1xf32, #tpu.memory_space<vmem>>, %arg4: memref<8x256xf32, #tpu.memory_space<vmem>>, %arg5: memref<8x1xf32, #tpu.memory_space<vmem>>, %arg6: memref<4x256x64xf32, #tpu.memory_space<vmem>>, %arg7: memref<1x8x256xf32, #tpu.memory_space<vmem>>, %arg8: memref<1x8x64xf32, #tpu.memory_space<vmem>>, %arg9: memref<8x512xf32, #tpu.memory_space<vmem>>) attributes {dimension_semantics = [#tpu.dimension_semantics<parallel>], iteration_bounds = array<i64: 2>, scalar_prefetch = 0 : i64, scratch_operands = 1 : i64, tpu.core_type = #tpu.core_type<tc>, window_params = [{transform_indices = @transform_0, window_bounds = array<i64: 1, 4, 512>}, {pipeline_mode = #tpu.pipeline_mode<synchronous>, transform_indices = @transform_1, window_bounds = array<i64: 8, 128>}, {pipeline_mode = #tpu.pipeline_mode<synchronous>, transform_indices = @transform_2, window_bounds = array<i64: 8, 1>}, {pipeline_mode = #tpu.pipeline_mode<synchronous>, transform_indices = @transform_3, window_bounds = array<i64: 8, 256>}, {pipeline_mode = #tpu.pipeline_mode<synchronous>, transform_indices = @transform_4, window_bounds = array<i64: 8, 1>}, {pipeline_mode = #tpu.pipeline_mode<synchronous>, transform_indices = @transform_5, window_bounds = array<i64: 4, 256, 64>}, {transform_indices = @transform_6, window_bounds = array<i64: 1, 8, 256>}, {transform_indices = @transform_7, window_bounds = array<i64: 1, 8, 64>}]} {
    %0 = tpu.iota {dimensions = array<i32: 1>} : vector<1x256xi32>
    %c16_i32 = arith.constant 16 : i32
    %c0_i32 = arith.constant 0 : i32
    %1 = arith.cmpi eq, %c16_i32, %c0_i32 : i32
    %c1_i32 = arith.constant 1 : i32
    %2 = arith.select %1, %c1_i32, %c16_i32 : i32
    %3 = vector.broadcast %2 : i32 to vector<1x256xi32>
    %4 = arith.remsi %0, %3 : vector<1x256xi32>
    %c0_i32_0 = arith.constant 0 : i32
    %5 = vector.broadcast %c0_i32_0 : i32 to vector<1x256xi32>
    %6 = arith.cmpi ne, %4, %5 : vector<1x256xi32>
    %c0_i32_1 = arith.constant 0 : i32
    %7 = vector.broadcast %c0_i32_1 : i32 to vector<1x256xi32>
    %8 = arith.cmpi slt, %4, %7 : vector<1x256xi32>
    %c0_i32_2 = arith.constant 0 : i32
    %9 = arith.cmpi slt, %2, %c0_i32_2 : i32
    %10 = vector.broadcast %9 : i1 to vector<1x256xi1>
    %11 = vector.broadcast %10 : vector<1x256xi1> to vector<1x256xi1>
    %12 = arith.xori %8, %11 : vector<1x256xi1>
    %13 = arith.andi %12, %6 : vector<1x256xi1>
    %14 = vector.broadcast %2 : i32 to vector<1x256xi32>
    %15 = arith.addi %4, %14 : vector<1x256xi32>
    %16 = arith.select %13, %15, %4 : vector<1x256xi1>, vector<1x256xi32>
    %c-2_i32 = arith.constant -2 : i32
    %17 = vector.broadcast %c-2_i32 : i32 to vector<1x256xi32>
    %18 = arith.addi %16, %17 : vector<1x256xi32>
    %c0_i32_3 = arith.constant 0 : i32
    %19 = vector.broadcast %c0_i32_3 : i32 to vector<1x256xi32>
    %20 = arith.cmpi sge, %18, %19 : vector<1x256xi32>
    %c-2_i32_4 = arith.constant -2 : i32
    %21 = vector.broadcast %c-2_i32_4 : i32 to vector<1x256xi32>
    %22 = arith.addi %16, %21 : vector<1x256xi32>
    %c16_i32_5 = arith.constant 16 : i32
    %23 = vector.broadcast %c16_i32_5 : i32 to vector<1x256xi32>
    %24 = arith.cmpi slt, %22, %23 : vector<1x256xi32>
    %25 = arith.andi %20, %24 : vector<1x256xi1>
    %26 = arith.extui %25 : vector<1x256xi1> to vector<1x256xi32>
    %27 = arith.sitofp %26 : vector<1x256xi32> to vector<1x256xf32>
    %c-1_i32 = arith.constant -1 : i32
    %28 = vector.broadcast %c-1_i32 : i32 to vector<1x256xi32>
    %29 = arith.addi %16, %28 : vector<1x256xi32>
    %c0_i32_6 = arith.constant 0 : i32
    %30 = vector.broadcast %c0_i32_6 : i32 to vector<1x256xi32>
    %31 = arith.cmpi sge, %29, %30 : vector<1x256xi32>
    %c-1_i32_7 = arith.constant -1 : i32
    %32 = vector.broadcast %c-1_i32_7 : i32 to vector<1x256xi32>
    %33 = arith.addi %16, %32 : vector<1x256xi32>
    %c16_i32_8 = arith.constant 16 : i32
    %34 = vector.broadcast %c16_i32_8 : i32 to vector<1x256xi32>
    %35 = arith.cmpi slt, %33, %34 : vector<1x256xi32>
    %36 = arith.andi %31, %35 : vector<1x256xi1>
    %37 = arith.extui %36 : vector<1x256xi1> to vector<1x256xi32>
    %38 = arith.sitofp %37 : vector<1x256xi32> to vector<1x256xf32>
    %c1_i32_9 = arith.constant 1 : i32
    %39 = vector.broadcast %c1_i32_9 : i32 to vector<1x256xi32>
    %40 = arith.addi %16, %39 : vector<1x256xi32>
    %c0_i32_10 = arith.constant 0 : i32
    %41 = vector.broadcast %c0_i32_10 : i32 to vector<1x256xi32>
    %42 = arith.cmpi sge, %40, %41 : vector<1x256xi32>
    %c1_i32_11 = arith.constant 1 : i32
    %43 = vector.broadcast %c1_i32_11 : i32 to vector<1x256xi32>
    %44 = arith.addi %16, %43 : vector<1x256xi32>
    %c16_i32_12 = arith.constant 16 : i32
    %45 = vector.broadcast %c16_i32_12 : i32 to vector<1x256xi32>
    %46 = arith.cmpi slt, %44, %45 : vector<1x256xi32>
    %47 = arith.andi %42, %46 : vector<1x256xi1>
    %48 = arith.extui %47 : vector<1x256xi1> to vector<1x256xi32>
    %49 = arith.sitofp %48 : vector<1x256xi32> to vector<1x256xf32>
    %c2_i32 = arith.constant 2 : i32
    %50 = vector.broadcast %c2_i32 : i32 to vector<1x256xi32>
    %51 = arith.addi %16, %50 : vector<1x256xi32>
    %c0_i32_13 = arith.constant 0 : i32
    %52 = vector.broadcast %c0_i32_13 : i32 to vector<1x256xi32>
    %53 = arith.cmpi sge, %51, %52 : vector<1x256xi32>
    %c2_i32_14 = arith.constant 2 : i32
    %54 = vector.broadcast %c2_i32_14 : i32 to vector<1x256xi32>
    %55 = arith.addi %16, %54 : vector<1x256xi32>
    %c16_i32_15 = arith.constant 16 : i32
    %56 = vector.broadcast %c16_i32_15 : i32 to vector<1x256xi32>
    %57 = arith.cmpi slt, %55, %56 : vector<1x256xi32>
    %58 = arith.andi %53, %57 : vector<1x256xi1>
    %59 = arith.extui %58 : vector<1x256xi1> to vector<1x256xi32>
    %60 = arith.sitofp %59 : vector<1x256xi32> to vector<1x256xf32>
    %c0 = arith.constant 0 : index
    %c0_16 = arith.constant 0 : index
    %c94 = arith.constant 94 : index
    %61 = vector.load %arg1[%c0, %c0_16, %c94] : memref<1x4x512xf32, #tpu.memory_space<vmem>>, vector<1x4x256xf32>
    %62 = vector.shape_cast %61 : vector<1x4x256xf32> to vector<4x256xf32>
    %63 = vector.broadcast %27 : vector<1x256xf32> to vector<4x256xf32>
    %64 = arith.mulf %62, %63 : vector<4x256xf32>
    %c0_17 = arith.constant 0 : index
    %c0_18 = arith.constant 0 : index
    %c95 = arith.constant 95 : index
    %65 = vector.load %arg1[%c0_17, %c0_18, %c95] : memref<1x4x512xf32, #tpu.memory_space<vmem>>, vector<1x4x256xf32>
    %66 = vector.shape_cast %65 : vector<1x4x256xf32> to vector<4x256xf32>
    %67 = vector.broadcast %38 : vector<1x256xf32> to vector<4x256xf32>
    %68 = arith.mulf %66, %67 : vector<4x256xf32>
    %c0_19 = arith.constant 0 : index
    %c0_20 = arith.constant 0 : index
    %c96 = arith.constant 96 : index
    %69 = vector.load %arg1[%c0_19, %c0_20, %c96] : memref<1x4x512xf32, #tpu.memory_space<vmem>>, vector<1x4x256xf32>
    %70 = vector.shape_cast %69 : vector<1x4x256xf32> to vector<4x256xf32>
    %c0_21 = arith.constant 0 : index
    %c0_22 = arith.constant 0 : index
    %c97 = arith.constant 97 : index
    %71 = vector.load %arg1[%c0_21, %c0_22, %c97] : memref<1x4x512xf32, #tpu.memory_space<vmem>>, vector<1x4x256xf32>
    %72 = vector.shape_cast %71 : vector<1x4x256xf32> to vector<4x256xf32>
    %73 = vector.broadcast %49 : vector<1x256xf32> to vector<4x256xf32>
    %74 = arith.mulf %72, %73 : vector<4x256xf32>
    %c0_23 = arith.constant 0 : index
    %c0_24 = arith.constant 0 : index
    %c98 = arith.constant 98 : index
    %75 = vector.load %arg1[%c0_23, %c0_24, %c98] : memref<1x4x512xf32, #tpu.memory_space<vmem>>, vector<1x4x256xf32>
    %76 = vector.shape_cast %75 : vector<1x4x256xf32> to vector<4x256xf32>
    %77 = vector.broadcast %60 : vector<1x256xf32> to vector<4x256xf32>
    %78 = arith.mulf %76, %77 : vector<4x256xf32>
    %c0_25 = arith.constant 0 : index
    %c0_26 = arith.constant 0 : index
    %c110 = arith.constant 110 : index
    %79 = vector.load %arg1[%c0_25, %c0_26, %c110] : memref<1x4x512xf32, #tpu.memory_space<vmem>>, vector<1x4x256xf32>
    %80 = vector.shape_cast %79 : vector<1x4x256xf32> to vector<4x256xf32>
    %81 = vector.broadcast %27 : vector<1x256xf32> to vector<4x256xf32>
    %82 = arith.mulf %80, %81 : vector<4x256xf32>
    %c0_27 = arith.constant 0 : index
    %c0_28 = arith.constant 0 : index
    %c111 = arith.constant 111 : index
    %83 = vector.load %arg1[%c0_27, %c0_28, %c111] : memref<1x4x512xf32, #tpu.memory_space<vmem>>, vector<1x4x256xf32>
    %84 = vector.shape_cast %83 : vector<1x4x256xf32> to vector<4x256xf32>
    %85 = vector.broadcast %38 : vector<1x256xf32> to vector<4x256xf32>
    %86 = arith.mulf %84, %85 : vector<4x256xf32>
    %c0_29 = arith.constant 0 : index
    %c0_30 = arith.constant 0 : index
    %c112 = arith.constant 112 : index
    %87 = vector.load %arg1[%c0_29, %c0_30, %c112] : memref<1x4x512xf32, #tpu.memory_space<vmem>>, vector<1x4x256xf32>
    %88 = vector.shape_cast %87 : vector<1x4x256xf32> to vector<4x256xf32>
    %c0_31 = arith.constant 0 : index
    %c0_32 = arith.constant 0 : index
    %c113 = arith.constant 113 : index
    %89 = vector.load %arg1[%c0_31, %c0_32, %c113] : memref<1x4x512xf32, #tpu.memory_space<vmem>>, vector<1x4x256xf32>
    %90 = vector.shape_cast %89 : vector<1x4x256xf32> to vector<4x256xf32>
    %91 = vector.broadcast %49 : vector<1x256xf32> to vector<4x256xf32>
    %92 = arith.mulf %90, %91 : vector<4x256xf32>
    %c0_33 = arith.constant 0 : index
    %c0_34 = arith.constant 0 : index
    %c114 = arith.constant 114 : index
    %93 = vector.load %arg1[%c0_33, %c0_34, %c114] : memref<1x4x512xf32, #tpu.memory_space<vmem>>, vector<1x4x256xf32>
    %94 = vector.shape_cast %93 : vector<1x4x256xf32> to vector<4x256xf32>
    %95 = vector.broadcast %60 : vector<1x256xf32> to vector<4x256xf32>
    %96 = arith.mulf %94, %95 : vector<4x256xf32>
    %c0_35 = arith.constant 0 : index
    %c0_36 = arith.constant 0 : index
    %c126 = arith.constant 126 : index
    %97 = vector.load %arg1[%c0_35, %c0_36, %c126] : memref<1x4x512xf32, #tpu.memory_space<vmem>>, vector<1x4x256xf32>
    %98 = vector.shape_cast %97 : vector<1x4x256xf32> to vector<4x256xf32>
    %99 = vector.broadcast %27 : vector<1x256xf32> to vector<4x256xf32>
    %100 = arith.mulf %98, %99 : vector<4x256xf32>
    %c0_37 = arith.constant 0 : index
    %c0_38 = arith.constant 0 : index
    %c127 = arith.constant 127 : index
    %101 = vector.load %arg1[%c0_37, %c0_38, %c127] : memref<1x4x512xf32, #tpu.memory_space<vmem>>, vector<1x4x256xf32>
    %102 = vector.shape_cast %101 : vector<1x4x256xf32> to vector<4x256xf32>
    %103 = vector.broadcast %38 : vector<1x256xf32> to vector<4x256xf32>
    %104 = arith.mulf %102, %103 : vector<4x256xf32>
    %c0_39 = arith.constant 0 : index
    %c0_40 = arith.constant 0 : index
    %c128 = arith.constant 128 : index
    %105 = vector.load %arg1[%c0_39, %c0_40, %c128] : memref<1x4x512xf32, #tpu.memory_space<vmem>>, vector<1x4x256xf32>
    %106 = vector.shape_cast %105 : vector<1x4x256xf32> to vector<4x256xf32>
    %c0_41 = arith.constant 0 : index
    %c0_42 = arith.constant 0 : index
    %c129 = arith.constant 129 : index
    %107 = vector.load %arg1[%c0_41, %c0_42, %c129] : memref<1x4x512xf32, #tpu.memory_space<vmem>>, vector<1x4x256xf32>
    %108 = vector.shape_cast %107 : vector<1x4x256xf32> to vector<4x256xf32>
    %109 = vector.broadcast %49 : vector<1x256xf32> to vector<4x256xf32>
    %110 = arith.mulf %108, %109 : vector<4x256xf32>
    %c0_43 = arith.constant 0 : index
    %c0_44 = arith.constant 0 : index
    %c130 = arith.constant 130 : index
    %111 = vector.load %arg1[%c0_43, %c0_44, %c130] : memref<1x4x512xf32, #tpu.memory_space<vmem>>, vector<1x4x256xf32>
    %112 = vector.shape_cast %111 : vector<1x4x256xf32> to vector<4x256xf32>
    %113 = vector.broadcast %60 : vector<1x256xf32> to vector<4x256xf32>
    %114 = arith.mulf %112, %113 : vector<4x256xf32>
    %c0_45 = arith.constant 0 : index
    %c0_46 = arith.constant 0 : index
    %c142 = arith.constant 142 : index
    %115 = vector.load %arg1[%c0_45, %c0_46, %c142] : memref<1x4x512xf32, #tpu.memory_space<vmem>>, vector<1x4x256xf32>
    %116 = vector.shape_cast %115 : vector<1x4x256xf32> to vector<4x256xf32>
    %117 = vector.broadcast %27 : vector<1x256xf32> to vector<4x256xf32>
    %118 = arith.mulf %116, %117 : vector<4x256xf32>
    %c0_47 = arith.constant 0 : index
    %c0_48 = arith.constant 0 : index
    %c143 = arith.constant 143 : index
    %119 = vector.load %arg1[%c0_47, %c0_48, %c143] : memref<1x4x512xf32, #tpu.memory_space<vmem>>, vector<1x4x256xf32>
    %120 = vector.shape_cast %119 : vector<1x4x256xf32> to vector<4x256xf32>
    %121 = vector.broadcast %38 : vector<1x256xf32> to vector<4x256xf32>
    %122 = arith.mulf %120, %121 : vector<4x256xf32>
    %c0_49 = arith.constant 0 : index
    %c0_50 = arith.constant 0 : index
    %c144 = arith.constant 144 : index
    %123 = vector.load %arg1[%c0_49, %c0_50, %c144] : memref<1x4x512xf32, #tpu.memory_space<vmem>>, vector<1x4x256xf32>
    %124 = vector.shape_cast %123 : vector<1x4x256xf32> to vector<4x256xf32>
    %c0_51 = arith.constant 0 : index
    %c0_52 = arith.constant 0 : index
    %c145 = arith.constant 145 : index
    %125 = vector.load %arg1[%c0_51, %c0_52, %c145] : memref<1x4x512xf32, #tpu.memory_space<vmem>>, vector<1x4x256xf32>
    %126 = vector.shape_cast %125 : vector<1x4x256xf32> to vector<4x256xf32>
    %127 = vector.broadcast %49 : vector<1x256xf32> to vector<4x256xf32>
    %128 = arith.mulf %126, %127 : vector<4x256xf32>
    %c0_53 = arith.constant 0 : index
    %c0_54 = arith.constant 0 : index
    %c146 = arith.constant 146 : index
    %129 = vector.load %arg1[%c0_53, %c0_54, %c146] : memref<1x4x512xf32, #tpu.memory_space<vmem>>, vector<1x4x256xf32>
    %130 = vector.shape_cast %129 : vector<1x4x256xf32> to vector<4x256xf32>
    %131 = vector.broadcast %60 : vector<1x256xf32> to vector<4x256xf32>
    %132 = arith.mulf %130, %131 : vector<4x256xf32>
    %c0_55 = arith.constant 0 : index
    %c0_56 = arith.constant 0 : index
    %c158 = arith.constant 158 : index
    %133 = vector.load %arg1[%c0_55, %c0_56, %c158] : memref<1x4x512xf32, #tpu.memory_space<vmem>>, vector<1x4x256xf32>
    %134 = vector.shape_cast %133 : vector<1x4x256xf32> to vector<4x256xf32>
    %135 = vector.broadcast %27 : vector<1x256xf32> to vector<4x256xf32>
    %136 = arith.mulf %134, %135 : vector<4x256xf32>
    %c0_57 = arith.constant 0 : index
    %c0_58 = arith.constant 0 : index
    %c159 = arith.constant 159 : index
    %137 = vector.load %arg1[%c0_57, %c0_58, %c159] : memref<1x4x512xf32, #tpu.memory_space<vmem>>, vector<1x4x256xf32>
    %138 = vector.shape_cast %137 : vector<1x4x256xf32> to vector<4x256xf32>
    %139 = vector.broadcast %38 : vector<1x256xf32> to vector<4x256xf32>
    %140 = arith.mulf %138, %139 : vector<4x256xf32>
    %c0_59 = arith.constant 0 : index
    %c0_60 = arith.constant 0 : index
    %c160 = arith.constant 160 : index
    %141 = vector.load %arg1[%c0_59, %c0_60, %c160] : memref<1x4x512xf32, #tpu.memory_space<vmem>>, vector<1x4x256xf32>
    %142 = vector.shape_cast %141 : vector<1x4x256xf32> to vector<4x256xf32>
    %c0_61 = arith.constant 0 : index
    %c0_62 = arith.constant 0 : index
    %c161 = arith.constant 161 : index
    %143 = vector.load %arg1[%c0_61, %c0_62, %c161] : memref<1x4x512xf32, #tpu.memory_space<vmem>>, vector<1x4x256xf32>
    %144 = vector.shape_cast %143 : vector<1x4x256xf32> to vector<4x256xf32>
    %145 = vector.broadcast %49 : vector<1x256xf32> to vector<4x256xf32>
    %146 = arith.mulf %144, %145 : vector<4x256xf32>
    %c0_63 = arith.constant 0 : index
    %c0_64 = arith.constant 0 : index
    %c162 = arith.constant 162 : index
    %147 = vector.load %arg1[%c0_63, %c0_64, %c162] : memref<1x4x512xf32, #tpu.memory_space<vmem>>, vector<1x4x256xf32>
    %148 = vector.shape_cast %147 : vector<1x4x256xf32> to vector<4x256xf32>
    %149 = vector.broadcast %60 : vector<1x256xf32> to vector<4x256xf32>
    %150 = arith.mulf %148, %149 : vector<4x256xf32>
    %cst = arith.constant 0.000000e+00 : f32
    %151 = vector.broadcast %cst : f32 to vector<28x256xf32>
    %152 = tpu.concatenate %64, %68, %70, %74, %78, %82, %86, %88, %92, %96, %100, %104, %106, %110, %114, %118 in 0 : vector<4x256xf32>, vector<4x256xf32>, vector<4x256xf32>, vector<4x256xf32>, vector<4x256xf32>, vector<4x256xf32>, vector<4x256xf32>, vector<4x256xf32>, vector<4x256xf32>, vector<4x256xf32>, vector<4x256xf32>, vector<4x256xf32>, vector<4x256xf32>, vector<4x256xf32>, vector<4x256xf32>, vector<4x256xf32> -> vector<64x256xf32>
    %153 = tpu.concatenate %122, %124, %128, %132, %136, %140, %142, %146, %150, %151 in 0 : vector<4x256xf32>, vector<4x256xf32>, vector<4x256xf32>, vector<4x256xf32>, vector<4x256xf32>, vector<4x256xf32>, vector<4x256xf32>, vector<4x256xf32>, vector<4x256xf32>, vector<28x256xf32> -> vector<64x256xf32>
    %154 = tpu.concatenate %152, %153 in 0 : vector<64x256xf32>, vector<64x256xf32> -> vector<128x256xf32>
    %c0_65 = arith.constant 0 : index
    %c0_66 = arith.constant 0 : index
    %155 = vector.load %arg2[%c0_65, %c0_66] : memref<8x128xf32, #tpu.memory_space<vmem>>, vector<8x128xf32>
    %cst_67 = arith.constant dense<0.000000e+00> : vector<8x256xf32>
    %156 = tpu.matmul %155, %154, %cst_67 {dimension_numbers = #tpu.dot_dimension_numbers<[1], [0], [0], [1], [0, 0, 1, 1], [], []>} : vector<8x128xf32>, vector<128x256xf32>, vector<8x256xf32> -> vector<8x256xf32>
    %c0_68 = arith.constant 0 : index
    %c0_69 = arith.constant 0 : index
    %157 = vector.load %arg3[%c0_68, %c0_69] : memref<8x1xf32, #tpu.memory_space<vmem>>, vector<8x1xf32>
    %158 = vector.broadcast %157 : vector<8x1xf32> to vector<8x256xf32>
    %159 = arith.addf %156, %158 : vector<8x256xf32>
    %cst_70 = arith.constant 0.000000e+00 : f32
    %160 = vector.broadcast %cst_70 : f32 to vector<8x256xf32>
    %161 = arith.maximumf %159, %160 : vector<8x256xf32>
    %cst_71 = arith.constant 0.000000e+00 : f32
    %162 = vector.broadcast %cst_71 : f32 to vector<8x128xf32>
    %c0_72 = arith.constant 0 : index
    %c0_73 = arith.constant 0 : index
    %163 = vector.load %arg9[%c0_72, %c0_73] : memref<8x512xf32, #tpu.memory_space<vmem>>, vector<8x128xf32>
    tpu.vector_store %arg9[%c0_72, %c0_73], %162 {strides = array<i32>} : memref<8x512xf32, #tpu.memory_space<vmem>>, vector<8x128xf32>,
    %cst_74 = arith.constant 0.000000e+00 : f32
    %164 = vector.broadcast %cst_74 : f32 to vector<8x128xf32>
    %c0_75 = arith.constant 0 : index
    %c384 = arith.constant 384 : index
    %165 = vector.load %arg9[%c0_75, %c384] : memref<8x512xf32, #tpu.memory_space<vmem>>, vector<8x128xf32>
    tpu.vector_store %arg9[%c0_75, %c384], %164 {strides = array<i32>} : memref<8x512xf32, #tpu.memory_space<vmem>>, vector<8x128xf32>,
    %c0_76 = arith.constant 0 : index
    %c128_77 = arith.constant 128 : index
    %166 = vector.load %arg9[%c0_76, %c128_77] : memref<8x512xf32, #tpu.memory_space<vmem>>, vector<8x256xf32>
    tpu.vector_store %arg9[%c0_76, %c128_77], %161 {strides = array<i32>} : memref<8x512xf32, #tpu.memory_space<vmem>>, vector<8x256xf32>,
    %c0_78 = arith.constant 0 : index
    %c94_79 = arith.constant 94 : index
    %167 = vector.load %arg9[%c0_78, %c94_79] : memref<8x512xf32, #tpu.memory_space<vmem>>, vector<8x256xf32>
    %168 = vector.broadcast %27 : vector<1x256xf32> to vector<8x256xf32>
    %169 = arith.mulf %167, %168 : vector<8x256xf32>
    %c0_80 = arith.constant 0 : index
    %c95_81 = arith.constant 95 : index
    %170 = vector.load %arg9[%c0_80, %c95_81] : memref<8x512xf32, #tpu.memory_space<vmem>>, vector<8x256xf32>
    %171 = vector.broadcast %38 : vector<1x256xf32> to vector<8x256xf32>
    %172 = arith.mulf %170, %171 : vector<8x256xf32>
    %c0_82 = arith.constant 0 : index
    %c96_83 = arith.constant 96 : index
    %173 = vector.load %arg9[%c0_82, %c96_83] : memref<8x512xf32, #tpu.memory_space<vmem>>, vector<8x256xf32>
    %c0_84 = arith.constant 0 : index
    %c97_85 = arith.constant 97 : index
    %174 = vector.load %arg9[%c0_84, %c97_85] : memref<8x512xf32, #tpu.memory_space<vmem>>, vector<8x256xf32>
    %175 = vector.broadcast %49 : vector<1x256xf32> to vector<8x256xf32>
    %176 = arith.mulf %174, %175 : vector<8x256xf32>
    %c0_86 = arith.constant 0 : index
    %c98_87 = arith.constant 98 : index
    %177 = vector.load %arg9[%c0_86, %c98_87] : memref<8x512xf32, #tpu.memory_space<vmem>>, vector<8x256xf32>
    %178 = vector.broadcast %60 : vector<1x256xf32> to vector<8x256xf32>
    %179 = arith.mulf %177, %178 : vector<8x256xf32>
    %c0_88 = arith.constant 0 : index
    %c110_89 = arith.constant 110 : index
    %180 = vector.load %arg9[%c0_88, %c110_89] : memref<8x512xf32, #tpu.memory_space<vmem>>, vector<8x256xf32>
    %181 = vector.broadcast %27 : vector<1x256xf32> to vector<8x256xf32>
    %182 = arith.mulf %180, %181 : vector<8x256xf32>
    %c0_90 = arith.constant 0 : index
    %c111_91 = arith.constant 111 : index
    %183 = vector.load %arg9[%c0_90, %c111_91] : memref<8x512xf32, #tpu.memory_space<vmem>>, vector<8x256xf32>
    %184 = vector.broadcast %38 : vector<1x256xf32> to vector<8x256xf32>
    %185 = arith.mulf %183, %184 : vector<8x256xf32>
    %c0_92 = arith.constant 0 : index
    %c112_93 = arith.constant 112 : index
    %186 = vector.load %arg9[%c0_92, %c112_93] : memref<8x512xf32, #tpu.memory_space<vmem>>, vector<8x256xf32>
    %c0_94 = arith.constant 0 : index
    %c113_95 = arith.constant 113 : index
    %187 = vector.load %arg9[%c0_94, %c113_95] : memref<8x512xf32, #tpu.memory_space<vmem>>, vector<8x256xf32>
    %188 = vector.broadcast %49 : vector<1x256xf32> to vector<8x256xf32>
    %189 = arith.mulf %187, %188 : vector<8x256xf32>
    %c0_96 = arith.constant 0 : index
    %c114_97 = arith.constant 114 : index
    %190 = vector.load %arg9[%c0_96, %c114_97] : memref<8x512xf32, #tpu.memory_space<vmem>>, vector<8x256xf32>
    %191 = vector.broadcast %60 : vector<1x256xf32> to vector<8x256xf32>
    %192 = arith.mulf %190, %191 : vector<8x256xf32>
    %c0_98 = arith.constant 0 : index
    %c126_99 = arith.constant 126 : index
    %193 = vector.load %arg9[%c0_98, %c126_99] : memref<8x512xf32, #tpu.memory_space<vmem>>, vector<8x256xf32>
    %194 = vector.broadcast %27 : vector<1x256xf32> to vector<8x256xf32>
    %195 = arith.mulf %193, %194 : vector<8x256xf32>
    %c0_100 = arith.constant 0 : index
    %c127_101 = arith.constant 127 : index
    %196 = vector.load %arg9[%c0_100, %c127_101] : memref<8x512xf32, #tpu.memory_space<vmem>>, vector<8x256xf32>
    %197 = vector.broadcast %38 : vector<1x256xf32> to vector<8x256xf32>
    %198 = arith.mulf %196, %197 : vector<8x256xf32>
    %c0_102 = arith.constant 0 : index
    %c128_103 = arith.constant 128 : index
    %199 = vector.load %arg9[%c0_102, %c128_103] : memref<8x512xf32, #tpu.memory_space<vmem>>, vector<8x256xf32>
    %c0_104 = arith.constant 0 : index
    %c129_105 = arith.constant 129 : index
    %200 = vector.load %arg9[%c0_104, %c129_105] : memref<8x512xf32, #tpu.memory_space<vmem>>, vector<8x256xf32>
    %201 = vector.broadcast %49 : vector<1x256xf32> to vector<8x256xf32>
    %202 = arith.mulf %200, %201 : vector<8x256xf32>
    %c0_106 = arith.constant 0 : index
    %c130_107 = arith.constant 130 : index
    %203 = vector.load %arg9[%c0_106, %c130_107] : memref<8x512xf32, #tpu.memory_space<vmem>>, vector<8x256xf32>
    %204 = vector.broadcast %60 : vector<1x256xf32> to vector<8x256xf32>
    %205 = arith.mulf %203, %204 : vector<8x256xf32>
    %c0_108 = arith.constant 0 : index
    %c142_109 = arith.constant 142 : index
    %206 = vector.load %arg9[%c0_108, %c142_109] : memref<8x512xf32, #tpu.memory_space<vmem>>, vector<8x256xf32>
    %207 = vector.broadcast %27 : vector<1x256xf32> to vector<8x256xf32>
    %208 = arith.mulf %206, %207 : vector<8x256xf32>
    %c0_110 = arith.constant 0 : index
    %c143_111 = arith.constant 143 : index
    %209 = vector.load %arg9[%c0_110, %c143_111] : memref<8x512xf32, #tpu.memory_space<vmem>>, vector<8x256xf32>
    %210 = vector.broadcast %38 : vector<1x256xf32> to vector<8x256xf32>
    %211 = arith.mulf %209, %210 : vector<8x256xf32>
    %c0_112 = arith.constant 0 : index
    %c144_113 = arith.constant 144 : index
    %212 = vector.load %arg9[%c0_112, %c144_113] : memref<8x512xf32, #tpu.memory_space<vmem>>, vector<8x256xf32>
    %c0_114 = arith.constant 0 : index
    %c145_115 = arith.constant 145 : index
    %213 = vector.load %arg9[%c0_114, %c145_115] : memref<8x512xf32, #tpu.memory_space<vmem>>, vector<8x256xf32>
    %214 = vector.broadcast %49 : vector<1x256xf32> to vector<8x256xf32>
    %215 = arith.mulf %213, %214 : vector<8x256xf32>
    %c0_116 = arith.constant 0 : index
    %c146_117 = arith.constant 146 : index
    %216 = vector.load %arg9[%c0_116, %c146_117] : memref<8x512xf32, #tpu.memory_space<vmem>>, vector<8x256xf32>
    %217 = vector.broadcast %60 : vector<1x256xf32> to vector<8x256xf32>
    %218 = arith.mulf %216, %217 : vector<8x256xf32>
    %c0_118 = arith.constant 0 : index
    %c158_119 = arith.constant 158 : index
    %219 = vector.load %arg9[%c0_118, %c158_119] : memref<8x512xf32, #tpu.memory_space<vmem>>, vector<8x256xf32>
    %220 = vector.broadcast %27 : vector<1x256xf32> to vector<8x256xf32>
    %221 = arith.mulf %219, %220 : vector<8x256xf32>
    %c0_120 = arith.constant 0 : index
    %c159_121 = arith.constant 159 : index
    %222 = vector.load %arg9[%c0_120, %c159_121] : memref<8x512xf32, #tpu.memory_space<vmem>>, vector<8x256xf32>
    %223 = vector.broadcast %38 : vector<1x256xf32> to vector<8x256xf32>
    %224 = arith.mulf %222, %223 : vector<8x256xf32>
    %c0_122 = arith.constant 0 : index
    %c160_123 = arith.constant 160 : index
    %225 = vector.load %arg9[%c0_122, %c160_123] : memref<8x512xf32, #tpu.memory_space<vmem>>, vector<8x256xf32>
    %c0_124 = arith.constant 0 : index
    %c161_125 = arith.constant 161 : index
    %226 = vector.load %arg9[%c0_124, %c161_125] : memref<8x512xf32, #tpu.memory_space<vmem>>, vector<8x256xf32>
    %227 = vector.broadcast %49 : vector<1x256xf32> to vector<8x256xf32>
    %228 = arith.mulf %226, %227 : vector<8x256xf32>
    %c0_126 = arith.constant 0 : index
    %c162_127 = arith.constant 162 : index
    %229 = vector.load %arg9[%c0_126, %c162_127] : memref<8x512xf32, #tpu.memory_space<vmem>>, vector<8x256xf32>
    %230 = vector.broadcast %60 : vector<1x256xf32> to vector<8x256xf32>
    %231 = arith.mulf %229, %230 : vector<8x256xf32>
    %cst_128 = arith.constant 0.000000e+00 : f32
    %232 = vector.broadcast %cst_128 : f32 to vector<56x256xf32>
    %233 = tpu.concatenate %169, %172, %173, %176, %179, %182, %185, %186, %189, %192, %195, %198, %199, %202, %205, %208 in 0 : vector<8x256xf32>, vector<8x256xf32>, vector<8x256xf32>, vector<8x256xf32>, vector<8x256xf32>, vector<8x256xf32>, vector<8x256xf32>, vector<8x256xf32>, vector<8x256xf32>, vector<8x256xf32>, vector<8x256xf32>, vector<8x256xf32>, vector<8x256xf32>, vector<8x256xf32>, vector<8x256xf32>, vector<8x256xf32> -> vector<128x256xf32>
    %234 = tpu.concatenate %211, %212, %215, %218, %221, %224, %225, %228, %231, %232 in 0 : vector<8x256xf32>, vector<8x256xf32>, vector<8x256xf32>, vector<8x256xf32>, vector<8x256xf32>, vector<8x256xf32>, vector<8x256xf32>, vector<8x256xf32>, vector<8x256xf32>, vector<56x256xf32> -> vector<128x256xf32>
    %235 = tpu.concatenate %233, %234 in 0 : vector<128x256xf32>, vector<128x256xf32> -> vector<256x256xf32>
    %c0_129 = arith.constant 0 : index
    %c0_130 = arith.constant 0 : index
    %236 = vector.load %arg4[%c0_129, %c0_130] : memref<8x256xf32, #tpu.memory_space<vmem>>, vector<8x256xf32>
    %cst_131 = arith.constant dense<0.000000e+00> : vector<8x256xf32>
    %237 = tpu.matmul %236, %235, %cst_131 {dimension_numbers = #tpu.dot_dimension_numbers<[1], [0], [0], [1], [0, 0, 1, 1], [], []>} : vector<8x256xf32>, vector<256x256xf32>, vector<8x256xf32> -> vector<8x256xf32>
    %c0_132 = arith.constant 0 : index
    %c0_133 = arith.constant 0 : index
    %238 = vector.load %arg5[%c0_132, %c0_133] : memref<8x1xf32, #tpu.memory_space<vmem>>, vector<8x1xf32>
    %239 = vector.broadcast %238 : vector<8x1xf32> to vector<8x256xf32>
    %240 = arith.addf %237, %239 : vector<8x256xf32>
    %cst_134 = arith.constant 0.000000e+00 : f32
    %241 = vector.broadcast %cst_134 : f32 to vector<8x256xf32>
    %242 = arith.maximumf %240, %241 : vector<8x256xf32>
    %c0_135 = arith.constant 0 : index
    %c0_136 = arith.constant 0 : index
    %c0_137 = arith.constant 0 : index
    %243 = vector.load %arg7[%c0_135, %c0_136, %c0_137] : memref<1x8x256xf32, #tpu.memory_space<vmem>>, vector<1x8x256xf32>
    %244 = vector.shape_cast %243 : vector<1x8x256xf32> to vector<8x256xf32>
    %245 = vector.shape_cast %242 : vector<8x256xf32> to vector<1x8x256xf32>
    tpu.vector_store %arg7[%c0_135, %c0_136, %c0_137], %245 {strides = array<i32>} : memref<1x8x256xf32, #tpu.memory_space<vmem>>, vector<1x8x256xf32>,
    %c0_138 = arith.constant 0 : index
    %c0_139 = arith.constant 0 : index
    %c0_140 = arith.constant 0 : index
    %246 = vector.load %arg6[%c0_138, %c0_139, %c0_140] : memref<4x256x64xf32, #tpu.memory_space<vmem>>, vector<1x256x64xf32>
    %247 = vector.shape_cast %246 : vector<1x256x64xf32> to vector<256x64xf32>
    %cst_141 = arith.constant dense<0.000000e+00> : vector<8x64xf32>
    %248 = tpu.matmul %242, %247, %cst_141 {dimension_numbers = #tpu.dot_dimension_numbers<[1], [0], [0], [1], [0, 0, 1, 1], [], []>} : vector<8x256xf32>, vector<256x64xf32>, vector<8x64xf32> -> vector<8x64xf32>
    %c1 = arith.constant 1 : index
    %c0_142 = arith.constant 0 : index
    %c0_143 = arith.constant 0 : index
    %249 = vector.load %arg6[%c1, %c0_142, %c0_143] : memref<4x256x64xf32, #tpu.memory_space<vmem>>, vector<1x256x64xf32>
    %250 = vector.shape_cast %249 : vector<1x256x64xf32> to vector<256x64xf32>
    %cst_144 = arith.constant dense<0.000000e+00> : vector<8x64xf32>
    %251 = tpu.matmul %242, %250, %cst_144 {dimension_numbers = #tpu.dot_dimension_numbers<[1], [0], [0], [1], [0, 0, 1, 1], [], []>} : vector<8x256xf32>, vector<256x64xf32>, vector<8x64xf32> -> vector<8x64xf32>
    %252 = arith.maximumf %248, %251 : vector<8x64xf32>
    %c2 = arith.constant 2 : index
    %c0_145 = arith.constant 0 : index
    %c0_146 = arith.constant 0 : index
    %253 = vector.load %arg6[%c2, %c0_145, %c0_146] : memref<4x256x64xf32, #tpu.memory_space<vmem>>, vector<1x256x64xf32>
    %254 = vector.shape_cast %253 : vector<1x256x64xf32> to vector<256x64xf32>
    %cst_147 = arith.constant dense<0.000000e+00> : vector<8x64xf32>
    %255 = tpu.matmul %242, %254, %cst_147 {dimension_numbers = #tpu.dot_dimension_numbers<[1], [0], [0], [1], [0, 0, 1, 1], [], []>} : vector<8x256xf32>, vector<256x64xf32>, vector<8x64xf32> -> vector<8x64xf32>
    %256 = arith.maximumf %252, %255 : vector<8x64xf32>
    %c3 = arith.constant 3 : index
    %c0_148 = arith.constant 0 : index
    %c0_149 = arith.constant 0 : index
    %257 = vector.load %arg6[%c3, %c0_148, %c0_149] : memref<4x256x64xf32, #tpu.memory_space<vmem>>, vector<1x256x64xf32>
    %258 = vector.shape_cast %257 : vector<1x256x64xf32> to vector<256x64xf32>
    %cst_150 = arith.constant dense<0.000000e+00> : vector<8x64xf32>
    %259 = tpu.matmul %242, %258, %cst_150 {dimension_numbers = #tpu.dot_dimension_numbers<[1], [0], [0], [1], [0, 0, 1, 1], [], []>} : vector<8x256xf32>, vector<256x64xf32>, vector<8x64xf32> -> vector<8x64xf32>
    %260 = arith.maximumf %256, %259 : vector<8x64xf32>
    %c0_151 = arith.constant 0 : index
    %c0_152 = arith.constant 0 : index
    %c0_153 = arith.constant 0 : index
    %261 = vector.load %arg8[%c0_151, %c0_152, %c0_153] : memref<1x8x64xf32, #tpu.memory_space<vmem>>, vector<1x8x64xf32>
    %262 = vector.shape_cast %261 : vector<1x8x64xf32> to vector<8x64xf32>
    %263 = vector.shape_cast %260 : vector<8x64xf32> to vector<1x8x64xf32>
    tpu.vector_store %arg8[%c0_151, %c0_152, %c0_153], %263 {strides = array<i32>} : memref<1x8x64xf32, #tpu.memory_space<vmem>>, vector<1x8x64xf32>,
    return
  }
  func.func @transform_0(%arg0: i32) -> (i32, i32, i32) {
    %c0_i32 = arith.constant 0 : i32
    %c0_i32_0 = arith.constant 0 : i32
    %c0_i32_1 = arith.constant 0 : i32
    return %arg0, %c0_i32, %c0_i32_0 : i32, i32, i32
  }
  func.func @transform_1(%arg0: i32) -> (i32, i32) {
    %c0_i32 = arith.constant 0 : i32
    %c0_i32_0 = arith.constant 0 : i32
    %c0_i32_1 = arith.constant 0 : i32
    return %c0_i32, %c0_i32_0 : i32, i32
  }
  func.func @transform_2(%arg0: i32) -> (i32, i32) {
    %c0_i32 = arith.constant 0 : i32
    %c0_i32_0 = arith.constant 0 : i32
    %c0_i32_1 = arith.constant 0 : i32
    return %c0_i32, %c0_i32_0 : i32, i32
  }
  func.func @transform_3(%arg0: i32) -> (i32, i32) {
    %c0_i32 = arith.constant 0 : i32
    %c0_i32_0 = arith.constant 0 : i32
    %c0_i32_1 = arith.constant 0 : i32
    return %c0_i32, %c0_i32_0 : i32, i32
  }
  func.func @transform_4(%arg0: i32) -> (i32, i32) {
    %c0_i32 = arith.constant 0 : i32
    %c0_i32_0 = arith.constant 0 : i32
    %c0_i32_1 = arith.constant 0 : i32
    return %c0_i32, %c0_i32_0 : i32, i32
  }
  func.func @transform_5(%arg0: i32) -> (i32, i32, i32) {
    %c0_i32 = arith.constant 0 : i32
    %c0_i32_0 = arith.constant 0 : i32
    %c0_i32_1 = arith.constant 0 : i32
    %c0_i32_2 = arith.constant 0 : i32
    return %c0_i32, %c0_i32_0, %c0_i32_1 : i32, i32, i32
  }
  func.func @transform_6(%arg0: i32) -> (i32, i32, i32) {
    %c0_i32 = arith.constant 0 : i32
    %c0_i32_0 = arith.constant 0 : i32
    %c0_i32_1 = arith.constant 0 : i32
    return %arg0, %c0_i32, %c0_i32_0 : i32, i32, i32
  }
  func.func @transform_7(%arg0: i32) -> (i32, i32, i32) {
    %c0_i32 = arith.constant 0 : i32
    %c0_i32_0 = arith.constant 0 : i32
    %c0_i32_1 = arith.constant 0 : i32
    return %arg0, %c0_i32, %c0_i32_0 : i32, i32, i32
  }
}

</mosaic_0001>

<bundles_post_ra>
// kernel: encoding_block_forward.1
= control target key start
LH: loop header
LB: loop body
LE: loop exit
PB: predicated region body
PF: predicated region fallthrough
CT: control target
= control target key end

     0   :  { %s3665_s24 = smov 0   ;;  %s5616_s0 = inlined_call_operand.vmem [shape: f32[2,4,512], index: 0, kind: input, shape index: {}]   ;;  %s5617_s1 = inlined_call_operand.vmem [shape: f32[8,128], index: 1, kind: input, shape index: {}]   ;;  %s5618_s2 = inlined_call_operand.vmem [shape: f32[8,1], index: 2, kind: input, shape index: {}]   ;;  %s5619_s3 = inlined_call_operand.vmem [shape: f32[8,256], index: 3, kind: input, shape index: {}]   ;;  %s5620_s4 = inlined_call_operand.vmem [shape: f32[8,1], index: 4, kind: input, shape index: {}]   ;;  %s5621_s5 = inlined_call_operand.vmem [shape: f32[4,256,64], index: 5, kind: input, shape index: {}]   ;;  %s5622_s6 = inlined_call_operand.vmem [shape: f32[2,8,256], index: 6, kind: output, shape index: {0}]   ;;  %s5623_s7 = inlined_call_operand.vmem [shape: f32[2,8,64], index: 7, kind: output, shape index: {1}]  }
   0x1 LB: > { %s2615_s25 = sadd.s32 4294967295, %s3591_s24   ;;  %p2619_p0 = scmp.ge.s32.totalorder %s3591_s24, 1  ;;  %s3591_s24 = sphi %s3665_s24, %s18_s24  }
   0x2   : > { %p240_p1 = scmp.lt.s32.totalorder %s3591_s24, 3 }
   0x4   : > { %p241_p2 = pnand %p2619_p0, %p240_p1 }
   0x6   : > { %244 = sbr.rel (%p241_p2) target bundleno = 1774 (0x6ee), region = 44 }
   0xb   : > { %v290_v0 = vlaneseq  ;;  %v5646_v13 = vmov 0.0   ;;  %vm370_vm4 = vcmask 1043456   ;;  %s3594_s26 = smov 94   ;;  %s3595_s27 = smov 110   ;;  %vm375_vm9 = vcmask 769024  }
   0xc   : > { %s3596_s28 = smov 97   ;;  %s3597_s29 = smov 95   ;;  %vm388_vm10 = vcmask 777216   ;;  %vm401_vm11 = vcmask 793600   ;;  %vm414_vm12 = vcmask 801792   ;;  %vm423_vm13 = vcmask 900096  }
   0xd   : > { %v291_v1 = vand.u32 127, %v290_v0  ;;  %s3598_s30 = smov 111   ;;  %s3599_s8 = smov 98   ;;  %vm432_vm14 = vcmask 908288   ;;  %vm5659_vm15 = vcmask 924672  }
   0xe   : > { %s5640_s9 = smov 113   ;;  %s3601_s10 = smov 114  }
   0xf   : > { %v292_v2 = vadd.s32 128, %v291_v1  ;;  %v297_v3 = vand.u32 15, %v291_v1  ;;  %p276_p3 = scmp.lt.s32.totalorder %s2615_s25, 1  ;;  %s5630_s12 = smov 1  }
  0x10   : > { %s5626_s16 = smov 15   ;;  %s5625_s17 = smov 30  }
  0x11   : > { %v304_v4 = vand.u32 15, %v292_v2  ;;  %v317_v5 = vadd.s32 4294967294, %v297_v3  ;;  %v341_v6 = vadd.s32 1, %v297_v3  ;;  %v353_v10 = vadd.s32 2, %v297_v3  ;;  %s5759_s25 = smov (!%p276_p3, %s2615_s25), 1  ;;  %s3605_s18 = smov 34  }
  0x12   : > { %v329_v11 = vadd.s32 4294967295, %v297_v3  ;;  %s5624_s11 = sshll.u32 %s5759_s25, 4  ;;  %s3606_s19 = smov 127  }
  0x13   : > { %v318_v7 = vadd.s32 4294967294, %v304_v4  ;;  %vm319_vm0 = vcmp.ge.s32.totalorder %v317_v5, 0  ;;  %v330_v8 = vadd.s32 4294967295, %v304_v4  ;;  %v342_v9 = vadd.s32 1, %v304_v4  ;;  %s3744_s15 = scalar_lea.vmem %s5616_s0, %s5624_s11  ;;  %s3607_s20 = smov 14  }
  0x14   : > { %vm345_vm1 = vcmp.lt.s32.totalorder %v341_v6, 16  ;;  %v354_v12 = vadd.s32 2, %v304_v4  ;;  %v3674_v14 = vsel %vm319_vm0, 1.0, %v5646_v13  ;;  %vm357_vm7 = vcmp.lt.s32.totalorder %v353_v10, 16  ;;  %v3750_v34 = vld [vmem:[%s3744_s15 + $0x8] sm:$0xf] }
  0x15   : > { %vm320_vm2 = vcmp.ge.s32.totalorder %v318_v7, 0  ;;  %vm332_vm3 = vcmp.ge.s32.totalorder %v330_v8, 0  ;;  %vm346_vm5 = vcmp.lt.s32.totalorder %v342_v9, 16  ;;  %v3681_v17 = vsel %vm345_vm1, 1.0, %v5646_v13  ;;  %v3753_v35 = vld [vmem:[%s3744_s15] sm:$0xff]  ;;  %s3608_s21 = smov 126  }
  0x16   : > { %v3677_v15 = vsel %vm320_vm2, 1.0, %v5646_v13  ;;  %v3684_v18 = vsel %vm346_vm5, 1.0, %v5646_v13  ;;  %vm358_vm6 = vcmp.lt.s32.totalorder %v354_v12, 16  ;;  %v3687_v19 = vsel %vm332_vm3, 1.0, %v5646_v13  ;;  %s3609_s22 = smov 18   ;;  %s3610_s23 = smov 2  }
  0x17   : > { %v369_v16 = vrot.slane %v3677_v15, 4  ;;  %v396_v20 = vrot.slane %v3684_v18, 4  ;;  %v3691_v21 = vsel %vm358_vm6, 1.0, %v5646_v13  ;;  %vm331_vm8 = vcmp.ge.s32.totalorder %v329_v11, 0  ;;  %s3611_s13 = smov 125   ;;  %s3612_s14 = smov 33  }
  0x18   : > { %v409_v24 = vrot.slane %v3691_v21, 4  ;;  %v383_v25 = vrot.slane %v3687_v19, 4  ;;  %v3709_v27 = vsel %vm357_vm7, 1.0, %v5646_v13  ;;  %v3712_v28 = vsel %vm331_vm8, 1.0, %v5646_v13  ;;  %s5629_s11 = smov 17  }
  0x19   : > { %v3695_v22 = vsel %vm370_vm4, %v3674_v14, %v369_v16  ;;  %v397_v23 = vsel %vm370_vm4, %v3681_v17, %v396_v20  ;;  %vm450_vm0 = vcmask 932864   ;;  %vm459_vm1 = vcmask 1031168  }
  0x1a   : > { %372 = vrot.lane.b32.xlu0 %v3695_v22, %s3594_s26  ;;  %420 = vrot.lane.b32.xlu2 %v3695_v22, %s3595_s27  ;;  %v3706_v26 = vpack.i.bf16 %v3681_v17, %v397_v23  ;;  %v410_v29 = vsel %vm370_vm4, %v3709_v27, %v409_v24  ;;  %v384_v30 = vsel %vm370_vm4, %v3712_v28, %v383_v25  ;;  %vm468_vm2 = vcmask 1039360  }
  0x1b   : > { %v3721_v31 = vpack.i.bf16 %v3709_v27, %v410_v29  ;;  %v3747_v32 = vpack.i.bf16 %v3712_v28, %v384_v30  ;;  %v2828_v40 = vpack.i.bf16 %v3674_v14, %v3695_v22  ;;  %vm5635_vm3 = vcmask 7168  }
  0x1c   : > { %2774 = vrot.lane.b32.xlu1 %v3706_v26, %s3596_s28  ;;  %vm5660_vm5 = vcmask 15360   ;;  %vm5637_vm6 = vcmask 113664   ;;  %vm5634_vm7 = vcmask 121856   ;;  %vm5636_vm8 = vcmask 138240  }
  0x22   : > { %385 = vrot.lane.b32.xlu0 %v384_v30, %s3597_s29  ;;  %429 = vrot.lane.b32.xlu2 %v384_v30, %s3598_s30 }
  0x24   : > { %2779 = vrot.lane.b32.xlu1 %v3721_v31, %s3599_s8 }
  0x2a   : > { %438 = vrot.lane.b32.xlu0 %v397_v23, %s5640_s9 }
  0x2c   : > { %2784 = vrot.lane.b32.xlu1 %v3721_v31, %s3601_s10 }
  0x34   : > { %2799 = vrot.lane.b32.xlu1 %v3706_v26, %s5630_s12  ;;  %s5631_s12 = smov 96  }
  0x3c   : > { %2814 = vrot.lane.b32.xlu1 %v3747_v32, %s5626_s16  ;;  %s5627_s16 = smov 31  }
  0x44   : > { %2829 = vrot.lane.b32.xlu1 %v2828_v40, %s5625_s17  ;;  %s5628_s17 = smov 124  }
  0x4c   : > { %558 = vrot.lane.b32.xlu1 %v410_v29, %s3605_s18 }
  0x74   : > { %v421_v2 = vpop.permute.xlu2 %420 }
  0x75   : > { %v422_v6 = vrot.slane %v421_v2, 4 }
  0x77   : > { %v424_v12 = vsel %vm423_vm13, %v422_v6, %v421_v2  ;;  %v428_v23 = vmul.f32 %v422_v6, %v3750_v34 }
  0x78   : > { %v427_v20 = vmul.f32 %v424_v12, %v3753_v35 }
  0x7c   : > { %v430_v16 = vpop.permute.xlu2 %429 }
  0x7d   : > { %v431_v24 = vrot.slane %v430_v16, 4 }
  0x8c   : > { %v373_v33 = vpop.permute.xlu0 %372 }
  0x8d   : > { %v374_v36 = vrot.slane %v373_v33, 4 }
  0x8e   : > { %v3762_v43 = vpop.permute.xlu1 %2774 }
  0x8f   : > { %v376_v37 = vsel %vm375_vm9, %v374_v36, %v373_v33  ;;  %v380_v38 = vmul.f32 %v374_v36, %v3750_v34  ;;  %v2776_v50 = vunpack.i.l.bf16 %v3762_v43 }
  0x90   : > { %v379_v39 = vmul.f32 %v376_v37, %v3753_v35  ;;  %v437_v37 = vmul.f32 %v431_v24, %v3750_v34 }
  0x91   : > { %571 = vst [vmem:[#allocation1 + $0x10] ss:$2 sm:$0xff] %v380_v38  ;;  %v400_v51 = vrot.slane %v2776_v50, 4 }
  0x92   : > { %569 = vst [vmem:[#allocation1] ss:$2 sm:$0xff] %v379_v39 }
  0x93   : > { %v402_v57 = vsel %vm401_vm11, %v400_v51, %v2776_v50  ;;  %v406_v60 = vmul.f32 %v400_v51, %v3750_v34 }
  0x94   : > { %v386_v41 = vpop.permute.xlu0 %385  ;;  %v405_v59 = vmul.f32 %v402_v57, %v3753_v35 }
  0x95   : > { %v387_v42 = vrot.slane %v386_v41, 4 }
  0x96   : > { %v3776_v52 = vpop.permute.xlu1 %2779 }
  0x97   : > { %v389_v44 = vsel %vm388_vm10, %v387_v42, %v386_v41  ;;  %v393_v45 = vmul.f32 %v387_v42, %v3750_v34  ;;  %v2781_v58 = vunpack.i.l.bf16 %v3776_v52  ;;  %v5645_v11 = vunpack.i.h.bf16 %v3776_v52 }
  0x98   : > { %v3767_v46 = vld.sshfl [vmem:[#allocation1 + $0x10] sm:$0xff pattern:$0x75316420]  ;;  %v392_v47 = vmul.f32 %v389_v44, %v3753_v35 }
  0x99   : > { %v3770_v48 = vld.sshfl [vmem:[#allocation1] sm:$0xff pattern:$0x75316420]  ;;  %v3772_v49 = vld.sshfl [vmem:[#allocation1 + $0x8] sm:$0xff pattern:$0x75316420] }
  0x9a   : > { %581 = vst [vmem:[#allocation1 + $0x1] ss:$2 sm:$0xff] %v392_v47  ;;  %v413_v61 = vrot.slane %v2781_v58, 4 }
  0x9b   : > { %583 = vst [vmem:[#allocation1 + $0x11] ss:$2 sm:$0xff] %v393_v45 }
  0x9c   : > { %v415_v3 = vsel %vm414_vm12, %v413_v61, %v2781_v58  ;;  %v419_v5 = vmul.f32 %v413_v61, %v3750_v34 }
  0x9d   : > { %v418_v4 = vmul.f32 %v415_v3, %v3753_v35 }
  0x9e   : > { %v3821_v45 = vpop.permute.xlu1 %2784 }
  0x9f   : > { %v2786_v57 = vunpack.i.l.bf16 %v3821_v45  ;;  %v5644_v12 = vunpack.i.h.bf16 %v3821_v45 }
  0xa1   : > { %v584_v53 = vld.sshfl [vmem:[#allocation1] sm:$0xff pattern:$0x75316420]  ;;  %v3778_v54 = vld.sshfl [vmem:[#allocation1 + $0x8] sm:$0xff pattern:$0x75316420] }
  0xa2   : > { %v3780_v55 = vld.sshfl [vmem:[#allocation1 + $0x10] sm:$0xff pattern:$0x75316420]  ;;  %600 = vst [vmem:[#allocation1] ss:$2 sm:$0xff] %v3753_v35  ;;  %v2793_v56 = vpack.i.bf16 %v584_v53, %v384_v30 }
  0xa3   : > { %602 = vst [vmem:[#allocation1 + $0x10] ss:$2 sm:$0xff] %v3750_v34  ;;  %v2843_v51 = vpack.i.bf16 %v3780_v55, %v3778_v54  ;;  %v449_v55 = vrot.slane %v2786_v57, 4 }
  0xa4   : > { %2794 = vrot.lane.b32.xlu0 %v2793_v56, %s3606_s19 }
  0xa5   : > { %v455_v2 = vmul.f32 %v449_v55, %v3750_v34 }
  0xa9   : > { %v603_v62 = vld.sshfl [vmem:[#allocation1] sm:$0xff pattern:$0x75316420]  ;;  %v604_v63 = vld.sshfl [vmem:[#allocation1 + $0x8] sm:$0xff pattern:$0x75316420] }
  0xaa   : > { %v605_v0 = vld.sshfl [vmem:[#allocation1 + $0x10] sm:$0xff pattern:$0x75316420]  ;;  %v2788_v1 = vpack.i.bf16 %v603_v62, %v3695_v22  ;;  %620 = vst [vmem:[#allocation1 + $0x1] ss:$2 sm:$0xff] %v405_v59  ;;  %v1390_v22 = vmul.f32 0.0, %v5645_v11 }
  0xab   : > { %622 = vst [vmem:[#allocation1 + $0x11] ss:$2 sm:$0xff] %v406_v60 }
  0xac   : > { %2809 = vrot.lane.b32.xlu0 %v2828_v40, %s3607_s20  ;;  %2789 = vrot.lane.b32.xlu2 %v2788_v1, %s3608_s21  ;;  %v2848_v40 = vpack.i.bf16 %v605_v0, %v604_v63  ;;  %v451_v0 = vsel %vm450_vm0, %v449_v55, %v2786_v57  ;;  %v3876_v55 = vld [vmem:[%s3744_s15 + $0x4] sm:$0xff] }
  0xad   : > { %v454_v1 = vmul.f32 %v451_v0, %v3753_v35 }
  0xb1   : > { %v623_v7 = vld.sshfl [vmem:[#allocation1] sm:$0xff pattern:$0x75316420]  ;;  %v624_v8 = vld.sshfl [vmem:[#allocation1 + $0x8] sm:$0xff pattern:$0x75316420] }
  0xb2   : > { %v3795_v9 = vld.sshfl [vmem:[#allocation1 + $0x10] sm:$0xff pattern:$0x75316420]  ;;  %640 = vst [vmem:[#allocation1] ss:$2 sm:$0xff] %v418_v4  ;;  %v2853_v10 = vpack.i.bf16 %v624_v8, %v623_v7 }
  0xb3   : > { %642 = vst [vmem:[#allocation1 + $0x10] ss:$2 sm:$0xff] %v419_v5 }
  0xb4   : > { %2824 = vrot.lane.b32.xlu0 %v3721_v31, %s3609_s22  ;;  %2804 = vrot.lane.b32.xlu2 %v3721_v31, %s3610_s23  ;;  %v433_v31 = vsel %vm432_vm14, %v431_v24, %v430_v16  ;;  %v1434_v16 = vmul.f32 0.0, %v5644_v12 }
  0xb5   : > { %2854 = vrot.lane.b32.xlu1 %v2853_v10, %s3611_s13  ;;  %v436_v36 = vmul.f32 %v433_v31, %v3753_v35 }
  0xb9   : > { %v643_v25 = vld.sshfl [vmem:[#allocation1] sm:$0xff pattern:$0x75316420]  ;;  %v644_v29 = vld.sshfl [vmem:[#allocation1 + $0x8] sm:$0xff pattern:$0x75316420] }
  0xba   : > { %v645_v30 = vld.sshfl [vmem:[#allocation1 + $0x10] sm:$0xff pattern:$0x75316420]  ;;  %661 = vst [vmem:[#allocation1 + $0x1] ss:$2 sm:$0xff] %v427_v20  ;;  %v2863_v44 = vpack.i.bf16 %v644_v29, %v643_v25 }
  0xbb   : > { %663 = vst [vmem:[#allocation1 + $0x11] ss:$2 sm:$0xff] %v428_v23  ;;  %v2858_v33 = vpack.i.bf16 %v1390_v22, %v645_v30 }
  0xbc   : > { %2839 = vrot.lane.b32.xlu0 %v3706_v26, %s3612_s14  ;;  %2819 = vrot.lane.b32.xlu2 %v3706_v26, %s5629_s11  ;;  %v439_v26 = vpop.permute.xlu0 %438  ;;  %s5633_s11 = smov 108  }
  0xbd   : > { %2859 = vrot.lane.b32.xlu1 %v2858_v33, %s5628_s17  ;;  %v440_v42 = vrot.slane %v439_v26, 4 }
  0xbf   : > { %v446_v54 = vmul.f32 %v440_v42, %v3750_v34 }
  0xc1   : > { %v664_v38 = vld.sshfl [vmem:[#allocation1] sm:$0xff pattern:$0x75316420]  ;;  %v665_v39 = vld.sshfl [vmem:[#allocation1 + $0x8] sm:$0xff pattern:$0x75316420] }
  0xc2   : > { %v3816_v41 = vld.sshfl [vmem:[#allocation1 + $0x10] sm:$0xff pattern:$0x75316420]  ;;  %681 = vst [vmem:[#allocation1] ss:$2 sm:$0xff] %v436_v36  ;;  %v2868_v59 = vpack.i.bf16 %v665_v39, %v664_v38 }
  0xc3   : > { %683 = vst [vmem:[#allocation1 + $0x10] ss:$2 sm:$0xff] %v437_v37 }
  0xc4   : > { %2849 = vrot.lane.b32.xlu0 %v2848_v40, %s3608_s21  ;;  %2834 = vrot.lane.b32.xlu2 %v3747_v32, %s5627_s16  ;;  %v442_v32 = vsel %vm5659_vm15, %v440_v42, %v439_v26  ;;  %s3616_s16 = smov 112   ;;  %v3861_v26 = vpop.permute.xlu1 %2799 }
  0xc5   : > { %v445_v58 = vmul.f32 %v442_v32, %v3753_v35  ;;  %5682 = vst [vmem:[#allocation3_spill] sm:$0xff] %v3861_v26  ;;  %v2801_v42 = vunpack.i.l.bf16 %v3861_v26  ;;  %v3869_v32 = vld [vmem:[%s3744_s15 + $0xc] sm:$0xf]  ;;  %s3620_s15 = smov 93  }
  0xc9   : > { %v684_v47 = vld.sshfl [vmem:[#allocation1] sm:$0xff pattern:$0x75316420]  ;;  %v685_v50 = vld.sshfl [vmem:[#allocation1 + $0x8] sm:$0xff pattern:$0x75316420] }
  0xca   : > { %v3825_v53 = vld.sshfl [vmem:[#allocation1 + $0x10] sm:$0xff pattern:$0x75316420]  ;;  %v2873_v56 = vpack.i.bf16 %v685_v50, %v684_v47  ;;  %699 = vst [vmem:[#allocation1 + $0x1] ss:$2 sm:$0xff] %v3753_v35 }
  0xcb   : > { %701 = vst [vmem:[#allocation1 + $0x11] ss:$2 sm:$0xff] %v3750_v34 }
  0xcc   : > { %2844 = vrot.lane.b32.xlu2 %v2843_v51, %s3606_s19  ;;  %2864 = vrot.lane.b32.xlu0 %v2863_v44, %s5628_s17  ;;  %s5642_s17 = smov 109  }
  0xcd   : > { %2874 = vrot.lane.b32.xlu1 %v2873_v56, %s3598_s30  ;;  %v479_v56 = vrot.slane %v2801_v42, 4 }
  0xd1   : > { %v702_v60 = vld.sshfl [vmem:[#allocation1] sm:$0xff pattern:$0x75316420]  ;;  %v703_v61 = vld.sshfl [vmem:[#allocation1 + $0x8] sm:$0xff pattern:$0x75316420] }
  0xd2   : > { %v3836_v62 = vld.sshfl [vmem:[#allocation1 + $0x10] sm:$0xff pattern:$0x75316420]  ;;  %718 = vst [vmem:[#allocation1] ss:$2 sm:$0xff] %v445_v58  ;;  %v2878_v63 = vpack.i.bf16 %v703_v61, %v702_v60 }
  0xd3   : > { %720 = vst [vmem:[#allocation1 + $0x10] ss:$2 sm:$0xff] %v446_v54  ;;  %v485_v54 = vmul.f32 %v479_v56, %v3869_v32 }
  0xd4   : > { %2869 = vrot.lane.b32.xlu2 %v2868_v59, %s3616_s16  ;;  %2879 = vrot.lane.b32.xlu0 %v2878_v63, %s3595_s27 }
  0xd9   : > { %v721_v3 = vld.sshfl [vmem:[#allocation1] sm:$0xff pattern:$0x75316420]  ;;  %v722_v4 = vld.sshfl [vmem:[#allocation1 + $0x8] sm:$0xff pattern:$0x75316420] }
  0xda   : > { %v3843_v5 = vld.sshfl [vmem:[#allocation1 + $0x10] sm:$0xff pattern:$0x75316420]  ;;  %739 = vst [vmem:[#allocation1 + $0x1] ss:$2 sm:$0xff] %v454_v1  ;;  %v2883_v6 = vpack.i.bf16 %v722_v4, %v721_v3  ;;  %v481_v3 = vsel %vm5635_vm3, %v479_v56, %v2801_v42  ;;  %vm5639_vm3 = vcmask 244736  }
  0xdb   : > { %741 = vst [vmem:[#allocation1 + $0x11] ss:$2 sm:$0xff] %v455_v2 }
  0xdc   : > { %2884 = vrot.lane.b32.xlu2 %v2883_v6, %s5642_s17  ;;  %v484_v6 = vmul.f32 %v481_v3, %v3876_v55 }
  0xe1   : > { %v742_v7 = vld.sshfl [vmem:[#allocation1] sm:$0xff pattern:$0x75316420]  ;;  %v743_v8 = vld.sshfl [vmem:[#allocation1 + $0x8] sm:$0xff pattern:$0x75316420] }
  0xe2   : > { %v2893_v10 = vpack.i.bf16 %v743_v8, %v742_v7  ;;  %v744_v20 = vld.sshfl [vmem:[#allocation1 + $0x10] sm:$0xff pattern:$0x75316420] }
  0xe3   : > { %v2888_v22 = vpack.i.bf16 %v1434_v16, %v744_v20  ;;  %v3889_v20 = vpop.permute.xlu1 %2814 }
  0xe4   : > { %2894 = vrot.lane.b32.xlu1 %v2893_v10, %s5633_s11  ;;  %5684 = vst [vmem:[#allocation5_spill] sm:$0xff] %v3889_v20 }
  0xe5   : > { %2889 = vrot.lane.b32.xlu2 %v2888_v22, %s5633_s11  ;;  %v2816_v22 = vunpack.i.l.bf16 %v3889_v20  ;;  %s3622_s11 = smov 80  }
 0x106   : > { %v3851_v23 = vpop.permute.xlu2 %2789 }
 0x107   : > { %v2791_v24 = vunpack.i.l.bf16 %v3851_v23 }
 0x109   : > { %v458_v25 = vrot.slane %v2791_v24, 4 }
 0x10b   : > { %v460_v29 = vsel %vm459_vm1, %v458_v25, %v2791_v24  ;;  %v464_v30 = vmul.f32 %v458_v25, %v3750_v34 }
 0x10c   : > { %v463_v31 = vmul.f32 %v460_v29, %v3753_v35 }
 0x10d   : > { %761 = vst [vmem:[#allocation1 + $0x10] ss:$2 sm:$0xff] %v464_v30 }
 0x10e   : > { %759 = vst [vmem:[#allocation1] ss:$2 sm:$0xff] %v463_v31  ;;  %v3871_v57 = vpop.permute.xlu2 %2804  ;;  %v506_v31 = vrot.slane %v2816_v22, 4 }
 0x10f   : > { %v2806_v58 = vunpack.i.l.bf16 %v3871_v57 }
 0x111   : > { %v488_v60 = vrot.slane %v2806_v58, 4 }
 0x113   : > { %v494_v1 = vmul.f32 %v488_v60, %v3869_v32  ;;  %v490_v25 = vsel %vm5660_vm5, %v488_v60, %v2806_v58  ;;  %v508_v58 = vsel %vm5634_vm7, %v506_v31, %v2816_v22  ;;  %vm5663_vm7 = vcmask 146432  }
 0x114   : > { %v764_v33 = vld.sshfl [vmem:[#allocation1 + $0x10] sm:$0xff pattern:$0x75316420]  ;;  %v493_v30 = vmul.f32 %v490_v25, %v3876_v55  ;;  %vm5676_vm5 = vcmask 760832  }
 0x115   : > { %769 = vrot.lane.b32.xlu1 %v764_v33, %s5631_s12  ;;  %v762_v36 = vld.sshfl [vmem:[#allocation1] sm:$0xff pattern:$0x75316420]  ;;  %v763_v37 = vld.sshfl [vmem:[#allocation1 + $0x8] sm:$0xff pattern:$0x75316420] }
 0x116   : > { %v3858_v38 = vpop.permute.xlu0 %2794  ;;  %v2898_v39 = vpack.i.bf16 %v763_v37, %v762_v36  ;;  %v512_v37 = vmul.f32 %v506_v31, %v3869_v32 }
 0x117   : > { %v2796_v40 = vunpack.i.l.bf16 %v3858_v38 }
 0x118   : > { %2899 = vrot.lane.b32.xlu0 %v2898_v39, %s5631_s12  ;;  %s3621_s12 = smov 92  }
 0x119   : > { %v467_v44 = vrot.slane %v2796_v40, 4 }
 0x11b   : > { %v469_v47 = vsel %vm468_vm2, %v467_v44, %v2796_v40  ;;  %v473_v50 = vmul.f32 %v467_v44, %v3750_v34 }
 0x11c   : > { %v472_v51 = vmul.f32 %v469_v47, %v3753_v35 }
 0x11d   : > { %782 = vst [vmem:[#allocation1 + $0x11] ss:$2 sm:$0xff] %v473_v50 }
 0x11e   : > { %780 = vst [vmem:[#allocation1 + $0x1] ss:$2 sm:$0xff] %v472_v51  ;;  %v3881_v63 = vpop.permute.xlu0 %2809  ;;  %v3902_v51 = vpop.permute.xlu2 %2819 }
 0x11f   : > { %5683 = vst [vmem:[#allocation4_spill] sm:$0xff] %v3881_v63  ;;  %v2811_v2 = vunpack.i.l.bf16 %v3881_v63  ;;  %v2821_v56 = vunpack.i.l.bf16 %v3902_v51 }
 0x120   : > { %5685 = vst [vmem:[#allocation6_spill] sm:$0xff] %v3902_v51 }
 0x121   : > { %v497_v7 = vrot.slane %v2811_v2, 4  ;;  %v515_v60 = vrot.slane %v2821_v56, 4 }
 0x123   : > { %v503_v24 = vmul.f32 %v497_v7, %v3869_v32  ;;  %v499_v39 = vsel %vm5637_vm6, %v497_v7, %v2811_v2  ;;  %v521_v2 = vmul.f32 %v515_v60, %v3869_v32  ;;  %v517_v25 = vsel %vm5636_vm8, %v515_v60, %v2821_v56 }
 0x124   : > { %v785_v59 = vld.sshfl [vmem:[#allocation1 + $0x10] sm:$0xff pattern:$0x75316420]  ;;  %v502_v44 = vmul.f32 %v499_v39, %v3876_v55  ;;  %vm5638_vm8 = vcmask 252928   ;;  %vm5649_vm6 = vcmask 269312  }
 0x125   : > { %v2903_v61 = vpack.i.bf16 %v3712_v28, %v785_v59  ;;  %814 = vst [vmem:[#allocation1 + $0x11] ss:$2 sm:$0xff] %v485_v54  ;;  %v783_v34 = vld.sshfl [vmem:[#allocation1] sm:$0xff pattern:$0x75316420] }
 0x126   : > { %v784_v35 = vld.sshfl [vmem:[#allocation1 + $0x8] sm:$0xff pattern:$0x75316420]  ;;  %v3931_v39 = vpop.permute.xlu2 %2834 }
 0x127   : > { %2904 = vrot.lane.b32.xlu0 %v2903_v61, %s3597_s29  ;;  %798 = vst [vmem:[#allocation1] ss:$2 sm:$0xff] %v3876_v55  ;;  %v2908_v0 = vpack.i.bf16 %v784_v35, %v783_v34  ;;  %v511_v61 = vmul.f32 %v508_v58, %v3876_v55 }
 0x129   : > { %2909 = vrot.lane.b32.xlu2 %v2908_v0, %s3597_s29 }
 0x12c   : > { %v817_v4 = vld.sshfl [vmem:[#allocation1 + $0x10] sm:$0xff pattern:$0x75316420] }
 0x12d   : > { %834 = vst [vmem:[#allocation1 + $0x10] ss:$2 sm:$0xff] %v494_v1  ;;  %v3911_v1 = vpop.permute.xlu0 %2824 }
 0x12e   : > { %v799_v8 = vld.sshfl [vmem:[#allocation1] sm:$0xff pattern:$0x75316420]  ;;  %v800_v10 = vld.sshfl [vmem:[#allocation1 + $0x8] sm:$0xff pattern:$0x75316420]  ;;  %v2826_v3 = vunpack.i.l.bf16 %v3911_v1 }
 0x12f   : > { %822 = vrot.lane.b32.xlu0 %v817_v4, %s3620_s15  ;;  %v2913_v16 = vpack.i.bf16 %v800_v10, %v799_v8  ;;  %812 = vst [vmem:[#allocation1 + $0x1] ss:$2 sm:$0xff] %v484_v6 }
 0x130   : > { %v524_v6 = vrot.slane %v2826_v3, 4 }
 0x131   : > { %2914 = vrot.lane.b32.xlu1 %v2913_v16, %s3594_s26  ;;  %v3922_v16 = vpop.permute.xlu1 %2829 }
 0x132   : > { %v2831_v22 = vunpack.i.l.bf16 %v3922_v16 }
 0x134   : > { %v837_v29 = vld.sshfl [vmem:[#allocation1 + $0x10] sm:$0xff pattern:$0x75316420]  ;;  %v533_v31 = vrot.slane %v2831_v22, 4 }
 0x135   : > { %842 = vrot.lane.b32.xlu2 %v837_v29, %s3621_s12  ;;  %855 = vst [vmem:[#allocation1 + $0x11] ss:$2 sm:$0xff] %v503_v24  ;;  %v530_v24 = vmul.f32 %v524_v6, %v3869_v32 }
 0x136   : > { %v815_v33 = vld.sshfl [vmem:[#allocation1] sm:$0xff pattern:$0x75316420]  ;;  %v816_v36 = vld.sshfl [vmem:[#allocation1 + $0x8] sm:$0xff pattern:$0x75316420] }
 0x137   : > { %832 = vst [vmem:[#allocation1] ss:$2 sm:$0xff] %v493_v30  ;;  %v2918_v40 = vpack.i.bf16 %v816_v36, %v815_v33  ;;  %v520_v30 = vmul.f32 %v517_v25, %v3876_v55 }
 0x13c   : > { %v858_v42 = vld.sshfl [vmem:[#allocation1 + $0x10] sm:$0xff pattern:$0x75316420] }
 0x13d   : > { %863 = vrot.lane.b32.xlu1 %v858_v42, %s3622_s11  ;;  %899 = vst [vmem:[#allocation1 + $0x10] ss:$2 sm:$0xff] %v512_v37  ;;  %2919 = vrot.lane.b32.xlu2 %v2918_v40, %s3620_s15  ;;  %v2836_v40 = vunpack.i.l.bf16 %v3931_v39  ;;  %v539_v42 = vmul.f32 %v533_v31, %v3869_v32 }
 0x13e   : > { %v835_v47 = vld.sshfl [vmem:[#allocation1] sm:$0xff pattern:$0x75316420]  ;;  %v836_v50 = vld.sshfl [vmem:[#allocation1 + $0x8] sm:$0xff pattern:$0x75316420] }
 0x13f   : > { %853 = vst [vmem:[#allocation1 + $0x1] ss:$2 sm:$0xff] %v502_v44  ;;  %v2923_v54 = vpack.i.bf16 %v836_v50, %v835_v47  ;;  %v526_v44 = vsel %vm5663_vm7, %v524_v6, %v2826_v3  ;;  %v542_v50 = vrot.slane %v2836_v40, 4  ;;  %vm5674_vm7 = vcmask 891904  }
 0x140   : > { %v529_v56 = vmul.f32 %v526_v44, %v3876_v55  ;;  %v559_v44 = vpop.permute.xlu1 %558 }
 0x144   : > { %v3906_v59 = vld.sshfl [vmem:[#allocation1 + $0x10] sm:$0xff pattern:$0x75316420] }
 0x145   : > { %2924 = vrot.lane.b32.xlu1 %v2923_v54, %s3621_s12  ;;  %911 = vst [vmem:[#allocation1 + $0x11] ss:$2 sm:$0xff] %v3869_v32 }
 0x146   : > { %v856_v34 = vld.sshfl [vmem:[#allocation1] sm:$0xff pattern:$0x75316420]  ;;  %v857_v35 = vld.sshfl [vmem:[#allocation1 + $0x8] sm:$0xff pattern:$0x75316420] }
 0x147   : > { %v2928_v0 = vpack.i.bf16 %v857_v35, %v856_v34  ;;  %897 = vst [vmem:[#allocation1] ss:$2 sm:$0xff] %v511_v61  ;;  %v548_v34 = vmul.f32 %v542_v50, %v3869_v32  ;;  %v535_v35 = vsel %vm5639_vm3, %v533_v31, %v2831_v22  ;;  %v544_v22 = vsel %vm5638_vm8, %v542_v50, %v2836_v40 }
 0x148   : > { %vm561_vm8 = vcmask 277504   ;;  %vm5672_vm3 = vcmask 1022976  }
 0x149   : > { %2929 = vrot.lane.b32.xlu0 %v2928_v0, %s3622_s11 }
 0x14c   : > { %v914_v4 = vld.sshfl [vmem:[#allocation1 + $0x10] sm:$0xff pattern:$0x75316420] }
 0x14d   : > { %v2933_v7 = vpack.i.bf16 %v3712_v28, %v914_v4  ;;  %930 = vst [vmem:[#allocation1 + $0x10] ss:$2 sm:$0xff] %v521_v2  ;;  %v538_v2 = vmul.f32 %v535_v35, %v3876_v55 }
 0x14e   : > { %v3917_v8 = vld.sshfl [vmem:[#allocation1] sm:$0xff pattern:$0x75316420]  ;;  %v3919_v10 = vld.sshfl [vmem:[#allocation1 + $0x8] sm:$0xff pattern:$0x75316420] }
 0x14f   : > { %909 = vst [vmem:[#allocation1 + $0x1] ss:$2 sm:$0xff] %v3876_v55 }
 0x151   : > { %2934 = vrot.lane.b32.xlu0 %v2933_v7, %s3606_s19 }
 0x154   : > { %v933_v29 = vld.sshfl [vmem:[#allocation1 + $0x10] sm:$0xff pattern:$0x75316420] }
 0x155   : > { %v2938_v33 = vpack.i.bf16 %v3674_v14, %v933_v29  ;;  %950 = vst [vmem:[#allocation1 + $0x11] ss:$2 sm:$0xff] %v530_v24  ;;  %v3944_v24 = vpop.permute.xlu0 %2839 }
 0x156   : > { %v912_v36 = vld.sshfl [vmem:[#allocation1] sm:$0xff pattern:$0x75316420]  ;;  %v913_v37 = vld.sshfl [vmem:[#allocation1 + $0x8] sm:$0xff pattern:$0x75316420]  ;;  %v2841_v25 = vunpack.i.l.bf16 %v3944_v24 }
 0x157   : > { %2939 = vrot.lane.b32.xlu2 %v2938_v33, %s3608_s21  ;;  %928 = vst [vmem:[#allocation1] ss:$2 sm:$0xff] %v520_v30  ;;  %v2943_v58 = vpack.i.bf16 %v913_v37, %v912_v36  ;;  %v547_v30 = vmul.f32 %v544_v22, %v3876_v55 }
 0x15c   : > { %v953_v47 = vld.sshfl [vmem:[#allocation1 + $0x10] sm:$0xff pattern:$0x75316420] }
 0x15d   : > { %969 = vst [vmem:[#allocation1 + $0x10] ss:$2 sm:$0xff] %v539_v42 }
 0x15e   : > { %v931_v54 = vld.sshfl [vmem:[#allocation1] sm:$0xff pattern:$0x75316420]  ;;  %v932_v60 = vld.sshfl [vmem:[#allocation1 + $0x8] sm:$0xff pattern:$0x75316420] }
 0x15f   : > { %2944 = vrot.lane.b32.xlu2 %v2943_v58, %s3606_s19  ;;  %v2948_v61 = vpack.i.bf16 %v932_v60, %v931_v54  ;;  %948 = vst [vmem:[#allocation1 + $0x1] ss:$2 sm:$0xff] %v529_v56  ;;  %v2845_v58 = vpop.permute.xlu2 %2844 }
 0x160   : > { %v2846_v22 = vunpack.i.l.bf16 %v2845_v58 }
 0x161   : > { %2949 = vrot.lane.b32.xlu1 %v2948_v61, %s3608_s21 }
 0x164   : > { %v972_v0 = vld.sshfl [vmem:[#allocation1 + $0x10] sm:$0xff pattern:$0x75316420] }
 0x165   : > { %v2953_v3 = vpack.i.bf16 %v3681_v17, %v972_v0  ;;  %989 = vst [vmem:[#allocation1 + $0x11] ss:$2 sm:$0xff] %v548_v34  ;;  %v551_v17 = vrot.slane %v2841_v25, 4 }
 0x166   : > { %v952_v4 = vld.sshfl [vmem:[#allocation1 + $0x8] sm:$0xff pattern:$0x75316420]  ;;  %v951_v6 = vld.sshfl [vmem:[#allocation1] sm:$0xff pattern:$0x75316420] }
 0x167   : > { %2954 = vrot.lane.b32.xlu2 %v2953_v3, %s5640_s9  ;;  %v2963_v7 = vpack.i.bf16 %v953_v47, %v952_v4  ;;  %967 = vst [vmem:[#allocation1] ss:$2 sm:$0xff] %v538_v2  ;;  %v2958_v31 = vpack.i.bf16 %v951_v6, %v3795_v9  ;;  %v557_v42 = vmul.f32 %v551_v17, %v3869_v32  ;;  %v560_v47 = vrot.slane %v559_v44, 4  ;;  %v3961_v2 = vpop.permute.xlu2 %2869  ;;  %v3968_v6 = vpop.permute.xlu0 %2849 }
 0x168   : > { %v553_v60 = vsel %vm5649_vm6, %v551_v17, %v2841_v25  ;;  %v2847_v25 = vunpack.i.h.bf16 %v2845_v58  ;;  %vm673_vm6 = vcmask 916480  }
 0x169   : > { %2964 = vrot.lane.b32.xlu0 %v2963_v7, %s3611_s13  ;;  %v566_v54 = vmul.f32 %v560_v47, %v3869_v32  ;;  %v556_v34 = vmul.f32 %v553_v60, %v3876_v55  ;;  %v3970_v7 = vpop.permute.xlu1 %2854 }
 0x16a   : > { %v2856_v17 = vunpack.i.l.bf16 %v3970_v7 }
 0x16c   : > { %v992_v29 = vld.sshfl [vmem:[#allocation1 + $0x10] sm:$0xff pattern:$0x75316420] }
 0x16d   : > { %1006 = vst [vmem:[#allocation1 + $0x10] ss:$2 sm:$0xff] %v3869_v32  ;;  %v562_v32 = vsel %vm561_vm8, %v560_v47, %v559_v44  ;;  %v594_v47 = vsel %vm468_vm2, %v2846_v22, %v2847_v25 }
 0x16e   : > { %v970_v33 = vld.sshfl [vmem:[#allocation1] sm:$0xff pattern:$0x75316420]  ;;  %v971_v36 = vld.sshfl [vmem:[#allocation1 + $0x8] sm:$0xff pattern:$0x75316420] }
 0x16f   : > { %2959 = vrot.lane.b32.xlu2 %v2958_v31, %s3611_s13  ;;  %v2968_v37 = vpack.i.bf16 %v971_v36, %v970_v33  ;;  %987 = vst [vmem:[#allocation1 + $0x1] ss:$2 sm:$0xff] %v547_v30  ;;  %v5648_v30 = vunpack.i.l.bf16 %v3968_v6  ;;  %v2797_v36 = vunpack.i.h.bf16 %v3858_v38 }
 0x171   : > { %2969 = vrot.lane.b32.xlu1 %v2968_v37, %s5640_s9  ;;  %v3977_v37 = vpop.permute.xlu2 %2884  ;;  %s3624_s9 = smov 79  }
 0x174   : > { %v1009_v40 = vld.sshfl [vmem:[#allocation1 + $0x10] sm:$0xff pattern:$0x75316420] }
 0x175   : > { %1026 = vst [vmem:[#allocation1 + $0x11] ss:$2 sm:$0xff] %v557_v42 }
 0x176   : > { %v990_v50 = vld.sshfl [vmem:[#allocation1] sm:$0xff pattern:$0x75316420]  ;;  %v991_v56 = vld.sshfl [vmem:[#allocation1 + $0x8] sm:$0xff pattern:$0x75316420] }
 0x177   : > { %v2973_v9 = vpack.i.bf16 %v990_v50, %v3816_v41  ;;  %1004 = vst [vmem:[#allocation1] ss:$2 sm:$0xff] %v3876_v55  ;;  %v2978_v3 = vpack.i.bf16 %v992_v29, %v991_v56  ;;  %v565_v29 = vmul.f32 %v562_v32, %v3876_v55  ;;  %v593_v55 = vsel %vm468_vm2, %v2797_v36, %v2846_v22  ;;  %v1135_v36 = vld [vmem:[%s5618_s2] sm:$0xff] }
 0x178   : > { %v871_v50 = vsel %vm370_vm4, %v3770_v48, %v593_v55 }
 0x179   : > { %2974 = vrot.lane.b32.xlu0 %v2973_v9, %s3616_s16  ;;  %v873_v9 = vsel %vm370_vm4, %v3767_v46, %v2847_v25 }
 0x17c   : > { %v1029_v61 = vld.sshfl [vmem:[#allocation1 + $0x10] sm:$0xff pattern:$0x75316420] }
 0x17d   : > { %1045 = vst [vmem:[#allocation1 + $0x10] ss:$2 sm:$0xff] %v566_v54 }
 0x17e   : > { %v1008_v35 = vld.sshfl [vmem:[#allocation1 + $0x8] sm:$0xff pattern:$0x75316420]  ;;  %v1007_v0 = vld.sshfl [vmem:[#allocation1] sm:$0xff pattern:$0x75316420] }
 0x17f   : > { %v2988_v4 = vpack.i.bf16 %v1009_v40, %v1008_v35  ;;  %v2983_v41 = vpack.i.bf16 %v1007_v0, %v3825_v53  ;;  %1024 = vst [vmem:[#allocation1 + $0x1] ss:$2 sm:$0xff] %v556_v34  ;;  %v5650_v53 = vunpack.i.h.bf16 %v3970_v7  ;;  %v2792_v40 = vunpack.i.h.bf16 %v3851_v23  ;;  %v3999_v34 = vpop.permute.xlu0 %2864  ;;  %v4001_v35 = vpop.permute.xlu2 %2889 }
 0x180   : > { %v872_v23 = vsel %vm370_vm4, %v3772_v49, %v594_v47 }
 0x181   : > { %2979 = vrot.lane.b32.xlu0 %v2978_v3, %s3616_s16  ;;  %2989 = vrot.lane.b32.xlu1 %v2988_v4, %s3598_s30  ;;  %v612_v38 = vsel %vm459_vm1, %v2792_v40, %v5648_v30  ;;  %v3014_v54 = vpack.i.bf16 %v872_v23, %v871_v50  ;;  %v4006_v3 = vpop.permute.xlu1 %2859 }
 0x182   : > { %2984 = vrot.lane.b32.xlu2 %v2983_v41, %s3598_s30 }
 0x184   : > { %v1048_v49 = vld.sshfl [vmem:[#allocation1 + $0x10] sm:$0xff pattern:$0x75316420] }
 0x186   : > { %v1028_v31 = vld.sshfl [vmem:[#allocation1 + $0x8] sm:$0xff pattern:$0x75316420]  ;;  %v1027_v33 = vld.sshfl [vmem:[#allocation1] sm:$0xff pattern:$0x75316420] }
 0x187   : > { %v2998_v42 = vpack.i.bf16 %v1029_v61, %v1028_v31  ;;  %v2993_v44 = vpack.i.bf16 %v1027_v33, %v3836_v62  ;;  %1043 = vst [vmem:[#allocation1] ss:$2 sm:$0xff] %v565_v29  ;;  %v633_v62 = vsel %vm5672_vm3, %v2856_v17, %v5650_v53  ;;  %v4008_v46 = vpop.permute.xlu0 %2879  ;;  %v4010_v4 = vpop.permute.xlu2 %2909 }
 0x188   : > { %v874_v56 = vsel %vm370_vm4, %v612_v38, %v633_v62 }
 0x189   : > { %2994 = vrot.lane.b32.xlu1 %v2993_v44, %s3595_s27  ;;  %v3019_v61 = vpack.i.bf16 %v874_v56, %v873_v9  ;;  %v4017_v32 = vpop.permute.xlu1 %2874 }
 0x18a   : > { %2999 = vrot.lane.b32.xlu2 %v2998_v42, %s3595_s27  ;;  %v3623_v42 = vmov 0  }
 0x18b   : > { %3013 = vset.pattern.permute.xlu0 %v3623_v42  ;;  %3584 = vset.pattern.permute.xlu2 %v3623_v42 }
 0x18e   : > { %v1046_v58 = vld.sshfl [vmem:[#allocation1] sm:$0xff pattern:$0x75316420]  ;;  %v1047_v48 = vld.sshfl [vmem:[#allocation1 + $0x8] sm:$0xff pattern:$0x75316420] }
 0x18f   : > { %v3003_v60 = vpack.i.bf16 %v1046_v58, %v3843_v5  ;;  %v3008_v0 = vpack.i.bf16 %v1048_v49, %v1047_v48  ;;  %v4013_v5 = vpop.permute.xlu0 %2899  ;;  %v4015_v41 = vpop.permute.xlu2 %842 }
 0x191   : > { %3015 = vrot.lane.b32.xlu1 %v3014_v54, %s3605_s18  ;;  %3004 = vrot.lane.b32.xlu0 %v3003_v60, %s5642_s17  ;;  %v4023_v29 = vpop.permute.xlu1 %2894 }
 0x192   : > { %3020 = vrot.lane.b32.xlu2 %v3019_v61, %s3605_s18 }
 0x197   : > { %v4021_v22 = vpop.permute.xlu2 %2919 }
 0x199   : > { %3009 = vrot.lane.b32.xlu0 %v3008_v0, %s5642_s17  ;;  %v4019_v25 = vpop.permute.xlu0 %2904  ;;  %v4029_v33 = vpop.permute.xlu1 %769  ;;  %s5709_s17 = smov 15  }
 0x1a1   : > { %v4025_v17 = vpop.permute.xlu0 %822  ;;  %1138 = vperm.xlu0 %3013, %v1135_v36  }
 0x1a3   : > { %v4036_v40 = vpop.permute.xlu1 %2914 }
 0x1af   : > { %v4040_v50 = vpop.permute.xlu1 %863 }
 0x1b1   : > { %v4027_v31 = vpop.permute.xlu2 %2939 }
 0x1b2   : > { %5686 = vst [vmem:[#allocation7_spill] sm:$0xff] %v4027_v31 }
 0x1b7   : > { %v4050_v61 = vpop.permute.xlu1 %2924 }
 0x1b9   : > { %v2945_v55 = vpop.permute.xlu2 %2944 }
 0x1ba   : > { %v2947_v47 = vunpack.i.h.bf16 %v2945_v55  ;;  %v2946_v38 = vunpack.i.l.bf16 %v2945_v55 }
 0x1bb   : > { %v4034_v44 = vpop.permute.xlu0 %2929 }
 0x1bc   : > { %v921_v56 = vsel %vm468_vm2, %v2946_v38, %v2947_v47 }
 0x1bd   : > { %v1060_v9 = vsel %vm370_vm4, %v3917_v8, %v921_v56 }
 0x1c1   : > { %v4052_v48 = vpop.permute.xlu2 %2954 }
 0x1c3   : > { %v4038_v62 = vpop.permute.xlu0 %2934 }
 0x1c4   : > { %v2936_v23 = vunpack.i.l.bf16 %v4038_v62 }
 0x1c6   : > { %v922_v58 = vsel %vm468_vm2, %v2947_v47, %v2936_v23  ;;  %v2941_v47 = vunpack.i.l.bf16 %v4027_v31 }
 0x1c7   : > { %v1061_v54 = vsel %vm370_vm4, %v3919_v10, %v922_v58 }
 0x1c8   : > { %v3024_v60 = vpack.i.bf16 %v1061_v54, %v1060_v9 }
 0x1c9   : > { %v4054_v0 = vpop.permute.xlu2 %2959 }
 0x1ca   : > { %3025 = vrot.lane.b32.xlu1 %v3024_v60, %s3624_s9  ;;  %v2962_v8 = vunpack.i.h.bf16 %v4054_v0 }
 0x1d3   : > { %v2950_v49 = vpop.permute.xlu1 %2949 }
 0x1d4   : > { %v2952_v36 = vunpack.i.h.bf16 %v2950_v49  ;;  %v2951_v42 = vunpack.i.l.bf16 %v2950_v49  ;;  %v1062_v49 = vsel %vm370_vm4, %v3906_v59, %v2936_v23 }
 0x1d6   : > { %v940_v56 = vsel %vm459_vm1, %v2951_v42, %v2952_v36  ;;  %v941_v54 = vsel %vm459_vm1, %v2952_v36, %v2941_v47 }
 0x1db   : > { %v2965_v55 = vpop.permute.xlu0 %2964 }
 0x1dc   : > { %v2967_v38 = vunpack.i.h.bf16 %v2965_v55  ;;  %v2966_v10 = vunpack.i.l.bf16 %v2965_v55  ;;  %v4069_v42 = vpop.permute.xlu2 %2984 }
 0x1de   : > { %v960_v58 = vsel %vm5672_vm3, %v2962_v8, %v2966_v10  ;;  %v961_v9 = vsel %vm5672_vm3, %v2966_v10, %v2967_v38  ;;  %v1065_v60 = vsel %vm370_vm4, %v2941_v47, %v2967_v38 }
 0x1df   : > { %v1063_v12 = vsel %vm370_vm4, %v940_v56, %v960_v58  ;;  %v1064_v11 = vsel %vm370_vm4, %v941_v54, %v961_v9 }
 0x1e0   : > { %v3029_v13 = vpack.i.bf16 %v1063_v12, %v1062_v49  ;;  %v3034_v30 = vpack.i.bf16 %v1065_v60, %v1064_v11  ;;  %v5655_v12 = vunpack.i.l.bf16 %v4052_v48  ;;  %v2876_v60 = vunpack.i.l.bf16 %v4017_v32 }
 0x1e2   : > { %3030 = vrot.lane.b32.xlu2 %v3029_v13, %s3624_s9  ;;  %3035 = vrot.lane.b32.xlu0 %v3034_v30, %s3624_s9 }
 0x1e3   : > { %v2970_v55 = vpop.permute.xlu1 %2969 }
 0x1e4   : > { %v4073_v36 = vpop.permute.xlu2 %2999  ;;  %v2972_v47 = vunpack.i.h.bf16 %v2970_v55  ;;  %v2971_v38 = vunpack.i.l.bf16 %v2970_v55 }
 0x1e5   : > { %v3002_v59 = vunpack.i.h.bf16 %v4073_v36  ;;  %v5656_v23 = vunpack.i.l.bf16 %v4073_v36 }
 0x1e6   : > { %v980_v49 = vsel %vm5659_vm15, %v2972_v47, %v5655_v12  ;;  %v979_v55 = vsel %vm5659_vm15, %v2971_v38, %v2972_v47  ;;  %vm5675_vm15 = vcmask 785408  }
 0x1e7   : > { %v1037_v53 = vsel %vm423_vm13, %v5656_v23, %v3002_v59  ;;  %v5668_v23 = vunpack.i.h.bf16 %v4008_v46 }
 0x1eb   : > { %v4071_v8 = vpop.permute.xlu0 %2974 }
 0x1ec   : > { %v2977_v13 = vunpack.i.h.bf16 %v4071_v8 }
 0x1f3   : > { %v4079_v11 = vpop.permute.xlu0 %2979  ;;  %v4081_v30 = vpop.permute.xlu1 %2989 }
 0x1f4   : > { %v2981_v56 = vunpack.i.l.bf16 %v4079_v11  ;;  %v2992_v58 = vunpack.i.h.bf16 %v4081_v30  ;;  %v5687_v20 = vunpack.i.h.bf16 %v4079_v11  ;;  %v5688_v54 = vunpack.i.l.bf16 %v4081_v30 }
 0x1f6   : > { %v999_v10 = vsel %vm673_vm6, %v2977_v13, %v2981_v56  ;;  %v1000_v9 = vsel %vm673_vm6, %v2981_v56, %v5687_v20  ;;  %v1017_v26 = vsel %vm432_vm14, %v5688_v54, %v2992_v58  ;;  %v1071_v38 = vsel %vm370_vm4, %v2992_v58, %v3002_v59 }
 0x1f7   : > { %v1066_v63 = vsel %vm370_vm4, %v979_v55, %v999_v10  ;;  %v1067_v12 = vsel %vm370_vm4, %v980_v49, %v1000_v9  ;;  %v1070_v47 = vsel %vm370_vm4, %v1017_v26, %v1037_v53  ;;  %v2881_v13 = vunpack.i.l.bf16 %v4008_v46 }
 0x1f8   : > { %v3039_v51 = vpack.i.bf16 %v1067_v12, %v1066_v63  ;;  %v3054_v31 = vpack.i.bf16 %v1071_v38, %v1070_v47  ;;  %v5671_v20 = vunpack.i.l.bf16 %v4071_v8  ;;  %v5666_v10 = vunpack.i.l.bf16 %v4006_v3 }
 0x1f9   : > { %v5689_v56 = vunpack.i.h.bf16 %v4017_v32  ;;  %v711_v53 = vsel %vm423_vm13, %v2881_v13, %v5668_v23  ;;  %v5664_v58 = vunpack.i.h.bf16 %v4010_v4  ;;  %v2911_v9 = vunpack.i.l.bf16 %v4010_v4 }
 0x1fa   : > { %3040 = vrot.lane.b32.xlu1 %v3039_v51, %s3624_s9  ;;  %3055 = vrot.lane.b32.xlu0 %v3054_v31, %s3624_s9  ;;  %v879_v63 = vsel %vm370_vm4, %v5666_v10, %v5671_v20  ;;  %v5661_v51 = vunpack.i.h.bf16 %v4013_v5  ;;  %v2901_v31 = vunpack.i.l.bf16 %v4013_v5  ;;  %v5662_v49 = vunpack.i.l.bf16 %v4001_v35 }
 0x1fb   : > { %v693_v26 = vsel %vm432_vm14, %v2876_v60, %v5689_v56  ;;  %v792_v47 = vsel %vm388_vm10, %v2911_v9, %v5664_v58  ;;  %v2852_v23 = vunpack.i.h.bf16 %v3968_v6  ;;  %v5690_v20 = vunpack.i.l.bf16 %v4073_v36 }
 0x1fc   : > { %v880_v59 = vsel %vm370_vm4, %v693_v26, %v711_v53  ;;  %v772_v60 = vsel %vm5675_vm15, %v2901_v31, %v5661_v51  ;;  %v5670_v26 = vunpack.i.l.bf16 %v4034_v44  ;;  %v2995_v53 = vpop.permute.xlu1 %2994  ;;  %v2917_v31 = vunpack.i.h.bf16 %v4036_v40 }
 0x1fd   : > { %v3074_v12 = vpack.i.bf16 %v880_v59, %v879_v63  ;;  %v886_v13 = vsel %vm370_vm4, %v772_v60, %v792_v47  ;;  %v5667_v63 = vunpack.i.h.bf16 %v4021_v22  ;;  %v5669_v59 = vunpack.i.l.bf16 %v4050_v61 }
 0x1fe   : > { %v2997_v47 = vunpack.i.h.bf16 %v2995_v53  ;;  %v5693_v36 = vunpack.i.l.bf16 %v3968_v6  ;;  %v2871_v6 = vunpack.i.l.bf16 %v3961_v2 }
 0x1ff   : > { %v826_v60 = vsel %vm5676_vm5, %v5667_v63, %v4025_v17 }
 0x200   : > { %v891_v63 = vsel %vm370_vm4, %v2917_v31, %v826_v60  ;;  %v2872_v60 = vunpack.i.h.bf16 %v3961_v2  ;;  %v5698_v2 = vunpack.i.l.bf16 %v4006_v3 }
 0x202   : > { %3075 = vrot.lane.b32.xlu0 %v3074_v12, %s3605_s18 }
 0x203   : > { %v4130_v54 = vpop.permute.xlu0 %3004 }
 0x204   : > { %v5665_v55 = vunpack.i.l.bf16 %v4130_v54  ;;  %v3007_v9 = vunpack.i.h.bf16 %v4130_v54 }
 0x206   : > { %v885_v38 = vsel %vm370_vm4, %v5665_v55, %v5662_v49 }
 0x207   : > { %v3089_v56 = vpack.i.bf16 %v886_v13, %v885_v38  ;;  %v892_v38 = vsel %vm370_vm4, %v5669_v59, %v5670_v26  ;;  %v2961_v13 = vunpack.i.l.bf16 %v4054_v0  ;;  %v2987_v0 = vunpack.i.h.bf16 %v4069_v42 }
 0x208   : > { %v3104_v26 = vpack.i.bf16 %v892_v38, %v891_v63  ;;  %v2867_v38 = vunpack.i.h.bf16 %v3999_v34 }
 0x20a   : > { %3090 = vrot.lane.b32.xlu0 %v3089_v56, %s3605_s18 }
 0x20b   : > { %v3010_v12 = vpop.permute.xlu0 %3009 }
 0x20c   : > { %v3012_v51 = vunpack.i.h.bf16 %v3010_v12  ;;  %v3011_v49 = vunpack.i.l.bf16 %v3010_v12 }
 0x20e   : > { %v1074_v56 = vsel %vm370_vm4, %v3012_v51, 0.0  ;;  %v1055_v58 = vsel %vm5674_vm7, %v3007_v9, %v3011_v49  ;;  %v1056_v12 = vsel %vm5674_vm7, %v3011_v49, %v3012_v51  ;;  %v1036_v9 = vsel %vm423_vm13, %v2997_v47, %v5690_v20 }
 0x20f   : > { %v3044_v55 = vpack.i.bf16 0.0, %v1074_v56  ;;  %v1072_v10 = vsel %vm370_vm4, %v1055_v58, 0.0  ;;  %v1073_v17 = vsel %vm370_vm4, %v1056_v12, 0.0  ;;  %v5691_v51 = vunpack.i.h.bf16 %v3970_v7 }
 0x210   : > { %v3059_v59 = vpack.i.bf16 %v1073_v17, %v1072_v10  ;;  %v5692_v49 = vunpack.i.l.bf16 %v4081_v30  ;;  %v613_v20 = vsel %vm459_vm1, %v5693_v36, %v2852_v23  ;;  %v876_v7 = vsel %vm370_vm4, %v2852_v23, %v2961_v13 }
 0x211   : > { %3045 = vrot.lane.b32.xlu2 %v3044_v55, %s3624_s9  ;;  %v634_v58 = vsel %vm5672_vm3, %v5691_v51, %v2961_v13  ;;  %v2996_v47 = vunpack.i.l.bf16 %v2995_v53  ;;  %v2866_v56 = vunpack.i.l.bf16 %v3999_v34  ;;  %v2986_v17 = vunpack.i.l.bf16 %v4069_v42 }
 0x212   : > { %3060 = vrot.lane.b32.xlu1 %v3059_v59, %s3624_s9  ;;  %3105 = vrot.lane.b32.xlu0 %v3104_v26, %s3605_s18  ;;  %v1016_v10 = vsel %vm432_vm14, %v2987_v0, %v5692_v49  ;;  %v875_v55 = vsel %vm370_vm4, %v613_v20, %v634_v58  ;;  %v5694_v59 = vunpack.i.h.bf16 %v4079_v11  ;;  %v5695_v26 = vunpack.i.l.bf16 %v4052_v48 }
 0x213   : > { %v1069_v63 = vsel %vm370_vm4, %v1016_v10, %v1036_v9  ;;  %v3064_v0 = vpack.i.bf16 %v876_v7, %v875_v55  ;;  %vm5673_vm3 = vcmask 1014784   ;;  %v5696_v23 = vunpack.i.l.bf16 %v4071_v8 }
 0x214   : > { %v1068_v30 = vsel %vm370_vm4, %v5695_v26, %v5694_v59  ;;  %v5697_v11 = vunpack.i.h.bf16 %v4008_v46  ;;  %v653_v34 = vsel %vm5673_vm3, %v2866_v56, %v2867_v38  ;;  %v654_v42 = vsel %vm5673_vm3, %v2867_v38, %v5698_v2 }
 0x215   : > { %v3049_v12 = vpack.i.bf16 %v1069_v63, %v1068_v30  ;;  %v675_v53 = vsel %vm673_vm6, %v2872_v60, %v5696_v23  ;;  %v674_v9 = vsel %vm673_vm6, %v2871_v6, %v2872_v60  ;;  %v5699_v8 = vunpack.i.h.bf16 %v4017_v32 }
 0x216   : > { %v712_v13 = vsel %vm423_vm13, %v5697_v11, %v2996_v47  ;;  %v878_v58 = vsel %vm370_vm4, %v654_v42, %v675_v53  ;;  %v882_v49 = vsel %vm370_vm4, %v2986_v17, %v2996_v47  ;;  %v2887_v10 = vunpack.i.h.bf16 %v3977_v37 }
 0x217   : > { %v694_v51 = vsel %vm432_vm14, %v5699_v8, %v2986_v17  ;;  %v2906_v63 = vunpack.i.l.bf16 %v4019_v25  ;;  %v877_v36 = vsel %vm370_vm4, %v653_v34, %v674_v9  ;;  %v2886_v20 = vunpack.i.l.bf16 %v3977_v37 }
 0x218   : > { %v881_v46 = vsel %vm370_vm4, %v694_v51, %v712_v13  ;;  %v2897_v55 = vunpack.i.h.bf16 %v4023_v29  ;;  %v2896_v32 = vunpack.i.l.bf16 %v4023_v29  ;;  %v3069_v7 = vpack.i.bf16 %v878_v58, %v877_v36  ;;  %v4277_v36 = vpop.permute.xlu1 %3015 }
 0x219   : > { %3050 = vrot.lane.b32.xlu2 %v3049_v12, %s3624_s9  ;;  %v3079_v60 = vpack.i.bf16 %v882_v49, %v881_v46  ;;  %vm751_vm3 = vcmask 883712   ;;  %v5700_v59 = vunpack.i.l.bf16 %v4130_v54  ;;  %v5701_v47 = vunpack.i.h.bf16 %v4010_v4 }
 0x21a   : > { %3065 = vrot.lane.b32.xlu1 %v3064_v0, %s3605_s18  ;;  %v731_v37 = vsel %vm5674_vm7, %v2886_v20, %v2887_v10  ;;  %v752_v38 = vsel %vm751_vm3, %v2896_v32, %v2897_v55  ;;  %v5702_v29 = vunpack.i.l.bf16 %v4001_v35  ;;  %v5703_v6 = vunpack.i.h.bf16 %v4013_v5 }
 0x21b   : > { %v732_v26 = vsel %vm5674_vm7, %v2887_v10, %v5700_v59  ;;  %v793_v30 = vsel %vm388_vm10, %v5701_v47, %v2906_v63  ;;  %v2916_v17 = vunpack.i.l.bf16 %v4036_v40  ;;  %v888_v0 = vsel %vm370_vm4, %v4029_v33, %v2906_v63 }
 0x21c   : > { %v753_v56 = vsel %vm751_vm3, %v2897_v55, %v5702_v29  ;;  %v773_v12 = vsel %vm5675_vm15, %v5703_v6, %v4029_v33  ;;  %v2932_v23 = vunpack.i.h.bf16 %v4034_v44  ;;  %v883_v53 = vsel %vm370_vm4, %v731_v37, %v752_v38 }
 0x21d   : > { %v884_v54 = vsel %vm370_vm4, %v732_v26, %v753_v56  ;;  %v887_v4 = vsel %vm370_vm4, %v773_v12, %v793_v30  ;;  %v2921_v11 = vunpack.i.l.bf16 %v4021_v22  ;;  %vm865_vm7 = vcmask 654336   ;;  %v4283_v30 = vpop.permute.xlu0 %1138 }
 0x21e   : > { %v3084_v13 = vpack.i.bf16 %v884_v54, %v883_v53  ;;  %v2927_v34 = vunpack.i.h.bf16 %v4050_v61  ;;  %v3094_v5 = vpack.i.bf16 %v888_v0, %v887_v4  ;;  %v805_v2 = vsel %vm375_vm9, %v2916_v17, %v2917_v31 }
 0x21f   : > { %vm844_vm15 = vcmask 752640   ;;  %v5704_v33 = vunpack.i.l.bf16 %v4034_v44  ;;  %v867_v9 = vsel %vm865_vm7, %v2932_v23, %v4040_v50  ;;  %v5705_v8 = vunpack.i.h.bf16 %v4021_v22  ;;  %v4275_v22 = vpop.permute.xlu2 %3020 }
 0x220   : > { %v889_v58 = vsel %vm370_vm4, %v2916_v17, %v2921_v11  ;;  %v5706_v31 = vunpack.i.l.bf16 %v4050_v61  ;;  %v846_v44 = vsel %vm844_vm15, %v2927_v34, %v4015_v41 }
 0x221   : > { %3070 = vrot.lane.b32.xlu2 %v3069_v7, %s3605_s18  ;;  %v866_v42 = vsel %vm865_vm7, %v5704_v33, %v2932_v23  ;;  %v825_v51 = vsel %vm5676_vm5, %v2921_v11, %v5705_v8  ;;  %v894_v10 = vsel %vm370_vm4, %v846_v44, %v867_v9  ;;  %vm1123_vm5 = vcmask 646144  }
 0x222   : > { %3080 = vrot.lane.b32.xlu1 %v3079_v60, %s3605_s18  ;;  %v890_v40 = vsel %vm370_vm4, %v805_v2, %v825_v51  ;;  %v845_v46 = vsel %vm844_vm15, %v5706_v31, %v2927_v34 }
 0x223   : > { %v893_v49 = vsel %vm370_vm4, %v845_v46, %v866_v42  ;;  %v3099_v50 = vpack.i.bf16 %v890_v40, %v889_v58  ;;  %vm5718_vm4 = vcmask 146432  }
 0x224   : > { %v3109_v63 = vpack.i.bf16 %v894_v10, %v893_v49  ;;  %v3154_v49 = vpack.i.bf16 %v3677_v15, %v3674_v14  ;;  %v2937_v14 = vunpack.i.h.bf16 %v4038_v62 }
 0x229   : > { %3085 = vrot.lane.b32.xlu2 %v3084_v13, %s3605_s18 }
 0x22a   : > { %3095 = vrot.lane.b32.xlu1 %v3094_v5, %s3605_s18 }
 0x231   : > { %3100 = vrot.lane.b32.xlu2 %v3099_v50, %s3605_s18 }
 0x232   : > { %3110 = vrot.lane.b32.xlu1 %v3109_v63, %s3605_s18 }
 0x23c   : > { %v3031_v61 = vpop.permute.xlu2 %3030  ;;  %v3026_v20 = vpop.permute.xlu1 %3025 }
 0x23d   : > { %v3033_v55 = vunpack.i.h.bf16 %v3031_v61  ;;  %v3032_v32 = vunpack.i.l.bf16 %v3031_v61  ;;  %v3028_v41 = vunpack.i.h.bf16 %v3026_v20  ;;  %v3027_v7 = vunpack.i.l.bf16 %v3026_v20 }
 0x23f   : > { %v1124_v60 = vsel %vm1123_vm5, %v3027_v7, %v3028_v41  ;;  %v1125_v59 = vsel %vm1123_vm5, %v3028_v41, %v3032_v32  ;;  %v2907_v32 = vunpack.i.h.bf16 %v4019_v25 }
 0x240   : > { %v3114_v26 = vpack.i.bf16 %v1124_v60, %v3027_v7  ;;  %v3119_v47 = vpack.i.bf16 %v3033_v55, %v1125_v59 }
 0x242   : > { %3120 = vrot.lane.b32.xlu0 %v3119_v47, %s3605_s18  ;;  %3115 = vrot.lane.b32.xlu2 %v3114_v26, %s3605_s18  ;;  %v1368_v26 = vmul.f32 0.0, %v2907_v32  ;;  %v1456_v47 = vmul.f32 0.0, %v2937_v14 }
 0x254   : > { %v3036_v37 = vpop.permute.xlu0 %3035 }
 0x255   : > { %v3038_v38 = vunpack.i.h.bf16 %v3036_v37  ;;  %v3037_v29 = vunpack.i.l.bf16 %v3036_v37  ;;  %v3179_v37 = vpack.i.bf16 %v1368_v26, %v3687_v19 }
 0x257   : > { %v1126_v56 = vsel %vm1123_vm5, %v3033_v55, %v3037_v29  ;;  %v1127_v54 = vsel %vm1123_vm5, %v3037_v29, %v3038_v38  ;;  %v3159_v38 = vpack.i.bf16 %v1456_v47, %v3687_v19  ;;  %v3169_v29 = vpack.i.bf16 %v3687_v19, %v3712_v28 }
 0x258   : > { %v3124_v6 = vpack.i.bf16 %v1127_v54, %v1126_v56  ;;  %v3174_v56 = vpack.i.bf16 0.0, %v3677_v15 }
 0x25a   : > { %3125 = vrot.lane.b32.xlu1 %v3124_v6, %s3605_s18 }
 0x26b   : > { %v3046_v12 = vpop.permute.xlu2 %3045 }
 0x26c   : > { %v3041_v17 = vpop.permute.xlu1 %3040  ;;  %v3056_v53 = vpop.permute.xlu0 %3055  ;;  %v3047_v63 = vunpack.i.l.bf16 %v3046_v12  ;;  %v3048_v55 = vunpack.i.h.bf16 %v3046_v12 }
 0x26d   : > { %v3043_v4 = vunpack.i.h.bf16 %v3041_v17  ;;  %v3042_v0 = vunpack.i.l.bf16 %v3041_v17  ;;  %v3058_v13 = vunpack.i.h.bf16 %v3056_v53  ;;  %v3057_v34 = vunpack.i.l.bf16 %v3056_v53 }
 0x26f   : > { %v1128_v23 = vsel %vm1123_vm5, %v3042_v0, %v3043_v4  ;;  %v1131_v8 = vsel %vm1123_vm5, %v3057_v34, %v3058_v13 }
 0x270   : > { %v3129_v11 = vpack.i.bf16 %v1128_v23, %v3042_v0 }
 0x272   : > { %3130 = vrot.lane.b32.xlu2 %v3129_v11, %s3605_s18 }
 0x273   : > { %v3051_v5 = vpop.permute.xlu2 %3050 }
 0x274   : > { %v3053_v2 = vunpack.i.h.bf16 %v3051_v5  ;;  %v3052_v33 = vunpack.i.l.bf16 %v3051_v5  ;;  %v4293_v40 = vpop.permute.xlu0 %3075 }
 0x275   : > { %v3077_v46 = vunpack.i.l.bf16 %v4293_v40 }
 0x276   : > { %v1129_v42 = vsel %vm1123_vm5, %v3043_v4, %v3052_v33  ;;  %v1130_v9 = vsel %vm1123_vm5, %v3053_v2, %v3057_v34  ;;  %v3184_v34 = vpack.i.bf16 %v3691_v21, %v3709_v27 }
 0x277   : > { %v3134_v51 = vpack.i.bf16 %v3053_v2, %v1129_v42  ;;  %v3139_v58 = vpack.i.bf16 %v1131_v8, %v1130_v9  ;;  %v5712_v42 = vmov 0.0  }
 0x279   : > { %3140 = vrot.lane.b32.xlu1 %v3139_v58, %s3605_s18  ;;  %3135 = vrot.lane.b32.xlu0 %v3134_v51, %s3605_s18 }
 0x27b   : > { %v4297_v31 = vpop.permute.xlu2 %3070 }
 0x27c   : > { %v3073_v44 = vunpack.i.h.bf16 %v4297_v31  ;;  %v4363_v4 = vpop.permute.xlu0 %3090 }
 0x27e   : > { %v4306_v10 = vsel %vm561_vm8, %v3073_v44, %v3077_v46 }
 0x281   : > { %3155 = vrot.lane.b32.xlu1 %v3154_v49, %s3594_s26 }
 0x283   : > { %v4357_v6 = vpop.permute.xlu2 %3085 }
 0x284   : > { %v3061_v50 = vpop.permute.xlu1 %3060  ;;  %v4369_v53 = vpop.permute.xlu0 %3105 }
 0x285   : > { %v3063_v61 = vunpack.i.h.bf16 %v3061_v50  ;;  %v3062_v20 = vunpack.i.l.bf16 %v3061_v50 }
 0x287   : > { %v1132_v41 = vsel %vm1123_vm5, %v3062_v20, %v3063_v61  ;;  %v1133_v7 = vsel %vm1123_vm5, %v3063_v61, %v3047_v63 }
 0x288   : > { %v3144_v60 = vpack.i.bf16 %v1132_v41, %v3062_v20  ;;  %v3149_v59 = vpack.i.bf16 %v3048_v55, %v1133_v7 }
 0x289   : > { %1384 = vrot.lane.b32.xlu1 %v3691_v21, %s3599_s8  ;;  %s5708_s8 = smov 17  }
 0x28a   : > { %3150 = vrot.lane.b32.xlu0 %v3149_v59, %s3605_s18  ;;  %3145 = vrot.lane.b32.xlu2 %v3144_v60, %s3605_s18 }
 0x28b   : > { %v4361_v17 = vpop.permute.xlu2 %3100 }
 0x28c   : > { %v4353_v28 = vpop.permute.xlu1 %3065 }
 0x291   : > { %3180 = vrot.lane.b32.xlu1 %v3179_v37, %s3606_s19 }
 0x292   : > { %1373 = vrot.lane.b32.xlu0 %v3684_v18, %s3596_s28  ;;  %3160 = vrot.lane.b32.xlu2 %v3159_v38, %s3597_s29  ;;  %s5707_s28 = smov 1  }
 0x294   : > { %v4355_v54 = vpop.permute.xlu1 %3080 }
 0x299   : > { %1486 = vrot.lane.b32.xlu1 %v3677_v15, %s3607_s20  ;;  %s5710_s20 = smov 31  }
 0x29a   : > { %3170 = vrot.lane.b32.xlu0 %v3169_v29, %s3598_s30  ;;  %3165 = vrot.lane.b32.xlu2 %v3154_v49, %s3595_s27 }
 0x29c   : > { %v4359_v12 = vpop.permute.xlu1 %3095  ;;  %v4367_v23 = vpop.permute.xlu2 %3115 }
 0x2a1   : > { %1519 = vrot.lane.b32.xlu1 %v3691_v21, %s3609_s22  ;;  %s5711_s22 = smov 30  }
 0x2a2   : > { %3175 = vrot.lane.b32.xlu0 %v3174_v56, %s3608_s21  ;;  %1428 = vrot.lane.b32.xlu2 %v3691_v21, %s3601_s10  ;;  %v3118_v56 = vunpack.i.h.bf16 %v4367_v23  ;;  %s2624_s10 = sshll.u32 %s5759_s25, 3 }
 0x2a4   : > { %v4365_v0 = vpop.permute.xlu1 %3110 }
 0x2a9   : > { %1552 = vrot.lane.b32.xlu1 %v3684_v18, %s3612_s14 }
 0x2aa   : > { %1475 = vrot.lane.b32.xlu0 %v3691_v21, %s3610_s23  ;;  %1464 = vrot.lane.b32.xlu2 %v3684_v18, %s5707_s28 }
 0x2b2   : > { %1508 = vrot.lane.b32.xlu0 %v3684_v18, %s5708_s8  ;;  %1497 = vrot.lane.b32.xlu2 %v3687_v19, %s5709_s17  ;;  %s5757_s8 = sshll.u32 %s5759_s25, 4 }
 0x2b4   : > { %v4371_v13 = vpop.permute.xlu0 %3120 }
 0x2ba   : > { %1541 = vrot.lane.b32.xlu0 %v3687_v19, %s5710_s20  ;;  %1530 = vrot.lane.b32.xlu2 %v3677_v15, %s5711_s22  ;;  %s285_s22 = scalar_lea.vmem %s5622_s6, %s5757_s8 }
 0x2c2   : > { %3185 = vrot.lane.b32.xlu2 %v3184_v34, %s3605_s18  ;;  %v3122_v34 = vunpack.i.l.bf16 %v4371_v13 }
 0x2ca   : > { %1735 = vrot.lane.b32.xlu2 %v5712_v42, %s3606_s19 }
 0x2cc   : > { %v3126_v19 = vpop.permute.xlu1 %3125  ;;  %v3131_v15 = vpop.permute.xlu2 %3130 }
 0x2cd   : > { %v3133_v61 = vunpack.i.h.bf16 %v3131_v15  ;;  %v3132_v55 = vunpack.i.l.bf16 %v3131_v15  ;;  %v3128_v47 = vunpack.i.h.bf16 %v3126_v19  ;;  %v3127_v37 = vunpack.i.l.bf16 %v3126_v19 }
 0x2ce   : > { %v3117_v15 = vunpack.i.l.bf16 %v4367_v23 }
 0x2cf   : > { %v1265_v19 = vsel %vm561_vm8, %v3132_v55, %v3133_v61  ;;  %v3107_v55 = vunpack.i.l.bf16 %v4369_v53 }
 0x2e4   : > { %v3146_v5 = vpop.permute.xlu2 %3145 }
 0x2e5   : > { %v3148_v21 = vunpack.i.h.bf16 %v3146_v5  ;;  %v3147_v27 = vunpack.i.l.bf16 %v3146_v5 }
 0x2e7   : > { %v1269_v60 = vsel %vm561_vm8, %v3147_v27, %v3148_v21  ;;  %v3103_v27 = vunpack.i.h.bf16 %v4361_v17 }
 0x2eb   : > { %v3141_v11 = vpop.permute.xlu1 %3140  ;;  %v3136_v33 = vpop.permute.xlu0 %3135 }
 0x2ec   : > { %v4380_v9 = vpop.permute.xlu2 %3160  ;;  %v3143_v49 = vunpack.i.h.bf16 %v3141_v11  ;;  %v3142_v50 = vunpack.i.l.bf16 %v3141_v11  ;;  %v3138_v63 = vunpack.i.h.bf16 %v3136_v33  ;;  %v3137_v41 = vunpack.i.l.bf16 %v3136_v33 }
 0x2ed   : > { %v3123_v11 = vunpack.i.h.bf16 %v4371_v13  ;;  %v3113_v33 = vunpack.i.h.bf16 %v4365_v0  ;;  %v3108_v13 = vunpack.i.h.bf16 %v4369_v53  ;;  %v3088_v53 = vunpack.i.h.bf16 %v4357_v6 }
 0x2ee   : > { %v1267_v38 = vsel %vm561_vm8, %v3138_v63, %v3142_v50  ;;  %v1268_v29 = vsel %vm561_vm8, %v3142_v50, %v3143_v49  ;;  %v1266_v5 = vsel %vm561_vm8, %v3133_v61, %v3137_v41  ;;  %v3102_v49 = vunpack.i.l.bf16 %v4361_v17 }
 0x2ef   : > { %v1263_v23 = vsel %vm561_vm8, %v3123_v11, %v3127_v37  ;;  %v1261_v63 = vsel %vm561_vm8, %v3117_v15, %v3118_v56  ;;  %v1262_v61 = vsel %vm561_vm8, %v3118_v56, %v3122_v34  ;;  %v3098_v41 = vunpack.i.h.bf16 %v4359_v12 }
 0x2f0   : > { %v3092_v56 = vunpack.i.l.bf16 %v4363_v4  ;;  %v3083_v15 = vunpack.i.h.bf16 %v4355_v54  ;;  %v3082_v11 = vunpack.i.l.bf16 %v4355_v54  ;;  %v3068_v54 = vunpack.i.h.bf16 %v4353_v28 }
 0x2f3   : > { %v4376_v2 = vpop.permute.xlu1 %3155 }
 0x2f4   : > { %v4401_v26 = vpop.permute.xlu2 %3165 }
 0x2fb   : > { %v4382_v8 = vpop.permute.xlu1 %1384 }
 0x2fc   : > { %v3151_v51 = vpop.permute.xlu0 %3150 }
 0x2fd   : > { %v4384_v58 = vunpack.i.h.bf16 %v3151_v51  ;;  %v3152_v46 = vunpack.i.l.bf16 %v3151_v51  ;;  %v3112_v51 = vunpack.i.l.bf16 %v4365_v0 }
 0x2ff   : > { %1300 = vmatpush.msra.mxu0 %v4384_v58  ;;  %1320 = vmatpush.msra.mxu1 %v4384_v58  ;;  %v1270_v59 = vsel %vm561_vm8, %v3148_v21, %v3152_v46  ;;  %v1264_v21 = vsel %vm561_vm8, %v3127_v37, %v3128_v47  ;;  %v1259_v17 = vsel %vm561_vm8, %v3108_v13, %v3112_v51  ;;  %v3093_v47 = vunpack.i.h.bf16 %v4363_v4  ;;  %v4436_v37 = vpop.permute.xlu2 %1428 }
 0x300   : > { %2169 = vmatpush.msra.mxu3 %v4384_v58  ;;  %v1252_v13 = vsel %vm561_vm8, %v3082_v11, %v3083_v15 }
 0x301   : > { %1301 = vmatpush.msra.mxu0 %v4384_v58  ;;  %1321 = vmatpush.msra.mxu1 %v4384_v58 }
 0x302   : > { %2170 = vmatpush.msra.mxu3 %v4384_v58 }
 0x303   : > { %v4392_v20 = vpop.permute.xlu1 %3180  ;;  %1302 = vmatpush.msra.mxu0 %v4384_v58  ;;  %1322 = vmatpush.msra.mxu1 %v4384_v58 }
 0x304   : > { %2171 = vmatpush.msra.mxu3 %v4384_v58  ;;  %v4397_v7 = vpop.permute.xlu0 %1373 }
 0x305   : > { %1303 = vmatpush.msra.mxu0 %v1269_v60  ;;  %1323 = vmatpush.msra.mxu1 %v1270_v59  ;;  %v3097_v60 = vunpack.i.l.bf16 %v4359_v12  ;;  %v1260_v59 = vsel %vm561_vm8, %v3112_v51, %v3113_v33  ;;  %v1258_v12 = vsel %vm561_vm8, %v3103_v27, %v3107_v55  ;;  %v1254_v51 = vsel %vm561_vm8, %v3088_v53, %v3092_v56 }
 0x306   : > { %2172 = vmatpush.msra.mxu3 %v4384_v58 }
 0x307   : > { %1304 = vmatpush.msra.mxu0 %v1267_v38  ;;  %1324 = vmatpush.msra.mxu1 %v1268_v29  ;;  %v3087_v38 = vunpack.i.l.bf16 %v4357_v6  ;;  %v1257_v29 = vsel %vm561_vm8, %v3102_v49, %v3103_v27  ;;  %v1255_v34 = vsel %vm561_vm8, %v3093_v47, %v3097_v60  ;;  %v3078_v6 = vunpack.i.h.bf16 %v4293_v40 }
 0x308   : > { %2173 = vmatpush.msra.mxu3 %v4384_v58  ;;  %v3023_v40 = vunpack.i.h.bf16 %v4275_v22  ;;  %v3018_v27 = vunpack.i.h.bf16 %v4277_v36  ;;  %v3017_v49 = vunpack.i.l.bf16 %v4277_v36  ;;  %v1134_v36 = vld [vmem:[%s5617_s1] sm:$0xff] }
 0x309   : > { %1305 = vmatpush.msra.mxu0 %v1265_v19  ;;  %1325 = vmatpush.msra.mxu1 %v1266_v5  ;;  %v1256_v19 = vsel %vm561_vm8, %v3097_v60, %v3098_v41  ;;  %v3072_v5 = vunpack.i.l.bf16 %v4297_v31  ;;  %v1253_v4 = vsel %vm561_vm8, %v3087_v38, %v3088_v53 }
 0x30a   : > { %2174 = vmatpush.msra.mxu3 %v4384_v58 }
 0x30b   : > { %v4420_v46 = vpop.permute.xlu1 %1486  ;;  %1306 = vmatpush.msra.mxu0 %v1263_v23  ;;  %1326 = vmatpush.msra.mxu1 %v1264_v21  ;;  %v3067_v23 = vunpack.i.l.bf16 %v4353_v28  ;;  %v1251_v21 = vsel %vm561_vm8, %v3078_v6, %v3082_v11  ;;  %v3022_v28 = vunpack.i.l.bf16 %v4275_v22 }
 0x30c   : > { %v1494_v50 = vmul.f32 0.0, %v4420_v46  ;;  %2175 = vmatpush.msra.mxu3 %v4384_v58  ;;  %v4425_v0 = vpop.permute.xlu0 %3170 }
 0x30d   : > { %1307 = vmatpush.msra.mxu0 %v1261_v63  ;;  %1327 = vmatpush.msra.mxu1 %v1262_v61  ;;  %v4463_v63 = vpop.permute.xlu2 %1464  ;;  %v1247_v61 = vsel %vm561_vm8, %v3023_v40, %v3067_v23  ;;  %v1248_v55 = vsel %vm561_vm8, %v3067_v23, %v3068_v54  ;;  %v1246_v41 = vsel %vm561_vm8, %v3018_v27, %v3022_v28 }
 0x30e   : > { %1724 = vrot.lane.b32.xlu1 %v1494_v50, %s3622_s11  ;;  %v1249_v50 = vsel %vm561_vm8, %v3072_v5, %v3073_v44  ;;  %v1245_v44 = vsel %vm561_vm8, %v3017_v49, %v3018_v27  ;;  %v1472_v47 = vmul.f32 0.0, %v4463_v63  ;;  %v3162_v49 = vunpack.i.l.bf16 %v4380_v9 }
 0x30f   : > { %1308 = vmatpush.msra.mxu0 %v1259_v17  ;;  %1328 = vmatpush.msra.mxu1 %v1260_v59 }
 0x311   : > { %1309 = vmatpush.msra.mxu0 %v1257_v29  ;;  %1329 = vmatpush.msra.mxu1 %v1258_v12 }
 0x313   : > { %1310 = vmatpush.msra.mxu0 %v1255_v34  ;;  %1330 = vmatpush.msra.mxu1 %v1256_v19  ;;  %v2777_v19 = vunpack.i.h.bf16 %v3762_v43  ;;  %v3168_v43 = vunpack.i.h.bf16 %v4401_v26 }
 0x314   : > { %v4449_v33 = vpop.permute.xlu0 %3175 }
 0x315   : > { %1311 = vmatpush.msra.mxu0 %v1253_v4  ;;  %1331 = vmatpush.msra.mxu1 %v1254_v51  ;;  %v4480_v22 = vpop.permute.xlu2 %1497  ;;  %v1375_v51 = vsel %vm401_vm11, %v2777_v19, %v4397_v7  ;;  %v1379_v54 = vmul.f32 0.0, %v2777_v19  ;;  %vm5719_vm11 = vcmask 15360  }
 0x316   : > { %v1505_v60 = vmul.f32 0.0, %v4480_v22 }
 0x317   : > { %1312 = vmatpush.msra.mxu0 %v1251_v21  ;;  %1332 = vmatpush.msra.mxu1 %v1252_v13  ;;  %v3167_v13 = vunpack.i.l.bf16 %v4401_v26 }
 0x319   : > { %1313 = vmatpush.msra.mxu0 %v1249_v50  ;;  %1333 = vmatpush.msra.mxu1 %v4306_v10  ;;  %v1397_v27 = vsel %vm423_vm13, %v3167_v13, %v3168_v43  ;;  %v1401_v50 = vmul.f32 0.0, %v3167_v13 }
 0x31b   : > { %1314 = vmatpush.msra.mxu0 %v1247_v61  ;;  %1334 = vmatpush.msra.mxu1 %v1248_v55  ;;  %v1364_v61 = vsel %vm388_vm10, %v2907_v32, %v3162_v49  ;;  %v3173_v55 = vunpack.i.h.bf16 %v4425_v0  ;;  %v2832_v32 = vunpack.i.h.bf16 %v3922_v16 }
 0x31c   : > { %v4472_v31 = vpop.permute.xlu0 %1475 }
 0x31d   : > { %v1483_v10 = vmul.f32 0.0, %v4472_v31  ;;  %1315 = vmatpush.msra.mxu0 %v1245_v44  ;;  %1335 = vmatpush.msra.mxu1 %v1246_v41  ;;  %v4495_v53 = vpop.permute.xlu2 %1530 }
 0x31e   : > { %1316 = vmatmul.f32.vlgmr.msra.gmra.mxu0 %v1134_v36  ;;  %1336 = vmatmul.f32.vlgmr.msra.gmra.mxu1 %v1134_v36 }
 0x31f   : > { %2209 = vmatpush.msrb.mxu1 %v4384_v58  ;;  %1713 = vrot.lane.b32.xlu2 %v1483_v10, %s3621_s12 }
 0x321   : > { %2210 = vmatpush.msrb.mxu1 %v4384_v58 }
 0x323   : > { %2211 = vmatpush.msrb.mxu1 %v4384_v58 }
 0x324   : > { %v4484_v17 = vpop.permute.xlu0 %1508 }
 0x325   : > { %v1516_v59 = vmul.f32 0.0, %v4484_v17  ;;  %2212 = vmatpush.msrb.mxu1 %v4384_v58  ;;  %v4497_v38 = vpop.permute.xlu2 %3185 }
 0x327   : > { %2213 = vmatpush.msrb.mxu1 %v4384_v58  ;;  %1746 = vrot.lane.b32.xlu0 %v1516_v59, %s3608_s21 }
 0x328   : > { %1820 = vrot.lane.b32.xlu2 %v1505_v60, %s3624_s9  ;;  %v2827_v60 = vunpack.i.h.bf16 %v3911_v1 }
 0x329   : > { %2214 = vmatpush.msrb.mxu1 %v4384_v58 }
 0x32b   : > { %2215 = vmatpush.msrb.mxu1 %v4384_v58 }
 0x32c   : > { %v4499_v29 = vpop.permute.xlu0 %1541 }
 0x32d   : > { %v4501_v12 = vpop.permute.xlu2 %1735 }
 0x32f   : > { %1702 = vrot.lane.b32.xlu0 %v1472_v47, %s3620_s15 }
 0x399   : > { %v4503_v56 = vpop.permute.xlu0 %1746 }
 0x39a   : > { %v3189_v15 = vpack.i.bf16 %v4501_v12, %v4503_v56 }
 0x39b   : > { %v1317_v11 = vpop.f32.mrf.mxu0  ;;  %v1337_v34 = vpop.f32.mrf.mxu1 }
 0x39c   : > { %v1318_v58 = vadd.f32 %v1317_v11, %v4283_v30  ;;  %v1338_v6 = vadd.f32 %v1337_v34, %v4283_v30  ;;  %3190 = vrot.lane.b32.xlu1 %v3189_v15, %s3624_s9  ;;  %v2837_v11 = vunpack.i.h.bf16 %v3931_v39 }
 0x39e   : > { %v4511_v5 = vmax.f32 %v1318_v58, 0.0  ;;  %v4513_v4 = vmax.f32 %v1338_v6, 0.0  ;;  %v5714_v58 = vunpack.i.h.bf16 %v3776_v52 }
 0x3a0   : > { %v3199_v23 = vpack.i.bf16 %v4511_v5, %v5712_v42  ;;  %v1380_v21 = vmul.f32 %v1375_v51, %v4511_v5  ;;  %v3194_v30 = vpack.i.bf16 %v4513_v4, %v4511_v5  ;;  %v1402_v42 = vmul.f32 %v1397_v27, %v4511_v5 }
 0x3a1   : > { %v3204_v26 = vpack.i.bf16 0.0, %v4513_v4  ;;  %v1369_v36 = vmul.f32 %v1364_v61, %v4511_v5  ;;  %v1370_v44 = vmul.f32 %v3162_v49, %v4513_v4  ;;  %v1414_v41 = vmul.f32 %v3173_v55, %v4513_v4 }
 0x3a2   : > { %3200 = vrot.lane.b32.xlu0 %v3199_v23, %s3595_s27  ;;  %v3229_v40 = vpack.i.bf16 %v1380_v21, %v1379_v54  ;;  %v3244_v28 = vpack.i.bf16 %v1402_v42, %v1401_v50  ;;  %v1381_v59 = vmul.f32 %v4397_v7, %v4513_v4  ;;  %v1525_v47 = vmul.f32 %v2827_v60, %v4511_v5 }
 0x3a3   : > { %v3224_v10 = vpack.i.bf16 %v1370_v44, %v1369_v36  ;;  %v3259_v25 = vpack.i.bf16 %v4511_v5, %v1414_v41  ;;  %v1536_v15 = vmul.f32 %v2832_v32, %v4511_v5  ;;  %v1403_v19 = vmul.f32 %v3168_v43, %v4513_v4  ;;  %v1520_v36 = vpop.permute.xlu1 %1519 }
 0x3a4   : > { %3195 = vrot.lane.b32.xlu1 %v3194_v30, %s3608_s21  ;;  %3230 = vrot.lane.b32.xlu2 %v3229_v40, %s3611_s13  ;;  %v3234_v1 = vpack.i.bf16 %v1525_v47, %v1381_v59  ;;  %v1547_v7 = vmul.f32 %v2837_v11, %v4511_v5  ;;  %v1386_v6 = vsel %vm414_vm12, %v5714_v58, %v4382_v8  ;;  %v2842_v40 = vunpack.i.h.bf16 %v3944_v24 }
 0x3a5   : > { %v3219_v34 = vpack.i.bf16 %v1536_v15, %v3684_v18  ;;  %v1391_v51 = vmul.f32 %v1386_v6, %v4511_v5  ;;  %v1392_v54 = vmul.f32 %v4382_v8, %v4513_v4  ;;  %v3172_v18 = vunpack.i.l.bf16 %v4425_v0 }
 0x3a6   : > { %v3249_v23 = vpack.i.bf16 %v1547_v7, %v1403_v19  ;;  %v1558_v8 = vmul.f32 %v2842_v40, %v4511_v5  ;;  %v5716_v27 = vunpack.i.h.bf16 %v3821_v45  ;;  %v1436_v50 = vmul.f32 %v4436_v37, %v4513_v4 }
 0x3a7   : > { %v3239_v21 = vpack.i.bf16 %v1392_v54, %v1391_v51  ;;  %v1408_v43 = vsel %vm432_vm14, %v3172_v18, %v3173_v55  ;;  %v1412_v52 = vmul.f32 0.0, %v3172_v18  ;;  %v1521_v41 = vsel %vm5718_vm4, %v2827_v60, %v1520_v36  ;;  %v4621_v51 = vpop.permute.xlu0 %1702 }
 0x3a8   : > { %v1413_v13 = vmul.f32 %v1408_v43, %v4511_v5  ;;  %v3264_v0 = vpack.i.bf16 %v1558_v8, %v4513_v4  ;;  %v1430_v42 = vsel %vm450_vm0, %v5716_v27, %v4436_v37  ;;  %v1527_v37 = vmul.f32 0.0, %v1520_v36 }
 0x3a9   : > { %v1435_v49 = vmul.f32 %v1430_v42, %v4511_v5  ;;  %v2807_v59 = vunpack.i.h.bf16 %v3871_v57  ;;  %vm5720_vm12 = vcmask 924672   ;;  %vm5724_vm0 = vcmask 269312  }
 0x3aa   : > { %3215 = vrot.lane.b32.xlu0 %v3194_v30, %s3594_s26  ;;  %s5713_s26 = smov 113   ;;  %vm5726_vm4 = vcmask 252928  }
 0x3ab   : > { %v1477_v62 = vsel %vm5719_vm11, %v2807_v59, %v4472_v31  ;;  %v1481_v47 = vmul.f32 %v2807_v59, %v4511_v5  ;;  %v3187_v59 = vunpack.i.l.bf16 %v4497_v38  ;;  %vm5729_vm11 = vcmask 113664  }
 0x3ac   : > { %3205 = vrot.lane.b32.xlu1 %v3204_v26, %s3598_s30  ;;  %3245 = vrot.lane.b32.xlu2 %v3244_v28, %s3616_s16  ;;  %v3182_v26 = vunpack.i.l.bf16 %v4392_v20  ;;  %v3279_v28 = vpack.i.bf16 %v1436_v50, %v1435_v49  ;;  %v1482_v15 = vmul.f32 %v1477_v62, %v4513_v4  ;;  %v3183_v49 = vunpack.i.h.bf16 %v4392_v20 }
 0x3ae   : > { %v1452_v61 = vsel %vm468_vm2, %v2937_v14, %v3182_v26  ;;  %v1458_v45 = vmul.f32 %v3182_v26, %v4513_v4  ;;  %v4601_v14 = vpop.permute.xlu2 %1713 }
 0x3af   : > { %v1457_v55 = vmul.f32 %v1452_v61, %v4511_v5 }
 0x3b1   : > { %v3289_v44 = vpack.i.bf16 %v1458_v45, %v1457_v55 }
 0x3b2   : > { %3225 = vrot.lane.b32.xlu0 %v3224_v10, %s3606_s19  ;;  %v1526_v10 = vmul.f32 %v1521_v41, %v4513_v4 }
 0x3b4   : > { %3210 = vrot.lane.b32.xlu1 %v3194_v30, %s3606_s19  ;;  %3260 = vrot.lane.b32.xlu2 %v3259_v25, %s3598_s30  ;;  %s5715_s19 = smov 124   ;;  %v3254_v30 = vpack.i.bf16 %v1413_v13, %v1412_v52  ;;  %v3314_v25 = vpack.i.bf16 %v1527_v37, %v1526_v10  ;;  %v2957_v10 = vunpack.i.h.bf16 %v4052_v48  ;;  %v5721_v48 = vld [vmem:[#allocation7_spill] sm:$0xff] }
 0x3b6   : > { %v4606_v60 = vpop.permute.xlu2 %1820 }
 0x3ba   : > { %3235 = vrot.lane.b32.xlu0 %v3234_v1, %s3611_s13  ;;  %v3329_v1 = vpack.i.bf16 %v1482_v15, %v1481_v47 }
 0x3bc   : > { %3220 = vrot.lane.b32.xlu1 %v3219_v34, %s5713_s26  ;;  %v1553_v34 = vpop.permute.xlu1 %1552 }
 0x3c2   : > { %3250 = vrot.lane.b32.xlu0 %v3249_v23, %s3616_s16 }
 0x3c4   : > { %3240 = vrot.lane.b32.xlu1 %v3239_v21, %s5715_s19  ;;  %v4610_v57 = vpop.permute.xlu1 %1724  ;;  %v3178_v21 = vunpack.i.h.bf16 %v4449_v33  ;;  %s289_s19 = scalar_lea.vmem %s5623_s7, %s2624_s10 }
 0x3cc   : > { %3255 = vrot.lane.b32.xlu1 %v3254_v30, %s3598_s30  ;;  %s5717_s30 = smov 108  }
 0x3d4   : > { %3265 = vrot.lane.b32.xlu1 %v3264_v0, %s3595_s27 }
 0x3dc   : > { %3280 = vrot.lane.b32.xlu1 %v3279_v28, %s5717_s30 }
 0x3e4   : > { %3290 = vrot.lane.b32.xlu1 %v3289_v44, %s3597_s29  ;;  %s5722_s29 = smov 109  }
 0x3ec   : > { %3315 = vrot.lane.b32.xlu1 %v3314_v25, %s3611_s13 }
 0x3f4   : > { %3330 = vrot.lane.b32.xlu1 %v3329_v1, %s3621_s12  ;;  %v1569_v1 = vmul.f32 %v3187_v59, %v4511_v5  ;;  %s5723_s12 = smov 96  }
 0x3fe   : > { %v4608_v19 = vpop.permute.xlu2 %3230 }
 0x406   : > { %v4612_v7 = vpop.permute.xlu2 %3245 }
 0x407   : > { %v3248_v31 = vunpack.i.h.bf16 %v4612_v7  ;;  %v3247_v58 = vunpack.i.l.bf16 %v4612_v7  ;;  %v2862_v7 = vunpack.i.h.bf16 %v4006_v3  ;;  %v3232_v3 = vunpack.i.l.bf16 %v4608_v19 }
 0x409   : > { %v4619_v6 = vsel %vm673_vm6, %v3247_v58, %v3248_v31  ;;  %v1423_v58 = vmul.f32 0.0, %v2957_v10 }
 0x40e   : > { %v4623_v54 = vpop.permute.xlu1 %3190 }
 0x414   : > { %v4625_v23 = vpop.permute.xlu0 %3200 }
 0x416   : > { %v4627_v18 = vpop.permute.xlu1 %3195 }
 0x417   : > { %v5679_v43 = vunpack.i.h.bf16 %v4627_v18  ;;  %v3197_v13 = vunpack.i.l.bf16 %v4627_v18 }
 0x419   : > { %v4633_v52 = vsel %vm459_vm1, %v3178_v21, %v3197_v13  ;;  %v4638_v30 = vsel %vm459_vm1, %v3197_v13, %v5679_v43  ;;  %v3177_v21 = vunpack.i.l.bf16 %v4449_v33 }
 0x41a   : > { %v3364_v8 = vpack.i.bf16 %v4638_v30, %v4633_v52 }
 0x41c   : > { %v4642_v0 = vpop.permute.xlu0 %3215 }
 0x41e   : > { %v4644_v27 = vpop.permute.xlu1 %3205 }
 0x424   : > { %v4646_v42 = vpop.permute.xlu0 %3225 }
 0x425   : > { %v5677_v50 = vunpack.i.h.bf16 %v4646_v42  ;;  %v3227_v26 = vunpack.i.l.bf16 %v4646_v42 }
 0x426   : > { %v3211_v28 = vpop.permute.xlu1 %3210 }
 0x427   : > { %v4652_v61 = vsel %vm468_vm2, %v3183_v49, %v3227_v26  ;;  %v4657_v55 = vsel %vm468_vm2, %v3227_v26, %v5677_v50  ;;  %v3213_v45 = vunpack.i.h.bf16 %v3211_v28  ;;  %v3212_v36 = vunpack.i.l.bf16 %v3211_v28 }
 0x428   : > { %v3484_v44 = vpack.i.bf16 %v4657_v55, %v4652_v61  ;;  %v2942_v26 = vunpack.i.h.bf16 %v5721_v48  ;;  %v1549_v48 = vmul.f32 0.0, %v4499_v29 }
 0x429   : > { %v1737_v20 = vsel %vm468_vm2, %v3212_v36, %v3213_v45  ;;  %v1738_v41 = vsel %vm468_vm2, %v3213_v45, %v4501_v12  ;;  %vm5725_vm2 = vcmask 244736  }
 0x42a   : > { %v3354_v37 = vpack.i.bf16 %v1738_v41, %v1737_v20  ;;  %v1441_v45 = vsel %vm459_vm1, %v2942_v26, %v3177_v21  ;;  %v1445_v20 = vmul.f32 0.0, %v2942_v26  ;;  %v3188_v41 = vunpack.i.h.bf16 %v4497_v38  ;;  %v5727_v26 = vld [vmem:[#allocation6_spill] sm:$0xff] }
 0x42b   : > { %v1446_v36 = vmul.f32 %v1441_v45, %v4511_v5  ;;  %v1532_v24 = vsel %vm5725_vm2, %v2832_v32, %v4495_v53  ;;  %v2822_v32 = vunpack.i.h.bf16 %v5727_v26  ;;  %v5728_v45 = vld [vmem:[#allocation4_spill] sm:$0xff]  ;;  %vm5734_vm2 = vcmask 121856  }
 0x42c   : > { %3355 = vrot.lane.b32.xlu1 %v3354_v37, %s3624_s9  ;;  %v1447_v37 = vmul.f32 %v3177_v21, %v4513_v4 }
 0x42d   : > { %v3284_v33 = vpack.i.bf16 %v1446_v36, %v1445_v20  ;;  %v2812_v36 = vunpack.i.h.bf16 %v5728_v45 }
 0x42e   : > { %v4666_v25 = vpop.permute.xlu1 %3220 }
 0x42f   : > { %v3222_v62 = vunpack.i.l.bf16 %v4666_v25  ;;  %v1488_v39 = vsel %vm5729_vm11, %v2812_v36, %v4420_v46  ;;  %vm5737_vm11 = vcmask 891904  }
 0x431   : > { %v1419_v47 = vsel %vm5720_vm12, %v2957_v10, %v3222_v62  ;;  %v1425_v15 = vmul.f32 %v3222_v62, %v4513_v4  ;;  %v1554_v10 = vsel %vm5724_vm0, %v2842_v40, %v1553_v34  ;;  %vm5730_vm12 = vcmask 138240  }
 0x432   : > { %v1424_v12 = vmul.f32 %v1419_v47, %v4511_v5  ;;  %v1560_v47 = vmul.f32 0.0, %v1553_v34  ;;  %v1543_v34 = vsel %vm5726_vm4, %v2837_v11, %v4499_v29  ;;  %v1510_v11 = vsel %vm5730_vm12, %v2822_v32, %v4484_v17  ;;  %vm5738_vm12 = vmmov %vm5737_vm11 }
 0x433   : > { %v3274_v13 = vpack.i.bf16 %v1569_v1, %v1425_v15  ;;  %v1565_v15 = vsel %vm561_vm8, %v3187_v59, %v3188_v41  ;;  %v1559_v1 = vmul.f32 %v1554_v10, %v4513_v4  ;;  %v1537_v59 = vmul.f32 %v1532_v24, %v4513_v4 }
 0x434   : > { %v3269_v49 = vpack.i.bf16 %v1424_v12, %v1423_v58  ;;  %v1570_v38 = vmul.f32 %v1565_v15, %v4513_v4  ;;  %v1571_v58 = vmul.f32 0.0, %v3188_v41  ;;  %v3218_v10 = vunpack.i.h.bf16 %v4642_v0 }
 0x435   : > { %3275 = vrot.lane.b32.xlu0 %v3274_v13, %s5722_s29  ;;  %v3299_v12 = vpack.i.bf16 %v1560_v47, %v1559_v1  ;;  %v1548_v13 = vmul.f32 %v1543_v34, %v4513_v4  ;;  %v1514_v47 = vmul.f32 %v2822_v32, %v4511_v5  ;;  %v1515_v46 = vmul.f32 %v1510_v11, %v4513_v4 }
 0x436   : > { %v4677_v28 = vpop.permute.xlu1 %3240  ;;  %3270 = vrot.lane.b32.xlu2 %v3269_v49, %s5722_s29  ;;  %v3294_v21 = vpack.i.bf16 %v1571_v58, %v1570_v38  ;;  %v1538_v49 = vmul.f32 0.0, %v4495_v53  ;;  %v3203_v38 = vunpack.i.h.bf16 %v4625_v23  ;;  %v3202_v58 = vunpack.i.l.bf16 %v4625_v23 }
 0x437   : > { %v3304_v20 = vpack.i.bf16 %v1549_v48, %v1548_v13  ;;  %vm5732_vm0 = vcmask 7168  }
 0x438   : > { %v3309_v16 = vpack.i.bf16 %v1538_v49, %v1537_v59  ;;  %v3163_v59 = vunpack.i.h.bf16 %v4380_v9  ;;  %v5733_v9 = vld [vmem:[#allocation5_spill] sm:$0xff] }
 0x43d   : > { %1675 = vrot.lane.b32.xlu0 %v1447_v37, %s5723_s12  ;;  %v1492_v37 = vmul.f32 %v2812_v36, %v4511_v5 }
 0x43e   : > { %v4688_v62 = vpop.permute.xlu1 %3255  ;;  %3285 = vrot.lane.b32.xlu2 %v3284_v33, %s5723_s12  ;;  %v1493_v33 = vmul.f32 %v1488_v39, %v4513_v4  ;;  %v4755_v39 = vpop.permute.xlu0 %3235 }
 0x440   : > { %v3324_v1 = vpack.i.bf16 %v1493_v33, %v1492_v37 }
 0x445   : > { %3300 = vrot.lane.b32.xlu0 %v3299_v12, %s3595_s27  ;;  %v3319_v12 = vpack.i.bf16 %v1515_v46, %v1514_v47  ;;  %v3238_v47 = vunpack.i.h.bf16 %v4755_v39 }
 0x446   : > { %v4699_v40 = vpop.permute.xlu1 %3265  ;;  %3295 = vrot.lane.b32.xlu2 %v3294_v21, %s5722_s29  ;;  %v5731_v21 = vld [vmem:[#allocation3_spill] sm:$0xff] }
 0x447   : > { %v2802_v24 = vunpack.i.h.bf16 %v5731_v21  ;;  %v3268_v23 = vunpack.i.h.bf16 %v4699_v40 }
 0x449   : > { %v1466_v13 = vsel %vm5732_vm0, %v2802_v24, %v4463_v63  ;;  %v1470_v26 = vmul.f32 %v2802_v24, %v4511_v5  ;;  %v2817_v63 = vunpack.i.h.bf16 %v5733_v9  ;;  %vm5739_vm0 = vcmask 924672  }
 0x44a   : > { %v1471_v32 = vmul.f32 %v1466_v13, %v4513_v4 }
 0x44b   : > { %v1499_v37 = vsel %vm5734_vm2, %v2817_v63, %v4480_v22  ;;  %v3207_v22 = vunpack.i.l.bf16 %v4644_v27  ;;  %vm5740_vm2 = vcmask 760832  }
 0x44c   : > { %v3334_v11 = vpack.i.bf16 %v1471_v32, %v1470_v26  ;;  %v1504_v46 = vmul.f32 %v1499_v37, %v4513_v4  ;;  %v3217_v26 = vunpack.i.l.bf16 %v4642_v0  ;;  %v5680_v0 = vunpack.i.h.bf16 %v4376_v2 }
 0x44d   : > { %3310 = vrot.lane.b32.xlu0 %v3309_v16, %s5713_s26  ;;  %v1644_v16 = vsel %vm423_vm13, %v3202_v58, %v3203_v38  ;;  %v4764_v58 = vpop.permute.xlu2 %3260 }
 0x44e   : > { %v4717_v41 = vpop.permute.xlu1 %3280  ;;  %3305 = vrot.lane.b32.xlu2 %v3304_v20, %s3616_s16  ;;  %v3263_v13 = vunpack.i.h.bf16 %v4764_v58  ;;  %v1694_v32 = vsel %vm375_vm9, %v3217_v26, %v3218_v10  ;;  %v4800_v52 = vmul.f32 %v5680_v0, %v4513_v4 }
 0x44f   : > { %v5681_v53 = vunpack.i.h.bf16 %v4717_v41  ;;  %v3282_v29 = vunpack.i.l.bf16 %v4717_v41 }
 0x451   : > { %v1667_v17 = vsel %vm751_vm3, %v3282_v29, %v5681_v53  ;;  %v3267_v53 = vunpack.i.l.bf16 %v4699_v40  ;;  %v5752_v40 = vunpack.i.h.bf16 %v4376_v2 }
 0x452   : > { %v4732_v15 = vpack.i.bf16 %v3218_v10, %v1667_v17  ;;  %v3193_v10 = vunpack.i.h.bf16 %v4623_v54 }
 0x455   : > { %3325 = vrot.lane.b32.xlu0 %v3324_v1, %s3622_s11 }
 0x456   : > { %v3291_v34 = vpop.permute.xlu1 %3290  ;;  %3320 = vrot.lane.b32.xlu2 %v3319_v12, %s3608_s21 }
 0x457   : > { %v3293_v49 = vunpack.i.h.bf16 %v3291_v34  ;;  %v3292_v48 = vunpack.i.l.bf16 %v3291_v34  ;;  %v3208_v34 = vunpack.i.h.bf16 %v4644_v27 }
 0x459   : > { %v3369_v45 = vpack.i.bf16 %v1644_v16, %v3293_v49  ;;  %v4748_v36 = vsel %vm388_vm10, %v3163_v59, %v3292_v48  ;;  %v4751_v20 = vsel %vm388_vm10, %v3292_v48, %v3293_v49  ;;  %vm5735_vm10 = vcmask 1022976  }
 0x45a   : > { %vm5736_vm4 = vmmov %vm5735_vm10  ;;  %v1789_v49 = vsel %vm432_vm14, %v3263_v13, %v3207_v22  ;;  %v1790_v48 = vsel %vm432_vm14, %v3207_v22, %v3208_v34 }
 0x45b   : > { %3370 = vrot.lane.b32.xlu1 %v3369_v45, %s3605_s18  ;;  %v3349_v16 = vpack.i.bf16 %v1790_v48, %v1789_v49  ;;  %v3359_v45 = vpack.i.bf16 %v1694_v32, %v3217_v26 }
 0x45e   : > { %v3316_v33 = vpop.permute.xlu1 %3315  ;;  %3335 = vrot.lane.b32.xlu2 %v3334_v11, %s3620_s15 }
 0x45f   : > { %v3318_v17 = vunpack.i.h.bf16 %v3316_v33  ;;  %v3317_v1 = vunpack.i.l.bf16 %v3316_v33 }
 0x461   : > { %v3344_v12 = vpack.i.bf16 %v3318_v17, %v1504_v46  ;;  %v1759_v21 = vsel %vm5735_vm10, %v3238_v47, %v3317_v1  ;;  %v1760_v24 = vsel %vm5736_vm4, %v3317_v1, %v3318_v17  ;;  %v4794_v46 = vpop.permute.xlu0 %3250  ;;  %vm5745_vm10 = vmmov %vm5737_vm11 }
 0x462   : > { %v3404_v59 = vpack.i.bf16 %v1760_v24, %v1759_v21  ;;  %v3253_v32 = vunpack.i.h.bf16 %v4794_v46 }
 0x463   : > { %3345 = vrot.lane.b32.xlu0 %v3344_v12, %s3624_s9 }
 0x466   : > { %v4786_v37 = vpop.permute.xlu1 %3330 }
 0x467   : > { %v3333_v43 = vunpack.i.h.bf16 %v4786_v37 }
 0x46b   : > { %3350 = vrot.lane.b32.xlu0 %v3349_v16, %s3624_s9 }
 0x473   : > { %3360 = vrot.lane.b32.xlu0 %v3359_v45, %s3605_s18 }
 0x47b   : > { %3365 = vrot.lane.b32.xlu0 %v3364_v8, %s3605_s18 }
 0x490   : > { %v4784_v11 = vpop.permute.xlu2 %3270 }
 0x498   : > { %v4788_v33 = vpop.permute.xlu2 %3285 }
 0x49e   : > { %v4791_v47 = vpop.permute.xlu1 %3355 }
 0x49f   : > { %v5678_v17 = vunpack.i.h.bf16 %v4791_v47 }
 0x4a0   : > { %v4802_v30 = vpop.permute.xlu2 %3295 }
 0x4a1   : > { %v4807_v8 = vsel %vm1123_vm5, %v5678_v17, %v3193_v10  ;;  %v3298_v12 = vunpack.i.h.bf16 %v4802_v30  ;;  %v3297_v21 = vunpack.i.l.bf16 %v4802_v30 }
 0x4a3   : > { %v1812_v13 = vsel %vm5737_vm11, %v3297_v21, %v3298_v12 }
 0x4a7   : > { %v4813_v24 = vpop.permute.xlu0 %3275 }
 0x4a8   : > { %v3278_v22 = vunpack.i.h.bf16 %v4813_v24  ;;  %v3306_v4 = vpop.permute.xlu2 %3305 }
 0x4a9   : > { %v3308_v16 = vunpack.i.h.bf16 %v3306_v4  ;;  %v3307_v26 = vunpack.i.l.bf16 %v3306_v4 }
 0x4aa   : > { %v1811_v49 = vsel %vm5738_vm12, %v3278_v22, %v3297_v21  ;;  %v3332_v21 = vunpack.i.l.bf16 %v4786_v37 }
 0x4ab   : > { %v3379_v48 = vpack.i.bf16 %v1812_v13, %v1811_v49  ;;  %v1781_v10 = vsel %vm673_vm6, %v3253_v32, %v3307_v26  ;;  %v1782_v50 = vsel %vm673_vm6, %v3307_v26, %v3308_v16 }
 0x4ac   : > { %v3389_v17 = vpack.i.bf16 %v1782_v50, %v1781_v10  ;;  %v1715_v13 = vsel %vm844_vm15, %v3332_v21, %v3333_v43  ;;  %v1503_v50 = vmul.f32 %v2817_v63, %v4511_v5 }
 0x4ad   : > { %3380 = vrot.lane.b32.xlu1 %v3379_v48, %s3624_s9  ;;  %v3424_v10 = vpack.i.bf16 %v1715_v13, %v3332_v21  ;;  %v1645_v21 = vsel %vm423_vm13, %v3203_v38, %v3267_v53 }
 0x4af   : > { %v4822_v45 = vpop.permute.xlu0 %1675 }
 0x4b0   : > { %v4830_v22 = vpop.permute.xlu2 %3320 }
 0x4b5   : > { %3390 = vrot.lane.b32.xlu1 %v3389_v17, %s3624_s9 }
 0x4b7   : > { %v3301_v1 = vpop.permute.xlu0 %3300 }
 0x4b8   : > { %v3303_v48 = vunpack.i.h.bf16 %v3301_v1  ;;  %v4851_v13 = vpop.permute.xlu2 %3335 }
 0x4bd   : > { %3405 = vrot.lane.b32.xlu1 %v3404_v59, %s3624_s9  ;;  %v3323_v59 = vunpack.i.h.bf16 %v4830_v22 }
 0x4bf   : > { %v3311_v4 = vpop.permute.xlu0 %3310  ;;  %v1749_v63 = vsel %vm459_vm1, %v3323_v59, %v4503_v56  ;;  %v3338_v56 = vunpack.i.h.bf16 %v4851_v13 }
 0x4c0   : > { %v3313_v49 = vunpack.i.h.bf16 %v3311_v4  ;;  %v3312_v17 = vunpack.i.l.bf16 %v3311_v4 }
 0x4c2   : > { %v3339_v26 = vpack.i.bf16 %v1503_v50, %v3313_v49  ;;  %v1771_v32 = vsel %vm5739_vm0, %v3312_v17, %v3313_v49  ;;  %v3374_v50 = vpack.i.bf16 %v4822_v45, %v1645_v21  ;;  %v3414_v49 = vpack.i.bf16 %v3308_v16, %v1749_v63 }
 0x4c3   : > { %v3399_v0 = vpack.i.bf16 %v3303_v48, %v1771_v32 }
 0x4c4   : > { %3340 = vrot.lane.b32.xlu2 %v3339_v26, %s3624_s9  ;;  %v3302_v26 = vunpack.i.l.bf16 %v3301_v1 }
 0x4c5   : > { %3400 = vrot.lane.b32.xlu0 %v3399_v0, %s3624_s9  ;;  %3425 = vrot.lane.b32.xlu1 %v3424_v10, %s3605_s18 }
 0x4c6   : > { %v1800_v38 = vsel %vm423_vm13, %v3268_v23, %v3302_v26  ;;  %v1801_v21 = vsel %vm423_vm13, %v3302_v26, %v3303_v48  ;;  %v3288_v48 = vunpack.i.h.bf16 %v4788_v33  ;;  %vm5741_vm13 = vmmov %vm5739_vm0 }
 0x4c7   : > { %v3326_v9 = vpop.permute.xlu0 %3325 }
 0x4c8   : > { %v3328_v4 = vunpack.i.h.bf16 %v3326_v9  ;;  %v3327_v10 = vunpack.i.l.bf16 %v3326_v9  ;;  %v3384_v9 = vpack.i.bf16 %v1801_v21, %v1800_v38  ;;  %v3252_v21 = vunpack.i.l.bf16 %v4794_v46 }
 0x4ca   : > { %v1727_v0 = vsel %vm865_vm7, %v3328_v4, %v4610_v57  ;;  %v2892_v57 = vunpack.i.h.bf16 %v4001_v35  ;;  %v1726_v1 = vsel %vm865_vm7, %v3327_v10, %v3328_v4  ;;  %v3223_v35 = vunpack.i.h.bf16 %v4666_v25 }
 0x4cb   : > { %v3434_v32 = vpack.i.bf16 %v4748_v36, %v1727_v0  ;;  %v1705_v36 = vsel %vm5740_vm2, %v3338_v56, %v4621_v51  ;;  %v3258_v0 = vunpack.i.h.bf16 %v4688_v62  ;;  %v3262_v51 = vunpack.i.l.bf16 %v4764_v58 }
 0x4cc   : > { %3375 = vrot.lane.b32.xlu2 %v3374_v50, %s3605_s18  ;;  %v1666_v16 = vsel %vm751_vm3, %v2892_v57, %v3282_v29  ;;  %v3419_v50 = vpack.i.bf16 %v1726_v1, %v3327_v10  ;;  %v3287_v29 = vunpack.i.l.bf16 %v4788_v33  ;;  %v1770_v4 = vsel %vm5741_vm13, %v3223_v35, %v3312_v17 }
 0x4cd   : > { %3415 = vrot.lane.b32.xlu0 %v3414_v49, %s3624_s9  ;;  %3435 = vrot.lane.b32.xlu1 %v3434_v32, %s3605_s18  ;;  %v3449_v63 = vpack.i.bf16 %v1666_v16, %v1705_v36  ;;  %v3257_v49 = vunpack.i.l.bf16 %v4688_v62  ;;  %v1637_v62 = vsel %vm432_vm14, %v3258_v0, %v3262_v51  ;;  %vm5742_vm3 = vcmask 785408  }
 0x4ce   : > { %v1678_v25 = vsel %vm5742_vm3, %v3288_v48, %v4822_v45  ;;  %vm5743_vm7 = vmmov %vm5742_vm3  ;;  %v3394_v10 = vpack.i.bf16 %v1770_v4, %v3298_v12  ;;  %v3322_v33 = vunpack.i.l.bf16 %v4830_v22  ;;  %v3277_v17 = vunpack.i.l.bf16 %v4813_v24 }
 0x4cf   : > { %v1636_v26 = vsel %vm432_vm14, %v3257_v49, %v3258_v0  ;;  %v1677_v32 = vsel %vm5743_vm7, %v3287_v29, %v3288_v48  ;;  %v3273_v45 = vunpack.i.h.bf16 %v4784_v11  ;;  %v3272_v57 = vunpack.i.l.bf16 %v4784_v11  ;;  %vm5744_vm14 = vmmov %vm5737_vm11 }
 0x4d0   : > { %v3464_v23 = vpack.i.bf16 %v1637_v62, %v1636_v26  ;;  %v3444_v38 = vpack.i.bf16 %v1678_v25, %v1677_v32  ;;  %v1748_v30 = vsel %vm459_vm1, %v3322_v33, %v3323_v59  ;;  %v1626_v24 = vsel %vm673_vm6, %v3248_v31, %v3252_v21  ;;  %vm5746_vm1 = vmmov %vm5740_vm2 }
 0x4d1   : > { %v1656_v12 = vsel %vm5744_vm14, %v3273_v45, %v3277_v17  ;;  %v1655_v22 = vsel %vm5745_vm10, %v3272_v57, %v3273_v45  ;;  %v3409_v36 = vpack.i.bf16 %v1748_v30, %v3208_v34  ;;  %v3469_v16 = vpack.i.bf16 %v3277_v17, %v1626_v24 }
 0x4d2   : > { %v3459_v1 = vpack.i.bf16 %v1656_v12, %v1655_v22  ;;  %v3243_v11 = vunpack.i.h.bf16 %v4677_v28  ;;  %v3242_v59 = vunpack.i.l.bf16 %v4677_v28  ;;  %vm5747_vm6 = vcmask 1014784  }
 0x4d3   : > { %vm5748_vm4 = vmmov %vm5747_vm6  ;;  %v3233_v0 = vunpack.i.h.bf16 %v4608_v19  ;;  %vm5749_vm11 = vcmask 1022976   ;;  %v3157_v22 = vunpack.i.l.bf16 %v4376_v2 }
 0x4d4   : > { %3385 = vrot.lane.b32.xlu2 %v3384_v9, %s3624_s9  ;;  %v3337_v9 = vunpack.i.l.bf16 %v4851_v13  ;;  %v1614_v27 = vsel %vm5747_vm6, %v2862_v7, %v3242_v59  ;;  %v1615_v34 = vsel %vm5748_vm4, %v3242_v59, %v3243_v11  ;;  %vm5750_vm12 = vmmov %vm5749_vm11 }
 0x4d5   : > { %3420 = vrot.lane.b32.xlu0 %v3419_v50, %s3605_s18  ;;  %3450 = vrot.lane.b32.xlu1 %v3449_v63, %s3605_s18  ;;  %v3474_v63 = vpack.i.bf16 %v1615_v34, %v1614_v27  ;;  %v3237_v50 = vunpack.i.l.bf16 %v4755_v39  ;;  %v4925_v49 = vpop.permute.xlu0 %3345  ;;  %v1603_v48 = vsel %vm5750_vm12, %v3232_v3, %v3233_v0 }
 0x4d6   : > { %v1704_v31 = vsel %vm5746_vm1, %v3337_v9, %v3338_v56  ;;  %v1716_v56 = vsel %vm844_vm15, %v3333_v43, %v4601_v14 }
 0x4d7   : > { %v3429_v13 = vpack.i.bf16 %v1704_v31, %v3337_v9  ;;  %v1604_v35 = vsel %vm5749_vm11, %v3233_v0, %v3237_v50  ;;  %v3439_v29 = vpack.i.bf16 %v1716_v56, %v4751_v20  ;;  %v4952_v20 = vpop.permute.xlu1 %3370 }
 0x4d8   : > { %v3479_v4 = vpack.i.bf16 %v1604_v35, %v1603_v48 }
 0x4dc   : > { %3395 = vrot.lane.b32.xlu2 %v3394_v10, %s3624_s9 }
 0x4dd   : > { %3445 = vrot.lane.b32.xlu0 %v3444_v38, %s3605_s18  ;;  %3465 = vrot.lane.b32.xlu1 %v3464_v23, %s3605_s18  ;;  %v4938_v19 = vpop.permute.xlu0 %3350 }
 0x4de   : > { %v3353_v26 = vunpack.i.h.bf16 %v4938_v19  ;;  %v3352_v37 = vunpack.i.l.bf16 %v4938_v19 }
 0x4e0   : > { %v1882_v14 = vsel %vm1123_vm5, %v3352_v37, %v3353_v26 }
 0x4e1   : > { %v3489_v43 = vpack.i.bf16 %v1882_v14, %v3352_v37  ;;  %v5753_v14 = vunpack.i.h.bf16 %v4627_v18 }
 0x4e4   : > { %3410 = vrot.lane.b32.xlu2 %v3409_v36, %s3624_s9  ;;  %v5751_v36 = vunpack.i.h.bf16 %v4717_v41  ;;  %v1357_v41 = vmul.f32 0.0, %v3157_v22 }
 0x4e5   : > { %3460 = vrot.lane.b32.xlu0 %v3459_v1, %s3605_s18  ;;  %3470 = vrot.lane.b32.xlu1 %v3469_v16, %s3605_s18  ;;  %v4957_v38 = vpop.permute.xlu0 %3360 }
 0x4ec   : > { %3430 = vrot.lane.b32.xlu2 %v3429_v13, %s3605_s18 }
 0x4ed   : > { %3475 = vrot.lane.b32.xlu0 %v3474_v63, %s3605_s18  ;;  %v4968_v45 = vpop.permute.xlu0 %3365 }
 0x4f4   : > { %3440 = vrot.lane.b32.xlu2 %v3439_v29, %s3605_s18 }
 0x4f5   : > { %3480 = vrot.lane.b32.xlu0 %v3479_v4, %s3605_s18 }
 0x4fc   : > { %3455 = vrot.lane.b32.xlu2 %v4732_v15, %s3605_s18 }
 0x4fd   : > { %3485 = vrot.lane.b32.xlu0 %v3484_v44, %s3605_s18 }
 0x504   : > { %3490 = vrot.lane.b32.xlu2 %v3489_v43, %s3605_s18 }
 0x51e   : > { %v4954_v62 = vpop.permute.xlu2 %3340 }
 0x51f   : > { %v3381_v25 = vpop.permute.xlu1 %3380  ;;  %v3343_v48 = vunpack.i.h.bf16 %v4954_v62  ;;  %v3342_v39 = vunpack.i.l.bf16 %v4954_v62  ;;  %v3373_v62 = vunpack.i.h.bf16 %v4952_v20 }
 0x520   : > { %v3383_v32 = vunpack.i.h.bf16 %v3381_v25  ;;  %v3382_v10 = vunpack.i.l.bf16 %v3381_v25 }
 0x521   : > { %v3539_v43 = vpack.i.bf16 %v3343_v48, %v5753_v14 }
 0x522   : > { %v1886_v15 = vsel %vm1123_vm5, %v3382_v10, %v3383_v32 }
 0x523   : > { %v3519_v23 = vpack.i.bf16 %v1886_v15, %v3382_v10 }
 0x525   : > { %3520 = vrot.lane.b32.xlu0 %v3519_v23, %s3605_s18 }
 0x526   : > { %v4960_v61 = vpop.permute.xlu2 %3375 }
 0x527   : > { %v4962_v55 = vpop.permute.xlu1 %3390 }
 0x528   : > { %v3392_v44 = vunpack.i.l.bf16 %v4962_v55  ;;  %v3393_v9 = vunpack.i.h.bf16 %v4962_v55 }
 0x52a   : > { %v3499_v33 = vpack.i.bf16 %v3392_v44, %v3267_v53  ;;  %v1353_v53 = vsel %vm375_vm9, %v3157_v22, %v5752_v40  ;;  %vm2527_vm9 = vcmask 523264  }
 0x52b   : > { %v1358_v7 = vmul.f32 %v1353_v53, %v4511_v5 }
 0x52c   : > { %3500 = vrot.lane.b32.xlu1 %v3499_v33, %s3605_s18 }
 0x52d   : > { %v3529_v3 = vpack.i.bf16 %v1358_v7, %v1357_v41 }
 0x52e   : > { %v3386_v17 = vpop.permute.xlu2 %3385 }
 0x52f   : > { %v3388_v57 = vunpack.i.h.bf16 %v3386_v17  ;;  %v3387_v30 = vunpack.i.l.bf16 %v3386_v17  ;;  %v4970_v12 = vpop.permute.xlu1 %3405 }
 0x530   : > { %v3407_v35 = vunpack.i.l.bf16 %v4970_v12  ;;  %v3408_v15 = vunpack.i.h.bf16 %v4970_v12  ;;  %v3377_v12 = vunpack.i.l.bf16 %v4960_v61 }
 0x531   : > { %v1884_v24 = vsel %vm1123_vm5, %v3387_v30, %v3388_v57  ;;  %v3494_v1 = vpack.i.bf16 %v3387_v30, %v5751_v36  ;;  %v3362_v36 = vunpack.i.l.bf16 %v4957_v38 }
 0x532   : > { %v3524_v16 = vpack.i.bf16 %v4619_v6, %v1884_v24  ;;  %v1880_v6 = vsel %vm1123_vm5, %v3392_v44, %v3393_v9  ;;  %v3509_v37 = vpack.i.bf16 %v3407_v35, %v3252_v21  ;;  %v1876_v21 = vsel %vm1123_vm5, %v3407_v35, %v3408_v15 }
 0x533   : > { %3495 = vrot.lane.b32.xlu2 %v3494_v1, %s3605_s18  ;;  %v3363_v24 = vunpack.i.h.bf16 %v4957_v38  ;;  %v3357_v38 = vunpack.i.l.bf16 %v4791_v47 }
 0x534   : > { %3525 = vrot.lane.b32.xlu0 %v3524_v16, %s3605_s18 }
 0x536   : > { %v3396_v59 = vpop.permute.xlu2 %3395 }
 0x537   : > { %v3398_v31 = vunpack.i.h.bf16 %v3396_v59  ;;  %v3397_v27 = vunpack.i.l.bf16 %v3396_v59  ;;  %v4984_v34 = vpop.permute.xlu0 %3400  ;;  %v4986_v13 = vpop.permute.xlu1 %3425 }
 0x538   : > { %v3403_v5 = vunpack.i.h.bf16 %v4984_v34  ;;  %v3402_v56 = vunpack.i.l.bf16 %v4984_v34  ;;  %v3428_v44 = vunpack.i.h.bf16 %v4986_v13  ;;  %v3427_v17 = vunpack.i.l.bf16 %v4986_v13 }
 0x539   : > { %v3504_v2 = vpack.i.bf16 %v3398_v31, %v3262_v51  ;;  %v1887_v63 = vsel %vm1123_vm5, %v3383_v32, %v3397_v27  ;;  %v2073_v13 = vsel %vm561_vm8, %v3362_v36, %v3363_v24 }
 0x53a   : > { %v3544_v0 = vpack.i.bf16 %v1887_v63, %v1880_v6  ;;  %v1878_v51 = vsel %vm1123_vm5, %v3398_v31, %v3402_v56  ;;  %v1885_v29 = vsel %vm1123_vm5, %v3388_v57, %v3403_v5  ;;  %v2077_v28 = vsel %vm561_vm8, %v3427_v17, %v3428_v44 }
 0x53b   : > { %3505 = vrot.lane.b32.xlu1 %v3504_v2, %s3605_s18  ;;  %v3549_v25 = vpack.i.bf16 %v1885_v29, %v1878_v51  ;;  %v3534_v29 = vpack.i.bf16 %v3357_v38, %v3237_v50 }
 0x53c   : > { %3545 = vrot.lane.b32.xlu2 %v3544_v0, %s3605_s18  ;;  %3530 = vrot.lane.b32.xlu0 %v3529_v3, %s3605_s18 }
 0x53e   : > { %v3411_v58 = vpop.permute.xlu2 %3410 }
 0x53f   : > { %v5005_v4 = vpop.permute.xlu0 %3415  ;;  %v3412_v32 = vunpack.i.l.bf16 %v3411_v58  ;;  %v3436_v10 = vpop.permute.xlu1 %3435  ;;  %v3413_v23 = vunpack.i.h.bf16 %v3411_v58 }
 0x540   : > { %v3437_v57 = vunpack.i.l.bf16 %v3436_v10  ;;  %v3418_v59 = vunpack.i.h.bf16 %v5005_v4  ;;  %v3417_v7 = vunpack.i.l.bf16 %v5005_v4  ;;  %v3438_v6 = vunpack.i.h.bf16 %v3436_v10 }
 0x541   : > { %v1883_v46 = vsel %vm1123_vm5, %v3353_v26, %v3412_v32  ;;  %v3514_v19 = vpack.i.bf16 %v3413_v23, %v3243_v11  ;;  %v5754_v11 = vpack.i.bf16 %v4807_v8, %v4800_v52 }
 0x542   : > { %v3554_v26 = vpack.i.bf16 %v1883_v46, %v1876_v21  ;;  %v1874_v5 = vsel %vm1123_vm5, %v3413_v23, %v3417_v7  ;;  %v1881_v52 = vsel %vm1123_vm5, %v3393_v9, %v3418_v59  ;;  %v3348_v9 = vunpack.i.h.bf16 %v4925_v49 }
 0x543   : > { %3510 = vrot.lane.b32.xlu1 %v3509_v37, %s3605_s18  ;;  %v3559_v37 = vpack.i.bf16 %v1881_v52, %v1874_v5 }
 0x544   : > { %3550 = vrot.lane.b32.xlu2 %v3549_v25, %s3605_s18  ;;  %3540 = vrot.lane.b32.xlu0 %v3539_v43, %s3605_s18  ;;  %v3347_v43 = vunpack.i.l.bf16 %v4925_v49  ;;  %v1877_v25 = vsel %vm1123_vm5, %v3408_v15, %v3348_v9 }
 0x546   : > { %v3431_v18 = vpop.permute.xlu2 %3430  ;;  %v1870_v49 = vsel %vm1123_vm5, %v3343_v48, %v3347_v43  ;;  %v1871_v59 = vsel %vm1123_vm5, %v3347_v43, %v4606_v60 }
 0x547   : > { %v3421_v33 = vpop.permute.xlu0 %3420  ;;  %v3433_v1 = vunpack.i.h.bf16 %v3431_v18  ;;  %v3432_v16 = vunpack.i.l.bf16 %v3431_v18  ;;  %v3451_v31 = vpop.permute.xlu1 %3450  ;;  %v1879_v18 = vsel %vm1123_vm5, %v3402_v56, %v3342_v39  ;;  %v3372_v56 = vunpack.i.l.bf16 %v4952_v20 }
 0x548   : > { %v3423_v30 = vunpack.i.h.bf16 %v3421_v33  ;;  %v3422_v22 = vunpack.i.l.bf16 %v3421_v33  ;;  %v3452_v2 = vunpack.i.l.bf16 %v3451_v31  ;;  %v3453_v32 = vunpack.i.h.bf16 %v3451_v31 }
 0x549   : > { %v2075_v41 = vsel %vm561_vm8, %v3432_v16, %v3433_v1 }
 0x54a   : > { %v2079_v40 = vsel %vm561_vm8, %v3422_v22, %v3423_v30  ;;  %v2080_v53 = vsel %vm561_vm8, %v3423_v30, %v3437_v57  ;;  %v2076_v14 = vsel %vm561_vm8, %v3433_v1, %v3452_v2  ;;  %v5755_v57 = vunpack.i.h.bf16 %v4791_v47 }
 0x54b   : > { %2149 = vmatpush.msra.mxu2 %v2079_v40  ;;  %2189 = vmatpush.msrb.mxu0 %v2080_v53  ;;  %v3569_v30 = vpack.i.bf16 %v1877_v25, %v1870_v49  ;;  %v3192_v1 = vunpack.i.l.bf16 %v4623_v54  ;;  %v5756_v40 = vunpack.i.h.bf16 %v4646_v42  ;;  %v3368_v49 = vunpack.i.h.bf16 %v4968_v45 }
 0x54c   : > { %3515 = vrot.lane.b32.xlu1 %v3514_v19, %s3605_s18  ;;  %3555 = vrot.lane.b32.xlu2 %v3554_v26, %s3605_s18  ;;  %v1872_v34 = vsel %vm1123_vm5, %v3357_v38, %v5755_v57  ;;  %v2063_v26 = vsel %vm561_vm8, %v3373_v62, %v3377_v12 }
 0x54d   : > { %3580 = vrot.lane.b32.xlu0 %v5754_v11, %s3605_s18  ;;  %2150 = vmatpush.msra.mxu2 %v2077_v28  ;;  %v3564_v48 = vpack.i.bf16 %v1879_v18, %v1872_v34  ;;  %v1875_v16 = vsel %vm1123_vm5, %v3417_v7, %v3192_v1 }
 0x54e   : > { %v3441_v27 = vpop.permute.xlu2 %3440  ;;  %v3574_v53 = vpack.i.bf16 %v1875_v16, %v5756_v40 }
 0x54f   : > { %v3443_v63 = vunpack.i.h.bf16 %v3441_v27  ;;  %v3442_v0 = vunpack.i.l.bf16 %v3441_v27  ;;  %v3446_v3 = vpop.permute.xlu0 %3445  ;;  %2151 = vmatpush.msra.mxu2 %v2075_v41  ;;  %v5066_v21 = vpop.permute.xlu1 %3465 }
 0x550   : > { %v3448_v8 = vunpack.i.h.bf16 %v3446_v3  ;;  %v3447_v35 = vunpack.i.l.bf16 %v3446_v3  ;;  %v3468_v36 = vunpack.i.h.bf16 %v5066_v21  ;;  %v3467_v19 = vunpack.i.l.bf16 %v5066_v21 }
 0x551   : > { %2152 = vmatpush.msra.mxu2 %v2073_v13  ;;  %v2078_v58 = vsel %vm561_vm8, %v3428_v44, %v3443_v63  ;;  %v2071_v51 = vsel %vm561_vm8, %v3438_v6, %v3442_v0  ;;  %v2072_v47 = vsel %vm561_vm8, %v3442_v0, %v3372_v56 }
 0x552   : > { %2190 = vmatpush.msrb.mxu0 %v2078_v58  ;;  %v2069_v55 = vsel %vm561_vm8, %v3447_v35, %v3448_v8 }
 0x553   : > { %2153 = vmatpush.msra.mxu2 %v2071_v51 }
 0x554   : > { %3535 = vrot.lane.b32.xlu1 %v3534_v29, %s3605_s18  ;;  %2191 = vmatpush.msrb.mxu0 %v2076_v14 }
 0x555   : > { %3560 = vrot.lane.b32.xlu2 %v3559_v37, %s3605_s18  ;;  %2154 = vmatpush.msra.mxu2 %v2069_v55 }
 0x556   : > { %v3456_v50 = vpop.permute.xlu2 %3455 }
 0x557   : > { %v3458_v10 = vunpack.i.h.bf16 %v3456_v50  ;;  %v3457_v23 = vunpack.i.l.bf16 %v3456_v50  ;;  %v3461_v46 = vpop.permute.xlu0 %3460  ;;  %v5105_v11 = vpop.permute.xlu1 %3470 }
 0x558   : > { %v3463_v44 = vunpack.i.h.bf16 %v3461_v46  ;;  %v3462_v33 = vunpack.i.l.bf16 %v3461_v46  ;;  %v3473_v7 = vunpack.i.h.bf16 %v5105_v11  ;;  %v3472_v58 = vunpack.i.l.bf16 %v5105_v11  ;;  %v2247_v11 = vld [vmem:[%s5621_s5 + $0x70] sm:$0xff] }
 0x559   : > { %v2067_v15 = vsel %vm561_vm8, %v3453_v32, %v3457_v23  ;;  %v2074_v17 = vsel %vm561_vm8, %v3363_v24, %v3458_v10  ;;  %v3378_v24 = vunpack.i.h.bf16 %v4960_v61  ;;  %v2061_v61 = vsel %vm561_vm8, %v3467_v19, %v3468_v36 }
 0x55a   : > { %2155 = vmatpush.msra.mxu2 %v2067_v15  ;;  %2192 = vmatpush.msrb.mxu0 %v2074_v17  ;;  %v2065_v22 = vsel %vm561_vm8, %v3462_v33, %v3463_v44  ;;  %v2066_v60 = vsel %vm561_vm8, %v3463_v44, %v3473_v7  ;;  %v5170_v7 = vld [vmem:[%s5619_s3] sm:$0xff] }
 0x55b   : > { %v2070_v20 = vsel %vm561_vm8, %v3448_v8, %v3378_v24 }
 0x55c   : > { %3570 = vrot.lane.b32.xlu1 %v3569_v30, %s3605_s18  ;;  %2156 = vmatpush.msra.mxu2 %v2065_v22 }
 0x55d   : > { %2193 = vmatpush.msrb.mxu0 %v2072_v47  ;;  %3565 = vrot.lane.b32.xlu2 %v3564_v48, %s3605_s18 }
 0x55e   : > { %2157 = vmatpush.msra.mxu2 %v2063_v26  ;;  %v3491_v31 = vpop.permute.xlu2 %3490 }
 0x55f   : > { %2194 = vmatpush.msrb.mxu0 %v2070_v20  ;;  %v5101_v54 = vpop.permute.xlu0 %3475  ;;  %v3493_v51 = vunpack.i.h.bf16 %v3491_v31  ;;  %v3492_v29 = vunpack.i.l.bf16 %v3491_v31 }
 0x560   : > { %2158 = vmatpush.msra.mxu2 %v2061_v61  ;;  %v3478_v37 = vunpack.i.h.bf16 %v5101_v54  ;;  %v3477_v14 = vunpack.i.l.bf16 %v5101_v54  ;;  %v2241_v54 = vld [vmem:[%s5621_s5 + $0x40] sm:$0xff] }
 0x561   : > { %v2093_v57 = vsel %vm561_vm8, %v3492_v29, %v3493_v51 }
 0x562   : > { %v2057_v17 = vsel %vm561_vm8, %v3477_v14, %v3478_v37  ;;  %v2244_v14 = vld [vmem:[%s5621_s5 + $0x58] sm:$0xff] }
 0x564   : > { %1999 = vrot.lane.b32.xlu1 %v1871_v59, %s3605_s18 }
 0x565   : > { %3575 = vrot.lane.b32.xlu2 %v3574_v53, %s3605_s18 }
 0x567   : > { %v5103_v28 = vpop.permute.xlu0 %3480 }
 0x568   : > { %v3483_v32 = vunpack.i.h.bf16 %v5103_v28  ;;  %v3482_v10 = vunpack.i.l.bf16 %v5103_v28  ;;  %v2238_v28 = vld [vmem:[%s5621_s5 + $0x28] sm:$0xff] }
 0x56a   : > { %v2055_v62 = vsel %vm561_vm8, %v3482_v10, %v3483_v32 }
 0x56f   : > { %v5108_v42 = vpop.permute.xlu0 %3485 }
 0x570   : > { %v3488_v56 = vunpack.i.h.bf16 %v5108_v42  ;;  %v3487_v30 = vunpack.i.l.bf16 %v5108_v42  ;;  %v1889_v42 = vld [vmem:[%s5619_s3 + $0x8] sm:$0xff] }
 0x572   : > { %v2051_v31 = vsel %vm561_vm8, %v3487_v30, %v3488_v56 }
 0x58d   : > { %v3496_v4 = vpop.permute.xlu2 %3495 }
 0x58e   : > { %v3497_v38 = vunpack.i.l.bf16 %v3496_v4  ;;  %v3498_v43 = vunpack.i.h.bf16 %v3496_v4 }
 0x590   : > { %v2068_v27 = vsel %vm561_vm8, %v3457_v23, %v3497_v38 }
 0x591   : > { %2195 = vmatpush.msrb.mxu0 %v2068_v27 }
 0x593   : > { %2196 = vmatpush.msrb.mxu0 %v2066_v60 }
 0x596   : > { %v5112_v41 = vpop.permute.xlu2 %3545 }
 0x597   : > { %v3548_v13 = vunpack.i.h.bf16 %v5112_v41  ;;  %v3521_v6 = vpop.permute.xlu0 %3520  ;;  %v3547_v15 = vunpack.i.l.bf16 %v5112_v41 }
 0x598   : > { %v3523_v2 = vunpack.i.h.bf16 %v3521_v6  ;;  %v3522_v63 = vunpack.i.l.bf16 %v3521_v6 }
 0x59a   : > { %v2097_v0 = vsel %vm561_vm8, %v3522_v63, %v3523_v2  ;;  %v2098_v3 = vsel %vm561_vm8, %v3523_v2, %v3548_v13  ;;  %v1890_v63 = vld [vmem:[%s5620_s4] sm:$0xff] }
 0x59b   : > { %2176 = vmatpush.msra.mxu3 %v2097_v0  ;;  %2216 = vmatpush.msrb.mxu1 %v2098_v3  ;;  %v2248_v0 = vld [vmem:[%s5621_s5 + $0x78] sm:$0xff] }
 0x59c   : > { %1893 = vperm.xlu2 %3584, %v1890_v63   ;;  %v2233_v63 = vld [vmem:[%s5621_s5] sm:$0xff] }
 0x59e   : > { %v5117_v5 = vpop.permute.xlu2 %3550  ;;  %v3501_v52 = vpop.permute.xlu1 %3500 }
 0x59f   : > { %v3502_v8 = vunpack.i.l.bf16 %v3501_v52  ;;  %v3553_v39 = vunpack.i.h.bf16 %v5117_v5  ;;  %v3503_v46 = vunpack.i.h.bf16 %v3501_v52  ;;  %v3552_v19 = vunpack.i.l.bf16 %v5117_v5  ;;  %v2246_v5 = vld [vmem:[%s5621_s5 + $0x68] sm:$0xff] }
 0x5a1   : > { %v2064_v35 = vsel %vm561_vm8, %v3377_v12, %v3502_v8  ;;  %v3367_v12 = vunpack.i.l.bf16 %v4968_v45  ;;  %v2091_v48 = vsel %vm561_vm8, %v3503_v46, %v3547_v15  ;;  %v2237_v45 = vld [vmem:[%s5621_s5 + $0x20] sm:$0xff] }
 0x5a2   : > { %2197 = vmatpush.msrb.mxu0 %v2064_v35  ;;  %v2245_v35 = vld [vmem:[%s5621_s5 + $0x60] sm:$0xff] }
 0x5a3   : > { %v2053_v16 = vsel %vm561_vm8, %v3367_v12, %v3368_v49 }
 0x5a6   : > { %v5123_v55 = vpop.permute.xlu2 %3555  ;;  %v3526_v9 = vpop.permute.xlu0 %3525 }
 0x5a7   : > { %v3528_v50 = vunpack.i.h.bf16 %v3526_v9  ;;  %v3527_v25 = vunpack.i.l.bf16 %v3526_v9  ;;  %v3558_v23 = vunpack.i.h.bf16 %v5123_v55  ;;  %v3557_v38 = vunpack.i.l.bf16 %v5123_v55 }
 0x5a9   : > { %v2059_v18 = vsel %vm561_vm8, %v3528_v50, %v3472_v58  ;;  %v2095_v44 = vsel %vm561_vm8, %v3498_v43, %v3527_v25  ;;  %v2096_v33 = vsel %vm561_vm8, %v3527_v25, %v3553_v39  ;;  %v2094_v34 = vsel %vm561_vm8, %v3493_v51, %v3558_v23  ;;  %v2243_v39 = vld [vmem:[%s5621_s5 + $0x50] sm:$0xff]  ;;  %v2242_v50 = vld [vmem:[%s5621_s5 + $0x48] sm:$0xff] }
 0x5aa   : > { %2159 = vmatpush.msra.mxu2 %v2059_v18  ;;  %2177 = vmatpush.msra.mxu3 %v2095_v44 }
 0x5ab   : > { %2217 = vmatpush.msrb.mxu1 %v2096_v33  ;;  %v2240_v33 = vld [vmem:[%s5621_s5 + $0x38] sm:$0xff] }
 0x5ac   : > { %2160 = vmatpush.msra.mxu2 %v2057_v17  ;;  %2178 = vmatpush.msra.mxu3 %v2093_v57  ;;  %v2239_v57 = vld [vmem:[%s5621_s5 + $0x30] sm:$0xff] }
 0x5ad   : > { %2218 = vmatpush.msrb.mxu1 %v2094_v34  ;;  %v3506_v22 = vpop.permute.xlu1 %3505 }
 0x5ae   : > { %v3508_v24 = vunpack.i.h.bf16 %v3506_v22  ;;  %v3507_v47 = vunpack.i.l.bf16 %v3506_v22  ;;  %2161 = vmatpush.msra.mxu2 %v2055_v62  ;;  %2179 = vmatpush.msra.mxu3 %v2091_v48  ;;  %v5149_v26 = vpop.permute.xlu0 %3530 }
 0x5af   : > { %v5151_v1 = vpop.permute.xlu2 %3560  ;;  %v3533_v20 = vunpack.i.h.bf16 %v5149_v26  ;;  %v3532_v61 = vunpack.i.l.bf16 %v5149_v26  ;;  %v2264_v26 = vld [vmem:[%s5621_s5 + $0xf8] sm:$0xff] }
 0x5b0   : > { %v3563_v40 = vunpack.i.h.bf16 %v5151_v1  ;;  %2162 = vmatpush.msra.mxu2 %v2053_v16  ;;  %v2089_v53 = vsel %vm561_vm8, %v3508_v24, %v3552_v19  ;;  %v2062_v59 = vsel %vm561_vm8, %v3468_v36, %v3507_v47  ;;  %v2236_v16 = vld [vmem:[%s5621_s5 + $0x18] sm:$0xff] }
 0x5b1   : > { %2180 = vmatpush.msra.mxu3 %v2089_v53  ;;  %2198 = vmatpush.msrb.mxu0 %v2062_v59  ;;  %v2049_v21 = vsel %vm561_vm8, %v3532_v61, %v3533_v20  ;;  %v2646_v53 = vld [vmem:[%s5621_s5 + $0x168] sm:$0xff]  ;;  %v2235_v59 = vld [vmem:[%s5621_s5 + $0x10] sm:$0xff] }
 0x5b2   : > { %2163 = vmatpush.msra.mxu2 %v2051_v31  ;;  %v2092_v4 = vsel %vm561_vm8, %v3547_v15, %v3563_v40  ;;  %v2263_v40 = vld [vmem:[%s5621_s5 + $0xf0] sm:$0xff] }
 0x5b3   : > { %2219 = vmatpush.msrb.mxu1 %v2092_v4  ;;  %v2262_v4 = vld [vmem:[%s5621_s5 + $0xe8] sm:$0xff] }
 0x5b4   : > { %2164 = vmatpush.msra.mxu2 %v2049_v21  ;;  %v2645_v21 = vld [vmem:[%s5621_s5 + $0x160] sm:$0xff] }
 0x5b5   : > { %v3511_v36 = vpop.permute.xlu1 %3510  ;;  %2165 = vmatmul.f32.vlgmr.msra.gmra.mxu2 %v5170_v7 }
 0x5b6   : > { %v3513_v27 = vunpack.i.h.bf16 %v3511_v36  ;;  %v3512_v60 = vunpack.i.l.bf16 %v3511_v36  ;;  %2265 = vmatpush.msrb.mxu2 %v2248_v0  ;;  %v3541_v52 = vpop.permute.xlu0 %3540  ;;  %v2662_v0 = vld [vmem:[%s5621_s5 + $0x1e8] sm:$0xff] }
 0x5b7   : > { %v5177_v41 = vpop.permute.xlu2 %3565  ;;  %v3542_v23 = vunpack.i.l.bf16 %v3541_v52  ;;  %v3543_v22 = vunpack.i.h.bf16 %v3541_v52  ;;  %v2661_v52 = vld [vmem:[%s5621_s5 + $0x1e0] sm:$0xff] }
 0x5b8   : > { %v3568_v13 = vunpack.i.h.bf16 %v5177_v41  ;;  %v2087_v6 = vsel %vm561_vm8, %v3513_v27, %v3557_v38  ;;  %v2060_v2 = vsel %vm561_vm8, %v3472_v58, %v3512_v60  ;;  %2266 = vmatpush.msrb.mxu2 %v2247_v11  ;;  %v3562_v58 = vunpack.i.l.bf16 %v5151_v1  ;;  %v2261_v27 = vld [vmem:[%s5621_s5 + $0xe0] sm:$0xff]  ;;  %v2644_v60 = vld [vmem:[%s5621_s5 + $0x158] sm:$0xff]  ;;  %v2642_v11 = vld [vmem:[%s5621_s5 + $0x148] sm:$0xff] }
 0x5b9   : > { %2181 = vmatpush.msra.mxu3 %v2087_v6  ;;  %2199 = vmatpush.msrb.mxu0 %v2060_v2  ;;  %v2054_v30 = vsel %vm561_vm8, %v3368_v49, %v3542_v23  ;;  %v2260_v6 = vld [vmem:[%s5621_s5 + $0xd8] sm:$0xff]  ;;  %v2643_v2 = vld [vmem:[%s5621_s5 + $0x150] sm:$0xff] }
 0x5ba   : > { %v2090_v3 = vsel %vm561_vm8, %v3552_v19, %v3568_v13  ;;  %2267 = vmatpush.msrb.mxu2 %v2246_v5  ;;  %v2663_v13 = vld [vmem:[%s5621_s5 + $0x1f0] sm:$0xff]  ;;  %v2680_v5 = vld [vmem:[%s5621_s5 + $0x278] sm:$0xff] }
 0x5bb   : > { %2220 = vmatpush.msrb.mxu1 %v2090_v3  ;;  %v2259_v3 = vld [vmem:[%s5621_s5 + $0xd0] sm:$0xff]  ;;  %v2676_v23 = vld [vmem:[%s5621_s5 + $0x258] sm:$0xff] }
 0x5bc   : > { %2268 = vmatpush.msrb.mxu2 %v2245_v35  ;;  %v2641_v35 = vld [vmem:[%s5621_s5 + $0x140] sm:$0xff] }
 0x5be   : > { %v3516_v8 = vpop.permute.xlu1 %3515  ;;  %2269 = vmatpush.msrb.mxu2 %v2244_v14  ;;  %v2640_v14 = vld [vmem:[%s5621_s5 + $0x138] sm:$0xff] }
 0x5bf   : > { %v3518_v51 = vunpack.i.h.bf16 %v3516_v8  ;;  %v3517_v29 = vunpack.i.l.bf16 %v3516_v8  ;;  %v3576_v25 = vpop.permute.xlu2 %3575  ;;  %v3581_v44 = vpop.permute.xlu0 %3580  ;;  %v2258_v8 = vld [vmem:[%s5621_s5 + $0xc8] sm:$0xff] }
 0x5c0   : > { %2270 = vmatpush.msrb.mxu2 %v2243_v39  ;;  %v3577_v12 = vunpack.i.l.bf16 %v3576_v25  ;;  %v3582_v34 = vunpack.i.l.bf16 %v3581_v44  ;;  %v3578_v48 = vunpack.i.h.bf16 %v3576_v25  ;;  %v3583_v47 = vunpack.i.h.bf16 %v3581_v44  ;;  %v2256_v39 = vld [vmem:[%s5621_s5 + $0xb8] sm:$0xff]  ;;  %v2677_v25 = vld [vmem:[%s5621_s5 + $0x260] sm:$0xff] }
 0x5c1   : > { %v2085_v9 = vsel %vm561_vm8, %v3518_v51, %v3562_v58  ;;  %v2058_v43 = vsel %vm561_vm8, %v3478_v37, %v3517_v29  ;;  %v3567_v37 = vunpack.i.l.bf16 %v5177_v41  ;;  %v2234_v41 = vld [vmem:[%s5621_s5 + $0x8] sm:$0xff]  ;;  %v2660_v51 = vld [vmem:[%s5621_s5 + $0x1d8] sm:$0xff]  ;;  %v2257_v29 = vld [vmem:[%s5621_s5 + $0xc0] sm:$0xff] }
 0x5c2   : > { %2182 = vmatpush.msra.mxu3 %v2085_v9  ;;  %2200 = vmatpush.msrb.mxu0 %v2058_v43  ;;  %v2050_v24 = vsel %vm561_vm8, %v3533_v20, %v3582_v34  ;;  %v2647_v20 = vld [vmem:[%s5621_s5 + $0x170] sm:$0xff]  ;;  %v2086_v55 = vsel %vm561_vm8, %v3562_v58, %v3578_v48  ;;  %v2678_v9 = vld [vmem:[%s5621_s5 + $0x268] sm:$0xff]  ;;  %v2637_v44 = vld [vmem:[%s5621_s5 + $0x120] sm:$0xff] }
 0x5c3   : > { %2271 = vmatpush.msrb.mxu2 %v2242_v50  ;;  %v2084_v31 = vsel %vm561_vm8, %v3567_v37, %v3583_v47  ;;  %v2679_v58 = vld [vmem:[%s5621_s5 + $0x270] sm:$0xff]  ;;  %v2653_v48 = vld [vmem:[%s5621_s5 + $0x1a0] sm:$0xff]  ;;  %v2712_v47 = vld [vmem:[%s5621_s5 + $0x378] sm:$0xff] }
 0x5c4   : > { %v2659_v43 = vld [vmem:[%s5621_s5 + $0x1d0] sm:$0xff] }
 0x5c5   : > { %2272 = vmatpush.msrb.mxu2 %v2241_v54  ;;  %v2639_v50 = vld [vmem:[%s5621_s5 + $0x130] sm:$0xff] }
 0x5c6   : > { %v3536_v10 = vpop.permute.xlu1 %3535  ;;  %v2255_v54 = vld [vmem:[%s5621_s5 + $0xb0] sm:$0xff] }
 0x5c7   : > { %v3538_v46 = vunpack.i.h.bf16 %v3536_v10  ;;  %v3537_v18 = vunpack.i.l.bf16 %v3536_v10  ;;  %2273 = vmatpush.msrb.mxu2 %v2240_v33  ;;  %v2658_v10 = vld [vmem:[%s5621_s5 + $0x1c8] sm:$0xff]  ;;  %v2675_v33 = vld [vmem:[%s5621_s5 + $0x250] sm:$0xff] }
 0x5c8   : > { %v2655_v34 = vld [vmem:[%s5621_s5 + $0x1b0] sm:$0xff] }
 0x5c9   : > { %v2083_v15 = vsel %vm561_vm8, %v3538_v46, %v3567_v37  ;;  %v2056_v17 = vsel %vm561_vm8, %v3483_v32, %v3537_v18  ;;  %v2052_v32 = vsel %vm561_vm8, %v3488_v56, %v3577_v12  ;;  %2274 = vmatpush.msrb.mxu2 %v2239_v57  ;;  %v2648_v56 = vld [vmem:[%s5621_s5 + $0x178] sm:$0xff]  ;;  %v2638_v37 = vld [vmem:[%s5621_s5 + $0x128] sm:$0xff]  ;;  %v2657_v46 = vld [vmem:[%s5621_s5 + $0x1c0] sm:$0xff] }
 0x5ca   : > { %2183 = vmatpush.msra.mxu3 %v2083_v15  ;;  %2201 = vmatpush.msrb.mxu0 %v2056_v17  ;;  %v2254_v18 = vld [vmem:[%s5621_s5 + $0xa8] sm:$0xff]  ;;  %v2656_v12 = vld [vmem:[%s5621_s5 + $0x1b8] sm:$0xff]  ;;  %v2253_v15 = vld [vmem:[%s5621_s5 + $0xa0] sm:$0xff] }
 0x5cb   : > { %2275 = vmatpush.msrb.mxu2 %v2238_v28  ;;  %v2636_v17 = vld [vmem:[%s5621_s5 + $0x118] sm:$0xff]  ;;  %v2674_v57 = vld [vmem:[%s5621_s5 + $0x248] sm:$0xff]  ;;  %v2635_v28 = vld [vmem:[%s5621_s5 + $0x110] sm:$0xff] }
 0x5cc   : > { %2202 = vmatpush.msrb.mxu0 %v2054_v30  ;;  %v2252_v30 = vld [vmem:[%s5621_s5 + $0x98] sm:$0xff] }
 0x5cd   : > { %2276 = vmatpush.msrb.mxu2 %v2237_v45  ;;  %v2634_v45 = vld [vmem:[%s5621_s5 + $0x108] sm:$0xff] }
 0x5ce   : > { %v3571_v62 = vpop.permute.xlu1 %3570  ;;  %2203 = vmatpush.msrb.mxu0 %v2052_v32  ;;  %v2673_v32 = vld [vmem:[%s5621_s5 + $0x240] sm:$0xff] }
 0x5cf   : > { %v3573_v49 = vunpack.i.h.bf16 %v3571_v62  ;;  %v3572_v19 = vunpack.i.l.bf16 %v3571_v62  ;;  %2277 = vmatpush.msrb.mxu2 %v2236_v16  ;;  %v2251_v62 = vld [vmem:[%s5621_s5 + $0x90] sm:$0xff]  ;;  %v2694_v16 = vld [vmem:[%s5621_s5 + $0x2e8] sm:$0xff] }
 0x5d0   : > { %2204 = vmatpush.msrb.mxu0 %v2050_v24  ;;  %v2652_v24 = vld [vmem:[%s5621_s5 + $0x198] sm:$0xff] }
 0x5d1   : > { %v2081_v1 = vsel %vm561_vm8, %v3543_v22, %v3572_v19  ;;  %v2088_v61 = vsel %vm561_vm8, %v3557_v38, %v3573_v49  ;;  %2205 = vmatmul.f32.vlgmr.msrb.gmra.mxu0 %v5170_v7  ;;  %v2664_v38 = vld [vmem:[%s5621_s5 + $0x1f8] sm:$0xff]  ;;  %2278 = vmatpush.msrb.mxu2 %v2235_v59  ;;  %v2654_v22 = vld [vmem:[%s5621_s5 + $0x1a8] sm:$0xff]  ;;  %v2693_v59 = vld [vmem:[%s5621_s5 + $0x2e0] sm:$0xff] }
 0x5d2   : > { %2184 = vmatpush.msra.mxu3 %v2081_v1  ;;  %2221 = vmatpush.msrb.mxu1 %v2088_v61  ;;  %v2250_v49 = vld [vmem:[%s5621_s5 + $0x88] sm:$0xff]  ;;  %v2651_v1 = vld [vmem:[%s5621_s5 + $0x190] sm:$0xff] }
 0x5d3   : > { %2185 = vmatmul.f32.vlgmr.msra.gmra.mxu3 %v1889_v42  ;;  %2338 = vmatpush.msra.mxu0 %v2648_v56  ;;  %v2696_v56 = vld [vmem:[%s5621_s5 + $0x2f8] sm:$0xff]  ;;  %v2695_v61 = vld [vmem:[%s5621_s5 + $0x2f0] sm:$0xff] }
 0x5d4   : > { %2222 = vmatpush.msrb.mxu1 %v2086_v55  ;;  %2285 = vmatpush.msrb.mxu3 %v2264_v26  ;;  %v2711_v26 = vld [vmem:[%s5621_s5 + $0x370] sm:$0xff]  ;;  %v2710_v55 = vld [vmem:[%s5621_s5 + $0x368] sm:$0xff] }
 0x5d5   : > { %2339 = vmatpush.msra.mxu0 %v2647_v20  ;;  %2279 = vmatpush.msrb.mxu2 %v2234_v41  ;;  %v2650_v20 = vld [vmem:[%s5621_s5 + $0x188] sm:$0xff] }
 0x5d6   : > { %v2000_v7 = vpop.permute.xlu1 %1999  ;;  %2223 = vmatpush.msrb.mxu1 %v2084_v31  ;;  %2286 = vmatpush.msrb.mxu3 %v2263_v40  ;;  %v2649_v40 = vld [vmem:[%s5621_s5 + $0x180] sm:$0xff]  ;;  %v2690_v41 = vld [vmem:[%s5621_s5 + $0x2c8] sm:$0xff] }
 0x5d7   : > { %v2082_v36 = vsel %vm561_vm8, %v3572_v19, %v2000_v7  ;;  %2340 = vmatpush.msra.mxu0 %v2646_v53  ;;  %2280 = vmatpush.msrb.mxu2 %v2233_v63  ;;  %v2633_v19 = vld [vmem:[%s5621_s5 + $0x100] sm:$0xff]  ;;  %v2728_v53 = vld [vmem:[%s5621_s5 + $0x3f8] sm:$0xff] }
 0x5d8   : > { %2224 = vmatpush.msrb.mxu1 %v2082_v36  ;;  %2287 = vmatpush.msrb.mxu3 %v2262_v4  ;;  %v2709_v31 = vld [vmem:[%s5621_s5 + $0x360] sm:$0xff]  ;;  %v2727_v4 = vld [vmem:[%s5621_s5 + $0x3f0] sm:$0xff]  ;;  %v2692_v7 = vld [vmem:[%s5621_s5 + $0x2d8] sm:$0xff] }
 0x5d9   : > { %2225 = vmatmul.f32.vlgmr.msrb.gmra.mxu1 %v1889_v42  ;;  %2341 = vmatpush.msra.mxu0 %v2645_v21  ;;  %v2249_v42 = vld [vmem:[%s5621_s5 + $0x80] sm:$0xff]  ;;  %v2708_v21 = vld [vmem:[%s5621_s5 + $0x358] sm:$0xff]  ;;  %v2726_v36 = vld [vmem:[%s5621_s5 + $0x3e8] sm:$0xff] }
 0x5da   : > { %2358 = vmatpush.msra.mxu1 %v2664_v38  ;;  %2288 = vmatpush.msrb.mxu3 %v2261_v27  ;;  %v2691_v38 = vld [vmem:[%s5621_s5 + $0x2d0] sm:$0xff]  ;;  %v2705_v63 = vld [vmem:[%s5621_s5 + $0x340] sm:$0xff] }
 0x5db   : > { %2342 = vmatpush.msra.mxu0 %v2644_v60  ;;  %2412 = vmatpush.msra.mxu2 %v2680_v5  ;;  %v2707_v27 = vld [vmem:[%s5621_s5 + $0x350] sm:$0xff]  ;;  %v2725_v60 = vld [vmem:[%s5621_s5 + $0x3e0] sm:$0xff]  ;;  %v2672_v5 = vld [vmem:[%s5621_s5 + $0x238] sm:$0xff] }
 0x5dc   : > { %2359 = vmatpush.msra.mxu1 %v2663_v13  ;;  %2289 = vmatpush.msrb.mxu3 %v2260_v6  ;;  %v2706_v13 = vld [vmem:[%s5621_s5 + $0x348] sm:$0xff]  ;;  %v2724_v6 = vld [vmem:[%s5621_s5 + $0x3d8] sm:$0xff] }
 0x5dd   : > { %2343 = vmatpush.msra.mxu0 %v2643_v2  ;;  %2413 = vmatpush.msra.mxu2 %v2679_v58  ;;  %v2689_v2 = vld [vmem:[%s5621_s5 + $0x2c0] sm:$0xff]  ;;  %v2671_v58 = vld [vmem:[%s5621_s5 + $0x230] sm:$0xff] }
 0x5de   : > { %2360 = vmatpush.msra.mxu1 %v2662_v0  ;;  %2290 = vmatpush.msrb.mxu3 %v2259_v3  ;;  %v2723_v0 = vld [vmem:[%s5621_s5 + $0x3d0] sm:$0xff]  ;;  %v2722_v3 = vld [vmem:[%s5621_s5 + $0x3c8] sm:$0xff] }
 0x5df   : > { %2344 = vmatpush.msra.mxu0 %v2642_v11  ;;  %2414 = vmatpush.msra.mxu2 %v2678_v9  ;;  %v2721_v11 = vld [vmem:[%s5621_s5 + $0x3c0] sm:$0xff]  ;;  %v2670_v9 = vld [vmem:[%s5621_s5 + $0x228] sm:$0xff] }
 0x5e0   : > { %2361 = vmatpush.msra.mxu1 %v2661_v52  ;;  %2291 = vmatpush.msrb.mxu3 %v2258_v8  ;;  %v2688_v52 = vld [vmem:[%s5621_s5 + $0x2b8] sm:$0xff] }
 0x5e1   : > { %2345 = vmatpush.msra.mxu0 %v2641_v35  ;;  %2415 = vmatpush.msra.mxu2 %v2677_v25  ;;  %v2704_v8 = vld [vmem:[%s5621_s5 + $0x338] sm:$0xff]  ;;  %v2669_v25 = vld [vmem:[%s5621_s5 + $0x220] sm:$0xff] }
 0x5e2   : > { %2362 = vmatpush.msra.mxu1 %v2660_v51  ;;  %2292 = vmatpush.msrb.mxu3 %v2257_v29  ;;  %v2720_v35 = vld [vmem:[%s5621_s5 + $0x3b8] sm:$0xff]  ;;  %v2687_v51 = vld [vmem:[%s5621_s5 + $0x2b0] sm:$0xff] }
 0x5e3   : > { %2346 = vmatpush.msra.mxu0 %v2640_v14  ;;  %2416 = vmatpush.msra.mxu2 %v2676_v23  ;;  %v2703_v29 = vld [vmem:[%s5621_s5 + $0x330] sm:$0xff]  ;;  %v2668_v23 = vld [vmem:[%s5621_s5 + $0x218] sm:$0xff] }
 0x5e4   : > { %2363 = vmatpush.msra.mxu1 %v2659_v43  ;;  %2293 = vmatpush.msrb.mxu3 %v2256_v39  ;;  %v2719_v14 = vld [vmem:[%s5621_s5 + $0x3b0] sm:$0xff]  ;;  %v2686_v43 = vld [vmem:[%s5621_s5 + $0x2a8] sm:$0xff] }
 0x5e5   : > { %2347 = vmatpush.msra.mxu0 %v2639_v50  ;;  %2417 = vmatpush.msra.mxu2 %v2675_v33  ;;  %v2702_v39 = vld [vmem:[%s5621_s5 + $0x328] sm:$0xff]  ;;  %v2667_v33 = vld [vmem:[%s5621_s5 + $0x210] sm:$0xff] }
 0x5e6   : > { %2364 = vmatpush.msra.mxu1 %v2658_v10  ;;  %2294 = vmatpush.msrb.mxu3 %v2255_v54  ;;  %v2718_v50 = vld [vmem:[%s5621_s5 + $0x3a8] sm:$0xff]  ;;  %v2685_v10 = vld [vmem:[%s5621_s5 + $0x2a0] sm:$0xff] }
 0x5e7   : > { %2348 = vmatpush.msra.mxu0 %v2638_v37  ;;  %2418 = vmatpush.msra.mxu2 %v2674_v57  ;;  %v2701_v54 = vld [vmem:[%s5621_s5 + $0x320] sm:$0xff]  ;;  %v2666_v57 = vld [vmem:[%s5621_s5 + $0x208] sm:$0xff] }
 0x5e8   : > { %2365 = vmatpush.msra.mxu1 %v2657_v46  ;;  %2295 = vmatpush.msrb.mxu3 %v2254_v18  ;;  %v2717_v37 = vld [vmem:[%s5621_s5 + $0x3a0] sm:$0xff]  ;;  %v2684_v46 = vld [vmem:[%s5621_s5 + $0x298] sm:$0xff] }
 0x5e9   : > { %2349 = vmatpush.msra.mxu0 %v2637_v44  ;;  %2419 = vmatpush.msra.mxu2 %v2673_v32  ;;  %v2700_v18 = vld [vmem:[%s5621_s5 + $0x318] sm:$0xff]  ;;  %v2665_v32 = vld [vmem:[%s5621_s5 + $0x200] sm:$0xff] }
 0x5ea   : > { %2366 = vmatpush.msra.mxu1 %v2656_v12  ;;  %2296 = vmatpush.msrb.mxu3 %v2253_v15  ;;  %v2716_v44 = vld [vmem:[%s5621_s5 + $0x398] sm:$0xff]  ;;  %v2683_v12 = vld [vmem:[%s5621_s5 + $0x290] sm:$0xff] }
 0x5eb   : > { %2350 = vmatpush.msra.mxu0 %v2636_v17  ;;  %2420 = vmatpush.msra.mxu2 %v2672_v5  ;;  %v2699_v15 = vld [vmem:[%s5621_s5 + $0x310] sm:$0xff] }
 0x5ec   : > { %2367 = vmatpush.msra.mxu1 %v2655_v34  ;;  %2297 = vmatpush.msrb.mxu3 %v2252_v30  ;;  %v2715_v17 = vld [vmem:[%s5621_s5 + $0x390] sm:$0xff]  ;;  %v2682_v34 = vld [vmem:[%s5621_s5 + $0x288] sm:$0xff] }
 0x5ed   : > { %2351 = vmatpush.msra.mxu0 %v2635_v28  ;;  %2421 = vmatpush.msra.mxu2 %v2671_v58  ;;  %v2698_v30 = vld [vmem:[%s5621_s5 + $0x308] sm:$0xff] }
 0x5ee   : > { %2368 = vmatpush.msra.mxu1 %v2654_v22  ;;  %2298 = vmatpush.msrb.mxu3 %v2251_v62  ;;  %v2714_v28 = vld [vmem:[%s5621_s5 + $0x388] sm:$0xff]  ;;  %v2681_v22 = vld [vmem:[%s5621_s5 + $0x280] sm:$0xff] }
 0x5ef   : > { %2352 = vmatpush.msra.mxu0 %v2634_v45  ;;  %2422 = vmatpush.msra.mxu2 %v2670_v9  ;;  %v2697_v62 = vld [vmem:[%s5621_s5 + $0x300] sm:$0xff] }
 0x5f0   : > { %2369 = vmatpush.msra.mxu1 %v2653_v48  ;;  %2299 = vmatpush.msrb.mxu3 %v2250_v49  ;;  %v2713_v45 = vld [vmem:[%s5621_s5 + $0x380] sm:$0xff] }
 0x5f1   : > { %2353 = vmatpush.msra.mxu0 %v2633_v19  ;;  %2423 = vmatpush.msra.mxu2 %v2669_v25 }
 0x5f2   : > { %2370 = vmatpush.msra.mxu1 %v2652_v24  ;;  %2300 = vmatpush.msrb.mxu3 %v2249_v42 }
 0x5f3   : > { %2486 = vmatpush.msrb.mxu0 %v2712_v47  ;;  %2424 = vmatpush.msra.mxu2 %v2668_v23 }
 0x5f4   : > { %2432 = vmatpush.msra.mxu3 %v2696_v56  ;;  %2371 = vmatpush.msra.mxu1 %v2651_v1 }
 0x5f5   : > { %2487 = vmatpush.msrb.mxu0 %v2711_v26  ;;  %2425 = vmatpush.msra.mxu2 %v2667_v33 }
 0x5f6   : > { %2433 = vmatpush.msra.mxu3 %v2695_v61  ;;  %2372 = vmatpush.msra.mxu1 %v2650_v20  ;;  %v1894_v48 = vpop.permute.xlu2 %1893 }
 0x5f7   : > { %2488 = vmatpush.msrb.mxu0 %v2710_v55  ;;  %2426 = vmatpush.msra.mxu2 %v2666_v57 }
 0x5f8   : > { %2434 = vmatpush.msra.mxu3 %v2694_v16  ;;  %2373 = vmatpush.msra.mxu1 %v2649_v40 }
 0x5f9   : > { %2489 = vmatpush.msrb.mxu0 %v2709_v31  ;;  %2427 = vmatpush.msra.mxu2 %v2665_v32 }
 0x5fa   : > { %2506 = vmatpush.msrb.mxu1 %v2728_v53  ;;  %2435 = vmatpush.msra.mxu3 %v2693_v59 }
 0x5fb   : > { %2490 = vmatpush.msrb.mxu0 %v2708_v21 }
 0x5fc   : > { %2507 = vmatpush.msrb.mxu1 %v2727_v4  ;;  %2436 = vmatpush.msra.mxu3 %v2692_v7 }
 0x5fd   : > { %2491 = vmatpush.msrb.mxu0 %v2707_v27 }
 0x5fe   : > { %2508 = vmatpush.msrb.mxu1 %v2726_v36  ;;  %2437 = vmatpush.msra.mxu3 %v2691_v38 }
 0x5ff   : > { %2492 = vmatpush.msrb.mxu0 %v2706_v13 }
 0x600   : > { %2509 = vmatpush.msrb.mxu1 %v2725_v60  ;;  %2438 = vmatpush.msra.mxu3 %v2690_v41 }
 0x601   : > { %2493 = vmatpush.msrb.mxu0 %v2705_v63 }
 0x602   : > { %2510 = vmatpush.msrb.mxu1 %v2724_v6  ;;  %2439 = vmatpush.msra.mxu3 %v2689_v2 }
 0x603   : > { %2494 = vmatpush.msrb.mxu0 %v2704_v8 }
 0x604   : > { %2511 = vmatpush.msrb.mxu1 %v2723_v0  ;;  %2440 = vmatpush.msra.mxu3 %v2688_v52 }
 0x605   : > { %2495 = vmatpush.msrb.mxu0 %v2703_v29 }
 0x606   : > { %2512 = vmatpush.msrb.mxu1 %v2722_v3  ;;  %2441 = vmatpush.msra.mxu3 %v2687_v51 }
 0x607   : > { %2496 = vmatpush.msrb.mxu0 %v2702_v39 }
 0x608   : > { %2513 = vmatpush.msrb.mxu1 %v2721_v11  ;;  %2442 = vmatpush.msra.mxu3 %v2686_v43 }
 0x609   : > { %2497 = vmatpush.msrb.mxu0 %v2701_v54 }
 0x60a   : > { %2514 = vmatpush.msrb.mxu1 %v2720_v35  ;;  %2443 = vmatpush.msra.mxu3 %v2685_v10 }
 0x60b   : > { %2498 = vmatpush.msrb.mxu0 %v2700_v18 }
 0x60c   : > { %2515 = vmatpush.msrb.mxu1 %v2719_v14  ;;  %2444 = vmatpush.msra.mxu3 %v2684_v46 }
 0x60d   : > { %2499 = vmatpush.msrb.mxu0 %v2699_v15 }
 0x60e   : > { %2516 = vmatpush.msrb.mxu1 %v2718_v50  ;;  %2445 = vmatpush.msra.mxu3 %v2683_v12 }
 0x60f   : > { %2500 = vmatpush.msrb.mxu0 %v2698_v30 }
 0x610   : > { %2517 = vmatpush.msrb.mxu1 %v2717_v37  ;;  %2446 = vmatpush.msra.mxu3 %v2682_v34 }
 0x611   : > { %2501 = vmatpush.msrb.mxu0 %v2697_v62 }
 0x612   : > { %2518 = vmatpush.msrb.mxu1 %v2716_v44  ;;  %2447 = vmatpush.msra.mxu3 %v2681_v22 }
 0x614   : > { %2519 = vmatpush.msrb.mxu1 %v2715_v17 }
 0x616   : > { %2520 = vmatpush.msrb.mxu1 %v2714_v28 }
 0x618   : > { %2521 = vmatpush.msrb.mxu1 %v2713_v45 }
 0x638   : > { %v2166_v49 = vpop.f32.mrf.mxu2 }
 0x639   : > { %v2167_v24 = vadd.f32 %v2166_v49, %v1894_v48 }
 0x64e   : > { %v2206_v19 = vpop.f32.mrf.mxu0 }
 0x64f   : > { %v2207_v42 = vadd.f32 %v2206_v19, %v1894_v48 }
 0x656   : > { %v2186_v56 = vpop.f32.mrf.mxu3  ;;  %v2226_v47 = vpop.f32.mrf.mxu1 }
 0x657   : > { %v2187_v1 = vadd.f32 %v2186_v56, %v2167_v24  ;;  %v2227_v61 = vadd.f32 %v2226_v47, %v2207_v42 }
 0x659   : > { %v2229_v26 = vmax.f32 %v2187_v1, 0.0  ;;  %v2230_v20 = vmax.f32 %v2227_v61, 0.0 }
 0x65b   : > { %2231 = vst [vmem:[%s285_s22] sm:$0xff] %v2229_v26  ;;  %2281 = vmatmul.f32.vlgmr.msrb.gmra.mxu2 %v2229_v26  ;;  %2301 = vmatmul.f32.vlgmr.msrb.gmra.mxu3 %v2230_v20 }
 0x65c   : > { %2232 = vst [vmem:[%s285_s22 + $0x8] sm:$0xff] %v2230_v20  ;;  %2354 = vmatmul.f32.vlgmr.msra.gmra.mxu0 %v2229_v26  ;;  %2374 = vmatmul.f32.vlgmr.msra.gmra.mxu1 %v2230_v20 }
 0x663   : > { %2428 = vmatmul.f32.vlgmr.msra.gmra.mxu2 %v2229_v26  ;;  %2448 = vmatmul.f32.vlgmr.msra.gmra.mxu3 %v2230_v20 }
 0x664   : > { %2502 = vmatmul.f32.vlgmr.msrb.gmra.mxu0 %v2229_v26  ;;  %2522 = vmatmul.f32.vlgmr.msrb.gmra.mxu1 %v2230_v20 }
 0x6d9   : > { %v2355_v16 = vpop.f32.mrf.mxu0  ;;  %v2375_v55 = vpop.f32.mrf.mxu1 }
 0x6da   : > { %v2376_v31 = vadd.f32 %v2375_v55, %v2355_v16 }
 0x6de   : > { %v2282_v40 = vpop.f32.mrf.mxu2  ;;  %v2302_v53 = vpop.f32.mrf.mxu3 }
 0x6df   : > { %v2303_v59 = vadd.f32 %v2302_v53, %v2282_v40 }
 0x6e1   : > { %v2503_v4 = vpop.f32.mrf.mxu0  ;;  %v2523_v7 = vpop.f32.mrf.mxu1  ;;  %v2378_v38 = vmax.f32 %v2303_v59, %v2376_v31 }
 0x6e2   : > { %v2524_v60 = vadd.f32 %v2523_v7, %v2503_v4 }
 0x6e6   : > { %v2429_v21 = vpop.f32.mrf.mxu2  ;;  %v2449_v36 = vpop.f32.mrf.mxu3 }
 0x6e7   : > { %v2450_v27 = vadd.f32 %v2449_v36, %v2429_v21 }
 0x6e9   : > { %v2452_v41 = vmax.f32 %v2378_v38, %v2450_v27 }
 0x6eb   : > { %v2526_v13 = vmax.f32 %v2452_v41, %v2524_v60 }
 0x6ed   : > { %2528 = vst.msk [vmem:[%s289_s19] sm:$0xff] %vm2527_vm9, %v2526_v13 }
 0x6ee PF: > { %s18_s24 = sadd.s32 1, %s3591_s24  }
 0x6ef   : > { %p15_p4 = scmp.ge.s32.totalorder %s18_s24, 4  }
 0x6f1   :  { %17 = sbr.rel (!%p15_p4) target bundleno = 1 (0x1), region = 125 }

</bundles_post_ra>
